<compile_context>
chip_gen: v5e
topology: v5e:2x2
jax: 0.10.0
libtpu: 0.0.40
codegen_flags: <defaults>
</compile_context>

<pallas_src>
import math
import jax
import jax.numpy as jnp
from jax.experimental import pallas as pl
from jax.experimental.pallas import tpu as pltpu


def _ntuple(n):
    def parse(x):
        if isinstance(x, (tuple, list)):
            return tuple(x)
        return (x,) * n
    return parse


def _rup(a, b):
    return ((a + b - 1) // b) * b


# ---------------------------------------------------------------------------
# Fused conv kernel (stride == (1,1); any padding / dilation / groups).
# One grid step handles one group g and nb images:
#   out[n, g] (Og, OH*OW) = bias_g + sum_{kh,kw} W_g[kh,kw] (Og,Cg) @ patch.T (Cg, OH*OW)
# ---------------------------------------------------------------------------
def _fused_conv(x, weight, bias, padding, dilation, groups, nb):
    N, Cin, H, W = x.shape
    Cout, Cg, kH, kW = weight.shape
    Og = Cout // groups
    pH, pW = padding
    dH, dW = dilation
    Hp, Wp = H + 2 * pH, W + 2 * pW
    OH = Hp - dH * (kH - 1)
    OW = Wp - dW * (kW - 1)
    OHW = OH * OW
    out_dtype = x.dtype

    # NCHW -> NHWC once at the boundary, pad spatially, split groups, cast bf16.
    x_nhwc = jnp.transpose(x, (0, 2, 3, 1))
    x_pad = jnp.pad(x_nhwc, ((0, 0), (pH, pH), (pW, pW), (0, 0)))
    if groups == 1:
        x5 = x_pad[:, None]                                        # (N, 1, Hp, Wp, Cin)
    else:
        x5 = x_pad.reshape(N, Hp, Wp, groups, Cg).transpose(0, 3, 1, 2, 4)
    x5 = x5.astype(jnp.bfloat16)

    # weight (Cout, Cg, kH, kW) -> (groups, kH*kW, Og, Cg), bf16.
    w5 = weight.reshape(groups, Og, Cg, kH, kW).transpose(0, 3, 4, 1, 2)
    w5 = w5.reshape(groups, kH * kW, Og, Cg).astype(jnp.bfloat16)

    if bias is None:
        bias = jnp.zeros((Cout,), jnp.float32)
    b3 = bias.reshape(groups, Og, 1).astype(jnp.float32)

    def kernel(x_ref, w_ref, b_ref, o_ref):
        # x_ref: (nb,1,Hp,Wp,Cg)  w_ref: (1,kH*kW,Og,Cg)  b_ref: (1,Og,1)
        # o_ref: (nb,1,Og,OH*OW)
        bias0 = jnp.broadcast_to(b_ref[0], (Og, OHW)).astype(jnp.float32)
        for i in range(nb):                               # static unroll over the image block
            acc = bias0
            for kk in range(kH * kW):                     # static unroll over taps
                kh, kw = kk // kW, kk % kW
                h0, w0 = kh * dH, kw * dW
                rows = x_ref[i, 0, pl.ds(h0, OH), :, :]   # (OH, Wp, Cg) bf16
                patch = rows[:, w0:w0 + OW, :]            # (OH, OW, Cg)
                p2 = patch.reshape(OHW, Cg)               # pixels major, channels on lanes
                wk = w_ref[0, kk]                         # (Og, Cg) bf16
                # (Og, Cg) x (OH*OW, Cg)^T -> (Og, OH*OW): lane-dense result, f32 acc.
                acc = acc + jax.lax.dot_general(
                    wk, p2, (((1,), (1,)), ((), ())),
                    preferred_element_type=jnp.float32)
            o_ref[i, 0] = acc.astype(o_ref.dtype)

    flops = 2 * N * OH * OW * Cout * Cg * kH * kW
    bytes_accessed = int(x5.size * 2 + w5.size * 2 + b3.size * 4
                         + N * Cout * OHW * jnp.dtype(out_dtype).itemsize)

    out5 = pl.pallas_call(
        kernel,
        out_shape=jax.ShapeDtypeStruct((N, groups, Og, OHW), out_dtype),
        grid_spec=pltpu.PrefetchScalarGridSpec(
            num_scalar_prefetch=0,
            grid=(groups, N // nb),           # group outer -> weight/bias stay resident
            in_specs=[
                pl.BlockSpec((nb, 1, Hp, Wp, Cg), lambda g, n: (n, g, 0, 0, 0)),
                pl.BlockSpec((1, kH * kW, Og, Cg), lambda g, n: (g, 0, 0, 0)),
                pl.BlockSpec((1, Og, 1), lambda g, n: (g, 0, 0)),
            ],
            out_specs=pl.BlockSpec((nb, 1, Og, OHW), lambda g, n: (n, g, 0, 0)),
        ),
        compiler_params=pltpu.CompilerParams(
            dimension_semantics=("parallel", "parallel"),
            vmem_limit_bytes=32 * 1024 * 1024),
        cost_estimate=pl.CostEstimate(
            flops=flops, transcendentals=0, bytes_accessed=bytes_accessed),
    )(x5, w5, b3)

    # (N, groups, Og, OH*OW) is already NCHW element order -> free reshape only.
    return out5.reshape(N, Cout, OH, OW)


# ---------------------------------------------------------------------------
# Generic fallback (stride != 1 or oversized tiles): im2col + tiled matmul kernel.
# ---------------------------------------------------------------------------
def _matmul_bias_kernel(p_ref, w_ref, b_ref, o_ref):
    acc = jnp.dot(p_ref[...], w_ref[...], preferred_element_type=jnp.float32)
    o_ref[...] = (acc + b_ref[...]).astype(o_ref.dtype)


def _pallas_matmul_bias(patches, w_mat, bias_row):
    """patches: (M, K) f32, w_mat: (K, O) f32, bias_row: (1, O) f32 -> (M, O) f32."""
    M, K = patches.shape
    _, O = w_mat.shape
    bpe = patches.dtype.itemsize
    tm = 128
    for cand in (1024, 512, 256, 128):     # biggest M tile within a modest VMEM budget
        need = 2 * cand * K * bpe + 2 * K * O * bpe + 2 * cand * _rup(O, 128) * 4
        if need <= 8 * 1024 * 1024:
            tm = cand
            break
    Mp = pl.cdiv(M, tm) * tm
    if Mp != M:
        patches = jnp.pad(patches, ((0, Mp - M), (0, 0)))

    out = pl.pallas_call(
        _matmul_bias_kernel,
        out_shape=jax.ShapeDtypeStruct((Mp, O), jnp.float32),
        grid_spec=pltpu.PrefetchScalarGridSpec(
            num_scalar_prefetch=0,
            grid=(Mp // tm,),
            in_specs=[
                pl.BlockSpec((tm, K), lambda i: (i, 0)),
                pl.BlockSpec((K, O), lambda i: (0, 0)),
                pl.BlockSpec((1, O), lambda i: (0, 0)),
            ],
            out_specs=pl.BlockSpec((tm, O), lambda i: (i, 0)),
        ),
        compiler_params=pltpu.CompilerParams(
            dimension_semantics=("parallel",),
            vmem_limit_bytes=32 * 1024 * 1024),
    )(patches, w_mat, bias_row)
    return out[:M]


def _im2col(x, kH, kW, stride, padding, dilation):
    N, C, H, W = x.shape
    sH, sW = stride
    pH, pW = padding
    dH, dW = dilation
    OH = (H + 2 * pH - dH * (kH - 1) - 1) // sH + 1
    OW = (W + 2 * pW - dW * (kW - 1) - 1) // sW + 1
    xp = jnp.pad(x, ((0, 0), (0, 0), (pH, pH), (pW, pW)))
    cols = []
    for kh in range(kH):
        for kw in range(kW):
            h0, w0 = kh * dH, kw * dW
            sl = xp[:, :, h0:h0 + sH * (OH - 1) + 1:sH,
                          w0:w0 + sW * (OW - 1) + 1:sW]
            cols.append(sl)
    patches = jnp.stack(cols, axis=0)                    # (kH*kW, N, C, OH, OW)
    patches = jnp.transpose(patches, (1, 3, 4, 2, 0))    # (N, OH, OW, C, kH*kW)
    return patches.reshape(N * OH * OW, C * kH * kW), OH, OW


def _conv2d_im2col(x, weight, bias, stride, padding, dilation, groups):
    N, Cin, H, W = x.shape
    Cout, Cg, kH, kW = weight.shape
    Og = Cout // groups
    if bias is None:
        bias = jnp.zeros((Cout,), dtype=jnp.float32)
    group_outs = []
    for g in range(groups):
        xg = x[:, g * Cg:(g + 1) * Cg]
        wg = weight[g * Og:(g + 1) * Og]
        bg = bias[g * Og:(g + 1) * Og].astype(jnp.float32)
        patches, OH, OW = _im2col(xg, kH, kW, stride, padding, dilation)
        w_mat = wg.reshape(Og, Cg * kH * kW).T
        out = _pallas_matmul_bias(patches.astype(jnp.float32),
                                  w_mat.astype(jnp.float32), bg[None, :])
        out = out.reshape(N, OH, OW, Og).transpose(0, 3, 1, 2)
        group_outs.append(out.astype(x.dtype))
    return jnp.concatenate(group_outs, axis=1) if groups > 1 else group_outs[0]


# ---------------------------------------------------------------------------
# Dispatcher
# ---------------------------------------------------------------------------
def conv2d_pallas(x, weight, bias, stride, padding, dilation, groups):
    """x: (N, Cin, H, W) NCHW; weight: (Cout, Cin//groups, kH, kW); bias: (Cout,) or None."""
    N, Cin, H, W = x.shape
    Cout, Cg, kH, kW = weight.shape
    assert Cin == Cg * groups and Cout % groups == 0
    if stride == (1, 1):
        pH, pW = padding
        dH, dW = dilation
        Hp, Wp = H + 2 * pH, W + 2 * pW
        OH, OW = Hp - dH * (kH - 1), Wp - dW * (kW - 1)
        Og = Cout // groups
        if OH >= 1 and OW >= 1:
            # Per-image VMEM block estimates (tiled layouts, double-buffered blocks).
            x_blk = Hp * _rup(Wp, 16) * _rup(Cg, 128) * 2          # bf16 input tile
            o_blk = _rup(Og, 8) * _rup(OH * OW, 128) * 4           # output tile
            w_blk = kH * kW * _rup(Og, 16) * _rup(Cg, 128) * 2     # bf16 weight tile
            budget = 12 * 1024 * 1024
            nb = 0
            for cand in (8, 4, 2, 1):                              # images per grid step
                if N % cand:
                    continue
                if 2 * cand * x_blk + 2 * cand * o_blk + 2 * w_blk <= budget:
                    nb = cand
                    break
            if nb:
                return _fused_conv(x, weight, bias, padding, dilation, groups, nb)
    # TODO(synk): strided / very-large-image convs use the im2col fallback path.
    return _conv2d_im2col(x, weight, bias, stride, padding, dilation, groups)


# ---------------------------------------------------------------------------
# oConv2d module (parameter setup in plain JAX, forward uses the Pallas conv)
# ---------------------------------------------------------------------------
class OConv2d:
    def __init__(self, in_channels, out_channels, kernel_size, stride, padding,
                 dilation, groups, bias, key):
        ntuple = _ntuple(2)
        self.in_channels = in_channels
        self.out_channels = out_channels
        self.kernel_size = ntuple(kernel_size)
        self.stride = ntuple(stride)
        self.padding = ntuple(padding)
        self.dilation = ntuple(dilation)
        self.groups = groups

        kH, kW = self.kernel_size
        fan_in = (in_channels // groups) * kH * kW
        wkey, bkey = jax.random.split(key)
        # kaiming_uniform_(a=sqrt(5)) -> U(-1/sqrt(fan_in), 1/sqrt(fan_in))
        wbound = 1.0 / math.sqrt(fan_in)
        self.weight = jax.random.uniform(
            wkey, (out_channels, in_channels // groups, kH, kW),
            minval=-wbound, maxval=wbound, dtype=jnp.float32)
        if bias:
            bbound = 1.0 / math.sqrt(fan_in)
            self.bias = jax.random.uniform(
                bkey, (out_channels,), minval=-bbound, maxval=bbound,
                dtype=jnp.float32)
        else:
            self.bias = None

    def __call__(self, x, coordinates):
        # coordinates[0]: output-channel indices, coordinates[1]: input-channel indices
        w = self.weight[coordinates[0], coordinates[1]]        # (O', I', kH, kW)
        b = self.bias[coordinates[0].reshape(-1)] if self.bias is not None else None
        return conv2d_pallas(x, w, b, self.stride, self.padding,
                             self.dilation, self.groups)


# ---------------------------------------------------------------------------
if __name__ == "__main__":
    key = jax.random.PRNGKey(0)
    xkey, mkey = jax.random.split(key)

    # module config: in=4, out=8, k=3, stride=1, pad=1, dil=1, groups=1, bias=True
    mod = OConv2d(in_channels=4, out_channels=8, kernel_size=3, stride=1,
                  padding=1, dilation=1, groups=1, bias=True, key=mkey)

    # input NCHW: (2, 4, 16, 16)
    x = jax.random.normal(xkey, (2, 4, 16, 16), dtype=jnp.float32)

    # coordinates: select 4 of the 8 output filters x all 4 input channels
    coord0 = jnp.array([[0], [2], [5], [7]], dtype=jnp.int32)      # (4, 1)
    coord1 = jnp.array([[0, 1, 2, 3]], dtype=jnp.int32)            # (1, 4)
    coordinates = (coord0, coord1)

    out = mod(x, coordinates)
    out = jax.block_until_ready(out)
    assert out.shape == (2, 4, 16, 16), out.shape

    # reference check against XLA conv (same semantics as F.conv2d); bf16 operands in
    # the kernel -> loosened tolerance vs the f32 reference.
    w_sel = mod.weight[coord0, coord1]
    b_sel = mod.bias[coord0.reshape(-1)]
    ref = jax.lax.conv_general_dilated(
        x, w_sel, window_strides=mod.stride,
        padding=[(mod.padding[0], mod.padding[0]), (mod.padding[1], mod.padding[1])],
        rhs_dilation=mod.dilation, feature_group_count=mod.groups,
        dimension_numbers=("NCHW", "OIHW", "NCHW"),
    ) + b_sel[None, :, None, None]
    assert jnp.allclose(out, ref, atol=2e-2, rtol=2e-2), \
        float(jnp.max(jnp.abs(out - ref)))

    print("KERNEL_OK")
</pallas_src>

<mosaic_0001>
module attributes {stable_mosaic.version = 11 : i64} {
  func.func @kernel(%arg0: i32, %arg1: i32, %arg2: memref<2x1x18x18x4xbf16, #tpu.memory_space<vmem>>, %arg3: memref<1x9x4x4xbf16, #tpu.memory_space<vmem>>, %arg4: memref<1x4x1xf32, #tpu.memory_space<vmem>>, %arg5: memref<2x1x4x256xf32, #tpu.memory_space<vmem>>) attributes {dimension_semantics = [#tpu.dimension_semantics<parallel>, #tpu.dimension_semantics<parallel>], iteration_bounds = array<i64: 1, 1>, scalar_prefetch = 0 : i64, scratch_operands = 0 : i64, tpu.core_type = #tpu.core_type<tc>, window_params = [{transform_indices = @transform_0, window_bounds = array<i64: 2, 1, 18, 18, 4>}, {transform_indices = @transform_1, window_bounds = array<i64: 1, 9, 4, 4>}, {transform_indices = @transform_2, window_bounds = array<i64: 1, 4, 1>}, {transform_indices = @transform_3, window_bounds = array<i64: 2, 1, 4, 256>}]} {
    %c0 = arith.constant 0 : index
    %c0_0 = arith.constant 0 : index
    %c0_1 = arith.constant 0 : index
    %0 = vector.load %arg4[%c0, %c0_0, %c0_1] : memref<1x4x1xf32, #tpu.memory_space<vmem>>, vector<1x4x1xf32>
    %1 = vector.shape_cast %0 : vector<1x4x1xf32> to vector<4x1xf32>
    %2 = vector.shape_cast %1 : vector<4x1xf32> to vector<4x1xf32>
    %3 = vector.broadcast %2 : vector<4x1xf32> to vector<4x256xf32>
    %c0_2 = arith.constant 0 : index
    %c0_3 = arith.constant 0 : index
    %c0_4 = arith.constant 0 : index
    %c0_5 = arith.constant 0 : index
    %c0_6 = arith.constant 0 : index
    %4 = vector.load %arg2[%c0_2, %c0_3, %c0_4, %c0_5, %c0_6] : memref<2x1x18x18x4xbf16, #tpu.memory_space<vmem>>, vector<1x1x16x18x4xbf16>
    %5 = vector.shape_cast %4 : vector<1x1x16x18x4xbf16> to vector<16x18x4xbf16>
    %6 = vector.extract_strided_slice %5 {offsets = [0, 0, 0], sizes = [16, 16, 4], strides = [1, 1, 1]} : vector<16x18x4xbf16> to vector<16x16x4xbf16>
    %7 = vector.shape_cast %6 : vector<16x16x4xbf16> to vector<256x4xbf16>
    %c0_7 = arith.constant 0 : index
    %c0_8 = arith.constant 0 : index
    %c0_9 = arith.constant 0 : index
    %c0_10 = arith.constant 0 : index
    %8 = vector.load %arg3[%c0_7, %c0_8, %c0_9, %c0_10] : memref<1x9x4x4xbf16, #tpu.memory_space<vmem>>, vector<1x1x4x4xbf16>
    %9 = vector.shape_cast %8 : vector<1x1x4x4xbf16> to vector<4x4xbf16>
    %cst = arith.constant dense<0.000000e+00> : vector<4x256xf32>
    %10 = tpu.matmul %9, %7, %cst {dimension_numbers = #tpu.dot_dimension_numbers<[1], [1], [0], [0], [0, 0, 1, 0], [], []>} : vector<4x4xbf16>, vector<256x4xbf16>, vector<4x256xf32> -> vector<4x256xf32>
    %11 = arith.addf %3, %10 : vector<4x256xf32>
    %c0_11 = arith.constant 0 : index
    %c0_12 = arith.constant 0 : index
    %c0_13 = arith.constant 0 : index
    %c0_14 = arith.constant 0 : index
    %c0_15 = arith.constant 0 : index
    %12 = vector.load %arg2[%c0_11, %c0_12, %c0_13, %c0_14, %c0_15] : memref<2x1x18x18x4xbf16, #tpu.memory_space<vmem>>, vector<1x1x16x18x4xbf16>
    %13 = vector.shape_cast %12 : vector<1x1x16x18x4xbf16> to vector<16x18x4xbf16>
    %14 = vector.extract_strided_slice %13 {offsets = [0, 1, 0], sizes = [16, 16, 4], strides = [1, 1, 1]} : vector<16x18x4xbf16> to vector<16x16x4xbf16>
    %15 = vector.shape_cast %14 : vector<16x16x4xbf16> to vector<256x4xbf16>
    %c0_16 = arith.constant 0 : index
    %c1 = arith.constant 1 : index
    %c0_17 = arith.constant 0 : index
    %c0_18 = arith.constant 0 : index
    %16 = vector.load %arg3[%c0_16, %c1, %c0_17, %c0_18] : memref<1x9x4x4xbf16, #tpu.memory_space<vmem>>, vector<1x1x4x4xbf16>
    %17 = vector.shape_cast %16 : vector<1x1x4x4xbf16> to vector<4x4xbf16>
    %cst_19 = arith.constant dense<0.000000e+00> : vector<4x256xf32>
    %18 = tpu.matmul %17, %15, %cst_19 {dimension_numbers = #tpu.dot_dimension_numbers<[1], [1], [0], [0], [0, 0, 1, 0], [], []>} : vector<4x4xbf16>, vector<256x4xbf16>, vector<4x256xf32> -> vector<4x256xf32>
    %19 = arith.addf %11, %18 : vector<4x256xf32>
    %c0_20 = arith.constant 0 : index
    %c0_21 = arith.constant 0 : index
    %c0_22 = arith.constant 0 : index
    %c0_23 = arith.constant 0 : index
    %c0_24 = arith.constant 0 : index
    %20 = vector.load %arg2[%c0_20, %c0_21, %c0_22, %c0_23, %c0_24] : memref<2x1x18x18x4xbf16, #tpu.memory_space<vmem>>, vector<1x1x16x18x4xbf16>
    %21 = vector.shape_cast %20 : vector<1x1x16x18x4xbf16> to vector<16x18x4xbf16>
    %22 = vector.extract_strided_slice %21 {offsets = [0, 2, 0], sizes = [16, 16, 4], strides = [1, 1, 1]} : vector<16x18x4xbf16> to vector<16x16x4xbf16>
    %23 = vector.shape_cast %22 : vector<16x16x4xbf16> to vector<256x4xbf16>
    %c0_25 = arith.constant 0 : index
    %c2 = arith.constant 2 : index
    %c0_26 = arith.constant 0 : index
    %c0_27 = arith.constant 0 : index
    %24 = vector.load %arg3[%c0_25, %c2, %c0_26, %c0_27] : memref<1x9x4x4xbf16, #tpu.memory_space<vmem>>, vector<1x1x4x4xbf16>
    %25 = vector.shape_cast %24 : vector<1x1x4x4xbf16> to vector<4x4xbf16>
    %cst_28 = arith.constant dense<0.000000e+00> : vector<4x256xf32>
    %26 = tpu.matmul %25, %23, %cst_28 {dimension_numbers = #tpu.dot_dimension_numbers<[1], [1], [0], [0], [0, 0, 1, 0], [], []>} : vector<4x4xbf16>, vector<256x4xbf16>, vector<4x256xf32> -> vector<4x256xf32>
    %27 = arith.addf %19, %26 : vector<4x256xf32>
    %c0_29 = arith.constant 0 : index
    %c0_30 = arith.constant 0 : index
    %c1_31 = arith.constant 1 : index
    %c0_32 = arith.constant 0 : index
    %c0_33 = arith.constant 0 : index
    %28 = vector.load %arg2[%c0_29, %c0_30, %c1_31, %c0_32, %c0_33] : memref<2x1x18x18x4xbf16, #tpu.memory_space<vmem>>, vector<1x1x16x18x4xbf16>
    %29 = vector.shape_cast %28 : vector<1x1x16x18x4xbf16> to vector<16x18x4xbf16>
    %30 = vector.extract_strided_slice %29 {offsets = [0, 0, 0], sizes = [16, 16, 4], strides = [1, 1, 1]} : vector<16x18x4xbf16> to vector<16x16x4xbf16>
    %31 = vector.shape_cast %30 : vector<16x16x4xbf16> to vector<256x4xbf16>
    %c0_34 = arith.constant 0 : index
    %c3 = arith.constant 3 : index
    %c0_35 = arith.constant 0 : index
    %c0_36 = arith.constant 0 : index
    %32 = vector.load %arg3[%c0_34, %c3, %c0_35, %c0_36] : memref<1x9x4x4xbf16, #tpu.memory_space<vmem>>, vector<1x1x4x4xbf16>
    %33 = vector.shape_cast %32 : vector<1x1x4x4xbf16> to vector<4x4xbf16>
    %cst_37 = arith.constant dense<0.000000e+00> : vector<4x256xf32>
    %34 = tpu.matmul %33, %31, %cst_37 {dimension_numbers = #tpu.dot_dimension_numbers<[1], [1], [0], [0], [0, 0, 1, 0], [], []>} : vector<4x4xbf16>, vector<256x4xbf16>, vector<4x256xf32> -> vector<4x256xf32>
    %35 = arith.addf %27, %34 : vector<4x256xf32>
    %c0_38 = arith.constant 0 : index
    %c0_39 = arith.constant 0 : index
    %c1_40 = arith.constant 1 : index
    %c0_41 = arith.constant 0 : index
    %c0_42 = arith.constant 0 : index
    %36 = vector.load %arg2[%c0_38, %c0_39, %c1_40, %c0_41, %c0_42] : memref<2x1x18x18x4xbf16, #tpu.memory_space<vmem>>, vector<1x1x16x18x4xbf16>
    %37 = vector.shape_cast %36 : vector<1x1x16x18x4xbf16> to vector<16x18x4xbf16>
    %38 = vector.extract_strided_slice %37 {offsets = [0, 1, 0], sizes = [16, 16, 4], strides = [1, 1, 1]} : vector<16x18x4xbf16> to vector<16x16x4xbf16>
    %39 = vector.shape_cast %38 : vector<16x16x4xbf16> to vector<256x4xbf16>
    %c0_43 = arith.constant 0 : index
    %c4 = arith.constant 4 : index
    %c0_44 = arith.constant 0 : index
    %c0_45 = arith.constant 0 : index
    %40 = vector.load %arg3[%c0_43, %c4, %c0_44, %c0_45] : memref<1x9x4x4xbf16, #tpu.memory_space<vmem>>, vector<1x1x4x4xbf16>
    %41 = vector.shape_cast %40 : vector<1x1x4x4xbf16> to vector<4x4xbf16>
    %cst_46 = arith.constant dense<0.000000e+00> : vector<4x256xf32>
    %42 = tpu.matmul %41, %39, %cst_46 {dimension_numbers = #tpu.dot_dimension_numbers<[1], [1], [0], [0], [0, 0, 1, 0], [], []>} : vector<4x4xbf16>, vector<256x4xbf16>, vector<4x256xf32> -> vector<4x256xf32>
    %43 = arith.addf %35, %42 : vector<4x256xf32>
    %c0_47 = arith.constant 0 : index
    %c0_48 = arith.constant 0 : index
    %c1_49 = arith.constant 1 : index
    %c0_50 = arith.constant 0 : index
    %c0_51 = arith.constant 0 : index
    %44 = vector.load %arg2[%c0_47, %c0_48, %c1_49, %c0_50, %c0_51] : memref<2x1x18x18x4xbf16, #tpu.memory_space<vmem>>, vector<1x1x16x18x4xbf16>
    %45 = vector.shape_cast %44 : vector<1x1x16x18x4xbf16> to vector<16x18x4xbf16>
    %46 = vector.extract_strided_slice %45 {offsets = [0, 2, 0], sizes = [16, 16, 4], strides = [1, 1, 1]} : vector<16x18x4xbf16> to vector<16x16x4xbf16>
    %47 = vector.shape_cast %46 : vector<16x16x4xbf16> to vector<256x4xbf16>
    %c0_52 = arith.constant 0 : index
    %c5 = arith.constant 5 : index
    %c0_53 = arith.constant 0 : index
    %c0_54 = arith.constant 0 : index
    %48 = vector.load %arg3[%c0_52, %c5, %c0_53, %c0_54] : memref<1x9x4x4xbf16, #tpu.memory_space<vmem>>, vector<1x1x4x4xbf16>
    %49 = vector.shape_cast %48 : vector<1x1x4x4xbf16> to vector<4x4xbf16>
    %cst_55 = arith.constant dense<0.000000e+00> : vector<4x256xf32>
    %50 = tpu.matmul %49, %47, %cst_55 {dimension_numbers = #tpu.dot_dimension_numbers<[1], [1], [0], [0], [0, 0, 1, 0], [], []>} : vector<4x4xbf16>, vector<256x4xbf16>, vector<4x256xf32> -> vector<4x256xf32>
    %51 = arith.addf %43, %50 : vector<4x256xf32>
    %c0_56 = arith.constant 0 : index
    %c0_57 = arith.constant 0 : index
    %c2_58 = arith.constant 2 : index
    %c0_59 = arith.constant 0 : index
    %c0_60 = arith.constant 0 : index
    %52 = vector.load %arg2[%c0_56, %c0_57, %c2_58, %c0_59, %c0_60] : memref<2x1x18x18x4xbf16, #tpu.memory_space<vmem>>, vector<1x1x16x18x4xbf16>
    %53 = vector.shape_cast %52 : vector<1x1x16x18x4xbf16> to vector<16x18x4xbf16>
    %54 = vector.extract_strided_slice %53 {offsets = [0, 0, 0], sizes = [16, 16, 4], strides = [1, 1, 1]} : vector<16x18x4xbf16> to vector<16x16x4xbf16>
    %55 = vector.shape_cast %54 : vector<16x16x4xbf16> to vector<256x4xbf16>
    %c0_61 = arith.constant 0 : index
    %c6 = arith.constant 6 : index
    %c0_62 = arith.constant 0 : index
    %c0_63 = arith.constant 0 : index
    %56 = vector.load %arg3[%c0_61, %c6, %c0_62, %c0_63] : memref<1x9x4x4xbf16, #tpu.memory_space<vmem>>, vector<1x1x4x4xbf16>
    %57 = vector.shape_cast %56 : vector<1x1x4x4xbf16> to vector<4x4xbf16>
    %cst_64 = arith.constant dense<0.000000e+00> : vector<4x256xf32>
    %58 = tpu.matmul %57, %55, %cst_64 {dimension_numbers = #tpu.dot_dimension_numbers<[1], [1], [0], [0], [0, 0, 1, 0], [], []>} : vector<4x4xbf16>, vector<256x4xbf16>, vector<4x256xf32> -> vector<4x256xf32>
    %59 = arith.addf %51, %58 : vector<4x256xf32>
    %c0_65 = arith.constant 0 : index
    %c0_66 = arith.constant 0 : index
    %c2_67 = arith.constant 2 : index
    %c0_68 = arith.constant 0 : index
    %c0_69 = arith.constant 0 : index
    %60 = vector.load %arg2[%c0_65, %c0_66, %c2_67, %c0_68, %c0_69] : memref<2x1x18x18x4xbf16, #tpu.memory_space<vmem>>, vector<1x1x16x18x4xbf16>
    %61 = vector.shape_cast %60 : vector<1x1x16x18x4xbf16> to vector<16x18x4xbf16>
    %62 = vector.extract_strided_slice %61 {offsets = [0, 1, 0], sizes = [16, 16, 4], strides = [1, 1, 1]} : vector<16x18x4xbf16> to vector<16x16x4xbf16>
    %63 = vector.shape_cast %62 : vector<16x16x4xbf16> to vector<256x4xbf16>
    %c0_70 = arith.constant 0 : index
    %c7 = arith.constant 7 : index
    %c0_71 = arith.constant 0 : index
    %c0_72 = arith.constant 0 : index
    %64 = vector.load %arg3[%c0_70, %c7, %c0_71, %c0_72] : memref<1x9x4x4xbf16, #tpu.memory_space<vmem>>, vector<1x1x4x4xbf16>
    %65 = vector.shape_cast %64 : vector<1x1x4x4xbf16> to vector<4x4xbf16>
    %cst_73 = arith.constant dense<0.000000e+00> : vector<4x256xf32>
    %66 = tpu.matmul %65, %63, %cst_73 {dimension_numbers = #tpu.dot_dimension_numbers<[1], [1], [0], [0], [0, 0, 1, 0], [], []>} : vector<4x4xbf16>, vector<256x4xbf16>, vector<4x256xf32> -> vector<4x256xf32>
    %67 = arith.addf %59, %66 : vector<4x256xf32>
    %c0_74 = arith.constant 0 : index
    %c0_75 = arith.constant 0 : index
    %c2_76 = arith.constant 2 : index
    %c0_77 = arith.constant 0 : index
    %c0_78 = arith.constant 0 : index
    %68 = vector.load %arg2[%c0_74, %c0_75, %c2_76, %c0_77, %c0_78] : memref<2x1x18x18x4xbf16, #tpu.memory_space<vmem>>, vector<1x1x16x18x4xbf16>
    %69 = vector.shape_cast %68 : vector<1x1x16x18x4xbf16> to vector<16x18x4xbf16>
    %70 = vector.extract_strided_slice %69 {offsets = [0, 2, 0], sizes = [16, 16, 4], strides = [1, 1, 1]} : vector<16x18x4xbf16> to vector<16x16x4xbf16>
    %71 = vector.shape_cast %70 : vector<16x16x4xbf16> to vector<256x4xbf16>
    %c0_79 = arith.constant 0 : index
    %c8 = arith.constant 8 : index
    %c0_80 = arith.constant 0 : index
    %c0_81 = arith.constant 0 : index
    %72 = vector.load %arg3[%c0_79, %c8, %c0_80, %c0_81] : memref<1x9x4x4xbf16, #tpu.memory_space<vmem>>, vector<1x1x4x4xbf16>
    %73 = vector.shape_cast %72 : vector<1x1x4x4xbf16> to vector<4x4xbf16>
    %cst_82 = arith.constant dense<0.000000e+00> : vector<4x256xf32>
    %74 = tpu.matmul %73, %71, %cst_82 {dimension_numbers = #tpu.dot_dimension_numbers<[1], [1], [0], [0], [0, 0, 1, 0], [], []>} : vector<4x4xbf16>, vector<256x4xbf16>, vector<4x256xf32> -> vector<4x256xf32>
    %75 = arith.addf %67, %74 : vector<4x256xf32>
    %c0_83 = arith.constant 0 : index
    %c0_84 = arith.constant 0 : index
    %c0_85 = arith.constant 0 : index
    %c0_86 = arith.constant 0 : index
    %76 = vector.load %arg5[%c0_83, %c0_84, %c0_85, %c0_86] : memref<2x1x4x256xf32, #tpu.memory_space<vmem>>, vector<1x1x4x256xf32>
    %77 = vector.shape_cast %76 : vector<1x1x4x256xf32> to vector<4x256xf32>
    %78 = vector.shape_cast %75 : vector<4x256xf32> to vector<1x1x4x256xf32>
    tpu.vector_store %arg5[%c0_83, %c0_84, %c0_85, %c0_86], %78 {strides = array<i32>} : memref<2x1x4x256xf32, #tpu.memory_space<vmem>>, vector<1x1x4x256xf32>,
    %c1_87 = arith.constant 1 : index
    %c0_88 = arith.constant 0 : index
    %c0_89 = arith.constant 0 : index
    %c0_90 = arith.constant 0 : index
    %c0_91 = arith.constant 0 : index
    %79 = vector.load %arg2[%c1_87, %c0_88, %c0_89, %c0_90, %c0_91] : memref<2x1x18x18x4xbf16, #tpu.memory_space<vmem>>, vector<1x1x16x18x4xbf16>
    %80 = vector.shape_cast %79 : vector<1x1x16x18x4xbf16> to vector<16x18x4xbf16>
    %81 = vector.extract_strided_slice %80 {offsets = [0, 0, 0], sizes = [16, 16, 4], strides = [1, 1, 1]} : vector<16x18x4xbf16> to vector<16x16x4xbf16>
    %82 = vector.shape_cast %81 : vector<16x16x4xbf16> to vector<256x4xbf16>
    %c0_92 = arith.constant 0 : index
    %c0_93 = arith.constant 0 : index
    %c0_94 = arith.constant 0 : index
    %c0_95 = arith.constant 0 : index
    %83 = vector.load %arg3[%c0_92, %c0_93, %c0_94, %c0_95] : memref<1x9x4x4xbf16, #tpu.memory_space<vmem>>, vector<1x1x4x4xbf16>
    %84 = vector.shape_cast %83 : vector<1x1x4x4xbf16> to vector<4x4xbf16>
    %cst_96 = arith.constant dense<0.000000e+00> : vector<4x256xf32>
    %85 = tpu.matmul %84, %82, %cst_96 {dimension_numbers = #tpu.dot_dimension_numbers<[1], [1], [0], [0], [0, 0, 1, 0], [], []>} : vector<4x4xbf16>, vector<256x4xbf16>, vector<4x256xf32> -> vector<4x256xf32>
    %86 = arith.addf %3, %85 : vector<4x256xf32>
    %c1_97 = arith.constant 1 : index
    %c0_98 = arith.constant 0 : index
    %c0_99 = arith.constant 0 : index
    %c0_100 = arith.constant 0 : index
    %c0_101 = arith.constant 0 : index
    %87 = vector.load %arg2[%c1_97, %c0_98, %c0_99, %c0_100, %c0_101] : memref<2x1x18x18x4xbf16, #tpu.memory_space<vmem>>, vector<1x1x16x18x4xbf16>
    %88 = vector.shape_cast %87 : vector<1x1x16x18x4xbf16> to vector<16x18x4xbf16>
    %89 = vector.extract_strided_slice %88 {offsets = [0, 1, 0], sizes = [16, 16, 4], strides = [1, 1, 1]} : vector<16x18x4xbf16> to vector<16x16x4xbf16>
    %90 = vector.shape_cast %89 : vector<16x16x4xbf16> to vector<256x4xbf16>
    %c0_102 = arith.constant 0 : index
    %c1_103 = arith.constant 1 : index
    %c0_104 = arith.constant 0 : index
    %c0_105 = arith.constant 0 : index
    %91 = vector.load %arg3[%c0_102, %c1_103, %c0_104, %c0_105] : memref<1x9x4x4xbf16, #tpu.memory_space<vmem>>, vector<1x1x4x4xbf16>
    %92 = vector.shape_cast %91 : vector<1x1x4x4xbf16> to vector<4x4xbf16>
    %cst_106 = arith.constant dense<0.000000e+00> : vector<4x256xf32>
    %93 = tpu.matmul %92, %90, %cst_106 {dimension_numbers = #tpu.dot_dimension_numbers<[1], [1], [0], [0], [0, 0, 1, 0], [], []>} : vector<4x4xbf16>, vector<256x4xbf16>, vector<4x256xf32> -> vector<4x256xf32>
    %94 = arith.addf %86, %93 : vector<4x256xf32>
    %c1_107 = arith.constant 1 : index
    %c0_108 = arith.constant 0 : index
    %c0_109 = arith.constant 0 : index
    %c0_110 = arith.constant 0 : index
    %c0_111 = arith.constant 0 : index
    %95 = vector.load %arg2[%c1_107, %c0_108, %c0_109, %c0_110, %c0_111] : memref<2x1x18x18x4xbf16, #tpu.memory_space<vmem>>, vector<1x1x16x18x4xbf16>
    %96 = vector.shape_cast %95 : vector<1x1x16x18x4xbf16> to vector<16x18x4xbf16>
    %97 = vector.extract_strided_slice %96 {offsets = [0, 2, 0], sizes = [16, 16, 4], strides = [1, 1, 1]} : vector<16x18x4xbf16> to vector<16x16x4xbf16>
    %98 = vector.shape_cast %97 : vector<16x16x4xbf16> to vector<256x4xbf16>
    %c0_112 = arith.constant 0 : index
    %c2_113 = arith.constant 2 : index
    %c0_114 = arith.constant 0 : index
    %c0_115 = arith.constant 0 : index
    %99 = vector.load %arg3[%c0_112, %c2_113, %c0_114, %c0_115] : memref<1x9x4x4xbf16, #tpu.memory_space<vmem>>, vector<1x1x4x4xbf16>
    %100 = vector.shape_cast %99 : vector<1x1x4x4xbf16> to vector<4x4xbf16>
    %cst_116 = arith.constant dense<0.000000e+00> : vector<4x256xf32>
    %101 = tpu.matmul %100, %98, %cst_116 {dimension_numbers = #tpu.dot_dimension_numbers<[1], [1], [0], [0], [0, 0, 1, 0], [], []>} : vector<4x4xbf16>, vector<256x4xbf16>, vector<4x256xf32> -> vector<4x256xf32>
    %102 = arith.addf %94, %101 : vector<4x256xf32>
    %c1_117 = arith.constant 1 : index
    %c0_118 = arith.constant 0 : index
    %c1_119 = arith.constant 1 : index
    %c0_120 = arith.constant 0 : index
    %c0_121 = arith.constant 0 : index
    %103 = vector.load %arg2[%c1_117, %c0_118, %c1_119, %c0_120, %c0_121] : memref<2x1x18x18x4xbf16, #tpu.memory_space<vmem>>, vector<1x1x16x18x4xbf16>
    %104 = vector.shape_cast %103 : vector<1x1x16x18x4xbf16> to vector<16x18x4xbf16>
    %105 = vector.extract_strided_slice %104 {offsets = [0, 0, 0], sizes = [16, 16, 4], strides = [1, 1, 1]} : vector<16x18x4xbf16> to vector<16x16x4xbf16>
    %106 = vector.shape_cast %105 : vector<16x16x4xbf16> to vector<256x4xbf16>
    %c0_122 = arith.constant 0 : index
    %c3_123 = arith.constant 3 : index
    %c0_124 = arith.constant 0 : index
    %c0_125 = arith.constant 0 : index
    %107 = vector.load %arg3[%c0_122, %c3_123, %c0_124, %c0_125] : memref<1x9x4x4xbf16, #tpu.memory_space<vmem>>, vector<1x1x4x4xbf16>
    %108 = vector.shape_cast %107 : vector<1x1x4x4xbf16> to vector<4x4xbf16>
    %cst_126 = arith.constant dense<0.000000e+00> : vector<4x256xf32>
    %109 = tpu.matmul %108, %106, %cst_126 {dimension_numbers = #tpu.dot_dimension_numbers<[1], [1], [0], [0], [0, 0, 1, 0], [], []>} : vector<4x4xbf16>, vector<256x4xbf16>, vector<4x256xf32> -> vector<4x256xf32>
    %110 = arith.addf %102, %109 : vector<4x256xf32>
    %c1_127 = arith.constant 1 : index
    %c0_128 = arith.constant 0 : index
    %c1_129 = arith.constant 1 : index
    %c0_130 = arith.constant 0 : index
    %c0_131 = arith.constant 0 : index
    %111 = vector.load %arg2[%c1_127, %c0_128, %c1_129, %c0_130, %c0_131] : memref<2x1x18x18x4xbf16, #tpu.memory_space<vmem>>, vector<1x1x16x18x4xbf16>
    %112 = vector.shape_cast %111 : vector<1x1x16x18x4xbf16> to vector<16x18x4xbf16>
    %113 = vector.extract_strided_slice %112 {offsets = [0, 1, 0], sizes = [16, 16, 4], strides = [1, 1, 1]} : vector<16x18x4xbf16> to vector<16x16x4xbf16>
    %114 = vector.shape_cast %113 : vector<16x16x4xbf16> to vector<256x4xbf16>
    %c0_132 = arith.constant 0 : index
    %c4_133 = arith.constant 4 : index
    %c0_134 = arith.constant 0 : index
    %c0_135 = arith.constant 0 : index
    %115 = vector.load %arg3[%c0_132, %c4_133, %c0_134, %c0_135] : memref<1x9x4x4xbf16, #tpu.memory_space<vmem>>, vector<1x1x4x4xbf16>
    %116 = vector.shape_cast %115 : vector<1x1x4x4xbf16> to vector<4x4xbf16>
    %cst_136 = arith.constant dense<0.000000e+00> : vector<4x256xf32>
    %117 = tpu.matmul %116, %114, %cst_136 {dimension_numbers = #tpu.dot_dimension_numbers<[1], [1], [0], [0], [0, 0, 1, 0], [], []>} : vector<4x4xbf16>, vector<256x4xbf16>, vector<4x256xf32> -> vector<4x256xf32>
    %118 = arith.addf %110, %117 : vector<4x256xf32>
    %c1_137 = arith.constant 1 : index
    %c0_138 = arith.constant 0 : index
    %c1_139 = arith.constant 1 : index
    %c0_140 = arith.constant 0 : index
    %c0_141 = arith.constant 0 : index
    %119 = vector.load %arg2[%c1_137, %c0_138, %c1_139, %c0_140, %c0_141] : memref<2x1x18x18x4xbf16, #tpu.memory_space<vmem>>, vector<1x1x16x18x4xbf16>
    %120 = vector.shape_cast %119 : vector<1x1x16x18x4xbf16> to vector<16x18x4xbf16>
    %121 = vector.extract_strided_slice %120 {offsets = [0, 2, 0], sizes = [16, 16, 4], strides = [1, 1, 1]} : vector<16x18x4xbf16> to vector<16x16x4xbf16>
    %122 = vector.shape_cast %121 : vector<16x16x4xbf16> to vector<256x4xbf16>
    %c0_142 = arith.constant 0 : index
    %c5_143 = arith.constant 5 : index
    %c0_144 = arith.constant 0 : index
    %c0_145 = arith.constant 0 : index
    %123 = vector.load %arg3[%c0_142, %c5_143, %c0_144, %c0_145] : memref<1x9x4x4xbf16, #tpu.memory_space<vmem>>, vector<1x1x4x4xbf16>
    %124 = vector.shape_cast %123 : vector<1x1x4x4xbf16> to vector<4x4xbf16>
    %cst_146 = arith.constant dense<0.000000e+00> : vector<4x256xf32>
    %125 = tpu.matmul %124, %122, %cst_146 {dimension_numbers = #tpu.dot_dimension_numbers<[1], [1], [0], [0], [0, 0, 1, 0], [], []>} : vector<4x4xbf16>, vector<256x4xbf16>, vector<4x256xf32> -> vector<4x256xf32>
    %126 = arith.addf %118, %125 : vector<4x256xf32>
    %c1_147 = arith.constant 1 : index
    %c0_148 = arith.constant 0 : index
    %c2_149 = arith.constant 2 : index
    %c0_150 = arith.constant 0 : index
    %c0_151 = arith.constant 0 : index
    %127 = vector.load %arg2[%c1_147, %c0_148, %c2_149, %c0_150, %c0_151] : memref<2x1x18x18x4xbf16, #tpu.memory_space<vmem>>, vector<1x1x16x18x4xbf16>
    %128 = vector.shape_cast %127 : vector<1x1x16x18x4xbf16> to vector<16x18x4xbf16>
    %129 = vector.extract_strided_slice %128 {offsets = [0, 0, 0], sizes = [16, 16, 4], strides = [1, 1, 1]} : vector<16x18x4xbf16> to vector<16x16x4xbf16>
    %130 = vector.shape_cast %129 : vector<16x16x4xbf16> to vector<256x4xbf16>
    %c0_152 = arith.constant 0 : index
    %c6_153 = arith.constant 6 : index
    %c0_154 = arith.constant 0 : index
    %c0_155 = arith.constant 0 : index
    %131 = vector.load %arg3[%c0_152, %c6_153, %c0_154, %c0_155] : memref<1x9x4x4xbf16, #tpu.memory_space<vmem>>, vector<1x1x4x4xbf16>
    %132 = vector.shape_cast %131 : vector<1x1x4x4xbf16> to vector<4x4xbf16>
    %cst_156 = arith.constant dense<0.000000e+00> : vector<4x256xf32>
    %133 = tpu.matmul %132, %130, %cst_156 {dimension_numbers = #tpu.dot_dimension_numbers<[1], [1], [0], [0], [0, 0, 1, 0], [], []>} : vector<4x4xbf16>, vector<256x4xbf16>, vector<4x256xf32> -> vector<4x256xf32>
    %134 = arith.addf %126, %133 : vector<4x256xf32>
    %c1_157 = arith.constant 1 : index
    %c0_158 = arith.constant 0 : index
    %c2_159 = arith.constant 2 : index
    %c0_160 = arith.constant 0 : index
    %c0_161 = arith.constant 0 : index
    %135 = vector.load %arg2[%c1_157, %c0_158, %c2_159, %c0_160, %c0_161] : memref<2x1x18x18x4xbf16, #tpu.memory_space<vmem>>, vector<1x1x16x18x4xbf16>
    %136 = vector.shape_cast %135 : vector<1x1x16x18x4xbf16> to vector<16x18x4xbf16>
    %137 = vector.extract_strided_slice %136 {offsets = [0, 1, 0], sizes = [16, 16, 4], strides = [1, 1, 1]} : vector<16x18x4xbf16> to vector<16x16x4xbf16>
    %138 = vector.shape_cast %137 : vector<16x16x4xbf16> to vector<256x4xbf16>
    %c0_162 = arith.constant 0 : index
    %c7_163 = arith.constant 7 : index
    %c0_164 = arith.constant 0 : index
    %c0_165 = arith.constant 0 : index
    %139 = vector.load %arg3[%c0_162, %c7_163, %c0_164, %c0_165] : memref<1x9x4x4xbf16, #tpu.memory_space<vmem>>, vector<1x1x4x4xbf16>
    %140 = vector.shape_cast %139 : vector<1x1x4x4xbf16> to vector<4x4xbf16>
    %cst_166 = arith.constant dense<0.000000e+00> : vector<4x256xf32>
    %141 = tpu.matmul %140, %138, %cst_166 {dimension_numbers = #tpu.dot_dimension_numbers<[1], [1], [0], [0], [0, 0, 1, 0], [], []>} : vector<4x4xbf16>, vector<256x4xbf16>, vector<4x256xf32> -> vector<4x256xf32>
    %142 = arith.addf %134, %141 : vector<4x256xf32>
    %c1_167 = arith.constant 1 : index
    %c0_168 = arith.constant 0 : index
    %c2_169 = arith.constant 2 : index
    %c0_170 = arith.constant 0 : index
    %c0_171 = arith.constant 0 : index
    %143 = vector.load %arg2[%c1_167, %c0_168, %c2_169, %c0_170, %c0_171] : memref<2x1x18x18x4xbf16, #tpu.memory_space<vmem>>, vector<1x1x16x18x4xbf16>
    %144 = vector.shape_cast %143 : vector<1x1x16x18x4xbf16> to vector<16x18x4xbf16>
    %145 = vector.extract_strided_slice %144 {offsets = [0, 2, 0], sizes = [16, 16, 4], strides = [1, 1, 1]} : vector<16x18x4xbf16> to vector<16x16x4xbf16>
    %146 = vector.shape_cast %145 : vector<16x16x4xbf16> to vector<256x4xbf16>
    %c0_172 = arith.constant 0 : index
    %c8_173 = arith.constant 8 : index
    %c0_174 = arith.constant 0 : index
    %c0_175 = arith.constant 0 : index
    %147 = vector.load %arg3[%c0_172, %c8_173, %c0_174, %c0_175] : memref<1x9x4x4xbf16, #tpu.memory_space<vmem>>, vector<1x1x4x4xbf16>
    %148 = vector.shape_cast %147 : vector<1x1x4x4xbf16> to vector<4x4xbf16>
    %cst_176 = arith.constant dense<0.000000e+00> : vector<4x256xf32>
    %149 = tpu.matmul %148, %146, %cst_176 {dimension_numbers = #tpu.dot_dimension_numbers<[1], [1], [0], [0], [0, 0, 1, 0], [], []>} : vector<4x4xbf16>, vector<256x4xbf16>, vector<4x256xf32> -> vector<4x256xf32>
    %150 = arith.addf %142, %149 : vector<4x256xf32>
    %c1_177 = arith.constant 1 : index
    %c0_178 = arith.constant 0 : index
    %c0_179 = arith.constant 0 : index
    %c0_180 = arith.constant 0 : index
    %151 = vector.load %arg5[%c1_177, %c0_178, %c0_179, %c0_180] : memref<2x1x4x256xf32, #tpu.memory_space<vmem>>, vector<1x1x4x256xf32>
    %152 = vector.shape_cast %151 : vector<1x1x4x256xf32> to vector<4x256xf32>
    %153 = vector.shape_cast %150 : vector<4x256xf32> to vector<1x1x4x256xf32>
    tpu.vector_store %arg5[%c1_177, %c0_178, %c0_179, %c0_180], %153 {strides = array<i32>} : memref<2x1x4x256xf32, #tpu.memory_space<vmem>>, vector<1x1x4x256xf32>,
    return
  }
  func.func @transform_0(%arg0: i32, %arg1: i32) -> (i32, i32, i32, i32, i32) {
    %c0_i32 = arith.constant 0 : i32
    %c0_i32_0 = arith.constant 0 : i32
    %c0_i32_1 = arith.constant 0 : i32
    %c0_i32_2 = arith.constant 0 : i32
    return %arg1, %arg0, %c0_i32, %c0_i32_0, %c0_i32_1 : i32, i32, i32, i32, i32
  }
  func.func @transform_1(%arg0: i32, %arg1: i32) -> (i32, i32, i32, i32) {
    %c0_i32 = arith.constant 0 : i32
    %c0_i32_0 = arith.constant 0 : i32
    %c0_i32_1 = arith.constant 0 : i32
    %c0_i32_2 = arith.constant 0 : i32
    return %arg0, %c0_i32, %c0_i32_0, %c0_i32_1 : i32, i32, i32, i32
  }
  func.func @transform_2(%arg0: i32, %arg1: i32) -> (i32, i32, i32) {
    %c0_i32 = arith.constant 0 : i32
    %c0_i32_0 = arith.constant 0 : i32
    %c0_i32_1 = arith.constant 0 : i32
    return %arg0, %c0_i32, %c0_i32_0 : i32, i32, i32
  }
  func.func @transform_3(%arg0: i32, %arg1: i32) -> (i32, i32, i32, i32) {
    %c0_i32 = arith.constant 0 : i32
    %c0_i32_0 = arith.constant 0 : i32
    %c0_i32_1 = arith.constant 0 : i32
    return %arg1, %arg0, %c0_i32, %c0_i32_0 : i32, i32, i32, i32
  }
}

</mosaic_0001>

<bundles_post_ra>
// kernel: tpu_custom_call.1
= control target key start
LH: loop header
LB: loop body
LE: loop exit
PB: predicated region body
PF: predicated region fallthrough
CT: control target
= control target key end

     0   :  { %vm150_vm0 = vcmask 31744   ;;  %vm230_vm1 = vsmask.f32 3328  ;;  %vm231_vm2 = vsmask.f32 7440  ;;  %s10740_s0 = inlined_call_operand.vmem [shape: bf16[2,1,18,18,4], index: 0, kind: input, shape index: {}]   ;;  %s10741_s1 = inlined_call_operand.vmem [shape: bf16[1,9,4,4], index: 1, kind: input, shape index: {}]   ;;  %s10742_s2 = inlined_call_operand.vmem [shape: f32[1,4,1], index: 2, kind: input, shape index: {}]   ;;  %s10743_s3 = inlined_call_operand.hbm [shape: f32[2,1,4,256], index: 3, kind: output, shape index: {}]  }
   0x1   :  { %v6708_v0 = vld [vmem:[%s10740_s0 + $0x54] sm:$0xff]  ;;  %v6707_v2 = vld [vmem:[%s10740_s0 + $0x48] sm:$0xff]  ;;  %v6880_v9 = vld [vmem:[%s10740_s0 + $0x5c] sm:$0x1] }
   0x2   :  { %v6716_v1 = vld [vmem:[%s10740_s0 + $0xb4] sm:$0xff]  ;;  %v6715_v3 = vld [vmem:[%s10740_s0 + $0xa8] sm:$0xff]  ;;  %v176_v6 = vsel %vm150_vm0, %v6708_v0, 0  ;;  %v173_v8 = vsel %vm150_vm0, %v6707_v2, 0  ;;  %v421_v16 = vshll.u32 %v6880_v9, 16  ;;  %v6706_v18 = vld [vmem:[%s10740_s0 + $0x3c] sm:$0xff] }
   0x3   :  { %v6867_v4 = vld [vmem:[%s10740_s0 + $0x54] sm:$0xf]  ;;  %v6872_v5 = vld [vmem:[%s10740_s0 + $0x58] sm:$0xf]  ;;  %v200_v7 = vsel %vm150_vm0, %v6716_v1, 0  ;;  %202 = vmatpush.bf16.xpose.msra.mxu0 %v176_v6  ;;  %v197_v11 = vsel %vm150_vm0, %v6715_v3, 0  ;;  %vm6921_vm3 = vmor %vm230_vm1, %vm231_vm2 }
   0x4   :  { %v402_v10 = vshrl.u32 %v6867_v4, 16  ;;  %215 = vmatpush.bf16.xpose.msra.mxu1 %v200_v7  ;;  %v405_v12 = vshll.u32 %v6867_v4, 16  ;;  %v411_v13 = vshll.u32 %v6872_v5, 16  ;;  %v415_v15 = vshrl.u32 %v6872_v5, 16  ;;  %v6891_v17 = vld [vmem:[%s10740_s0 + $0xb4] sm:$0xf] }
   0x5   :  { %v6899_v21 = vld [vmem:[%s10740_s0 + $0xb8] sm:$0xf]  ;;  %v6904_v22 = vld [vmem:[%s10740_s0 + $0xbc] sm:$0x1]  ;;  %v423_v24 = vrot.slane %v421_v16, 5  ;;  %v594_v25 = vshrl.u32 %v6891_v17, 16 }
   0x6   :  { %v404_v14 = vrot.slane %v402_v10, 4  ;;  %v407_v19 = vrot.slane %v405_v12, 5  ;;  %v413_v20 = vrot.slane %v411_v13, 5  ;;  %v417_v23 = vrot.slane %v415_v15, 4  ;;  %v6714_v27 = vld [vmem:[%s10740_s0 + $0x9c] sm:$0xff]  ;;  %v6705_v10 = vld [vmem:[%s10740_s0 + $0x30] sm:$0xff] }
   0x7   :  { %v597_v26 = vshll.u32 %v6891_v17, 16  ;;  %v603_v29 = vshll.u32 %v6899_v21, 16  ;;  %v607_v30 = vshrl.u32 %v6899_v21, 16  ;;  %v613_v31 = vshll.u32 %v6904_v22, 16  ;;  %v6917_v32 = vld [vmem:[%s10740_s0 + $0x48] sm:$0xf] }
   0x8   :  { %v408_v28 = vor.u32 %v407_v19, %v404_v14  ;;  %v418_v34 = vor.u32 %v417_v23, %v413_v20  ;;  %v596_v35 = vrot.slane %v594_v25, 4  ;;  %v170_v37 = vsel %vm150_vm0, %v6706_v18, 0  ;;  %v6929_v38 = vld [vmem:[%s10740_s0 + $0x4c] sm:$0xf]  ;;  %v6938_v49 = vld [vmem:[%s10740_s0 + $0x50] sm:$0x1] }
   0x9   :  { %v599_v36 = vrot.slane %v597_v26, 5  ;;  %v605_v40 = vrot.slane %v603_v29, 5  ;;  %v609_v41 = vrot.slane %v607_v30, 4  ;;  %v615_v42 = vrot.slane %v613_v31, 5  ;;  %v6945_v52 = vld [vmem:[%s10740_s0 + $0xa8] sm:$0xf] }
   0xa   :  { %v409_v39 = vrot.slane %v408_v28, 4  ;;  %v419_v43 = vrot.slane %v418_v34, 4  ;;  %v194_v45 = vsel %vm150_vm0, %v6714_v27, 0  ;;  %v378_v46 = vshrl.u32 %v6917_v32, 16  ;;  %v6956_v0 = vld [vmem:[%s10740_s0 + $0xac] sm:$0xf] }
   0xb   :  { %v600_v44 = vor.u32 %v599_v36, %v596_v35  ;;  %203 = vmatpush.bf16.xpose.msra.mxu0 %v173_v8  ;;  %v610_v48 = vor.u32 %v609_v41, %v605_v40  ;;  %v381_v50 = vshll.u32 %v6917_v32, 16  ;;  %v387_v51 = vshll.u32 %v6929_v38, 16  ;;  %v6964_v8 = vld [vmem:[%s10740_s0 + $0xb0] sm:$0x1]  ;;  %v6980_v27 = vld [vmem:[%s10740_s0 + $0x3c] sm:$0xf] }
   0xc   :  { %216 = vmatpush.bf16.xpose.msra.mxu1 %v197_v11  ;;  %v414_v47 = vsel %vm6921_vm3, %v409_v39, %v413_v20  ;;  %v424_v53 = vsel %vm6921_vm3, %v419_v43, %v423_v24  ;;  %v380_v56 = vrot.slane %v378_v46, 4  ;;  %v391_v62 = vshrl.u32 %v6929_v38, 16  ;;  %v6713_v20 = vld [vmem:[%s10740_s0 + $0x90] sm:$0xff]  ;;  %v6988_v34 = vld [vmem:[%s10740_s0 + $0x40] sm:$0xf] }
   0xd   :  { %v633_v54 = vunpack.c.l.b16 %v414_v47  ;;  %v601_v55 = vrot.slane %v600_v44, 4  ;;  %v634_v57 = vunpack.c.l.b16 %v424_v53  ;;  %v611_v58 = vrot.slane %v610_v48, 4  ;;  %v6995_v43 = vld [vmem:[%s10740_s0 + $0x44] sm:$0x1] }
   0xe   :  { %v383_v59 = vrot.slane %v381_v50, 5  ;;  %v389_v60 = vrot.slane %v387_v51, 5  ;;  %v397_v63 = vshll.u32 %v6938_v49, 16  ;;  %v570_v1 = vshrl.u32 %v6945_v52, 16  ;;  %v7005_v50 = vld [vmem:[%s10740_s0 + $0x9c] sm:$0xf] }
   0xf   :  { %v606_v61 = vsel %vm6921_vm3, %v601_v55, %v605_v40  ;;  %v658_v2 = vpack.c.b16 %v634_v57, %v633_v54  ;;  %v616_v3 = vsel %vm6921_vm3, %v611_v58, %v615_v42  ;;  %v393_v12 = vrot.slane %v391_v62, 4 }
  0x10   :  { %v649_v6 = vunpack.c.l.b16 %v606_v61  ;;  %v384_v7 = vor.u32 %v383_v59, %v380_v56  ;;  %v650_v11 = vunpack.c.l.b16 %v616_v3  ;;  %v399_v13 = vrot.slane %v397_v63, 5  ;;  %v7014_v63 = vld [vmem:[%s10740_s0 + $0xa0] sm:$0xf] }
  0x11   :  { %v572_v14 = vrot.slane %v570_v1, 4  ;;  %v692_v15 = vsel %vm150_vm0, %v658_v2, 0  ;;  %v573_v18 = vshll.u32 %v6945_v52, 16  ;;  %v579_v19 = vshll.u32 %v6956_v0, 16  ;;  %v6704_v2 = vld [vmem:[%s10740_s0 + $0x24] sm:$0xff] }
  0x12   :  { %v385_v16 = vrot.slane %v384_v7, 4  ;;  %718 = vmatpush.bf16.xpose.msra.mxu2 %v692_v15  ;;  %v666_v23 = vpack.c.b16 %v650_v11, %v649_v6  ;;  %v394_v24 = vor.u32 %v393_v12, %v389_v60  ;;  %v583_v25 = vshrl.u32 %v6956_v0, 16  ;;  %v7025_v11 = vld [vmem:[%s10740_s0 + $0xa4] sm:$0x1] }
  0x13   :  { %v589_v26 = vshll.u32 %v6964_v8, 16  ;;  %204 = vmatpush.bf16.xpose.msra.mxu0 %v170_v37  ;;  %v575_v29 = vrot.slane %v573_v18, 5  ;;  %v581_v30 = vrot.slane %v579_v19, 5  ;;  %v167_v31 = vsel %vm150_vm0, %v6705_v10, 0 }
  0x14   :  { %217 = vmatpush.bf16.xpose.msra.mxu1 %v194_v45  ;;  %v390_v28 = vsel %vm6921_vm3, %v385_v16, %v389_v60  ;;  %v716_v35 = vsel %vm150_vm0, %v666_v23, 0  ;;  %v395_v36 = vrot.slane %v394_v24, 4  ;;  %v585_v40 = vrot.slane %v583_v25, 4 }
  0x15   :  { %v631_v39 = vunpack.c.l.b16 %v390_v28  ;;  %731 = vmatpush.bf16.xpose.msra.mxu3 %v716_v35  ;;  %v576_v37 = vor.u32 %v575_v29, %v572_v14  ;;  %v591_v41 = vrot.slane %v589_v26, 5  ;;  %v191_v42 = vsel %vm150_vm0, %v6713_v20, 0 }
  0x16   :  { %v354_v44 = vshrl.u32 %v6980_v27, 16  ;;  %v400_v45 = vsel %vm6921_vm3, %v395_v36, %v399_v13  ;;  %v586_v46 = vor.u32 %v585_v40, %v581_v30  ;;  %v357_v47 = vshll.u32 %v6980_v27, 16 }
  0x17   :  { %v363_v48 = vshll.u32 %v6988_v34, 16  ;;  %v632_v51 = vunpack.c.l.b16 %v400_v45  ;;  %v577_v53 = vrot.slane %v576_v37, 4  ;;  %v367_v55 = vshrl.u32 %v6988_v34, 16 }
  0x18   :  { %v356_v54 = vrot.slane %v354_v44, 4  ;;  %v587_v56 = vrot.slane %v586_v46, 4  ;;  %v359_v57 = vrot.slane %v357_v47, 5  ;;  %v373_v59 = vshll.u32 %v6995_v43, 16 }
  0x19   :  { %v365_v58 = vrot.slane %v363_v48, 5  ;;  %v657_v60 = vpack.c.b16 %v632_v51, %v631_v39  ;;  %v582_v61 = vsel %vm6921_vm3, %v577_v53, %v581_v30  ;;  %v369_v62 = vrot.slane %v367_v55, 4 }
  0x1a   :  { %v546_v1 = vshrl.u32 %v7005_v50, 16  ;;  %v592_v3 = vsel %vm6921_vm3, %v587_v56, %v591_v41  ;;  %v647_v6 = vunpack.c.l.b16 %v582_v61  ;;  %v360_v7 = vor.u32 %v359_v57, %v356_v54 }
  0x1b   :  { %v375_v10 = vrot.slane %v373_v59, 5  ;;  %v689_v12 = vsel %vm150_vm0, %v657_v60, 0  ;;  %v648_v13 = vunpack.c.l.b16 %v592_v3  ;;  %205 = vmatpush.bf16.xpose.msra.mxu0 %v167_v31  ;;  %v370_v14 = vor.u32 %v369_v62, %v365_v58 }
  0x1c   :  { %218 = vmatpush.bf16.xpose.msra.mxu1 %v191_v42  ;;  %v548_v15 = vrot.slane %v546_v1, 4 }
  0x1d   :  { %8 = vsyncpa [#allocation3], 0  ;;  %719 = vmatpush.bf16.xpose.msra.mxu2 %v689_v12  ;;  %v361_v16 = vrot.slane %v360_v7, 4  ;;  %v549_v18 = vshll.u32 %v7005_v50, 16  ;;  %v555_v19 = vshll.u32 %v7014_v63, 16  ;;  %v559_v20 = vshrl.u32 %v7014_v63, 16 }
  0x1e   :  { %v6712_v23 = vld [vmem:[%s10740_s0 + $0x84] sm:$0xff]  ;;  %v665_v24 = vpack.c.b16 %v648_v13, %v647_v6  ;;  %v371_v25 = vrot.slane %v370_v14, 4  ;;  %v565_v26 = vshll.u32 %v7025_v11, 16  ;;  %v164_v28 = vsel %vm150_vm0, %v6704_v2, 0  ;;  %v7039_v29 = vld [vmem:[%s10740_s0 + $0x30] sm:$0xf] }
  0x1f   :  { %v366_v30 = vsel %vm6921_vm3, %v361_v16, %v365_v58  ;;  %v551_v31 = vrot.slane %v549_v18, 5  ;;  %v557_v35 = vrot.slane %v555_v19, 5  ;;  %v561_v36 = vrot.slane %v559_v20, 4  ;;  %v7046_v39 = vld [vmem:[%s10740_s0 + $0x34] sm:$0xf]  ;;  %s6830_s16 = smov 128  }
  0x20   :  { %v713_v40 = vsel %vm150_vm0, %v665_v24, 0  ;;  %v376_v37 = vsel %vm6921_vm3, %v371_v25, %v375_v10  ;;  %v629_v41 = vunpack.c.l.b16 %v366_v30  ;;  %v567_v42 = vrot.slane %v565_v26, 5  ;;  %v7054_v44 = vld [vmem:[%s10740_s0 + $0x38] sm:$0x1]  ;;  %v7065_v60 = vld [vmem:[%s10740_s0 + $0x90] sm:$0xf] }
  0x21   :  { %732 = vmatpush.bf16.xpose.msra.mxu3 %v713_v40  ;;  %v630_v45 = vunpack.c.l.b16 %v376_v37  ;;  %v552_v46 = vor.u32 %v551_v31, %v548_v15  ;;  %v562_v47 = vor.u32 %v561_v36, %v557_v35  ;;  %v188_v48 = vsel %vm150_vm0, %v6712_v23, 0  ;;  %v7070_v3 = vld [vmem:[%s10740_s0 + $0x94] sm:$0xf]  ;;  %v7080_v13 = vld [vmem:[%s10740_s0 + $0x98] sm:$0x1]  ;;  %s6831_s17 = smov 8  }
  0x22   :  { %v330_v51 = vshrl.u32 %v7039_v29, 16  ;;  %v333_v53 = vshll.u32 %v7039_v29, 16  ;;  %v339_v54 = vshll.u32 %v7046_v39, 16  ;;  %v343_v55 = vshrl.u32 %v7046_v39, 16  ;;  %v6703_v31 = vld [vmem:[%s10740_s0 + $0x18] sm:$0xff] }
  0x23   :  { %v656_v56 = vpack.c.b16 %v630_v45, %v629_v41  ;;  %v553_v57 = vrot.slane %v552_v46, 4  ;;  %v563_v58 = vrot.slane %v562_v47, 4  ;;  %v349_v59 = vshll.u32 %v7054_v44, 16  ;;  %206 = vmatpush.bf16.xpose.msra.mxu0 %v164_v28 }
  0x24   :  { %219 = vmatpush.bf16.xpose.msra.mxu1 %v188_v48  ;;  %v332_v61 = vrot.slane %v330_v51, 4  ;;  %v335_v62 = vrot.slane %v333_v53, 5  ;;  %v341_v1 = vrot.slane %v339_v54, 5  ;;  %v345_v2 = vrot.slane %v343_v55, 4  ;;  %v7106_v51 = vld [vmem:[%s10740_s0 + $0x28] sm:$0xf] }
  0x25   :  { %v686_v6 = vsel %vm150_vm0, %v656_v56, 0  ;;  %v558_v7 = vsel %vm6921_vm3, %v553_v57, %v557_v35  ;;  %v568_v10 = vsel %vm6921_vm3, %v563_v58, %v567_v42  ;;  %v351_v12 = vrot.slane %v349_v59, 5  ;;  %v6711_v35 = vld [vmem:[%s10740_s0 + $0x78] sm:$0xff]  ;;  %v7096_v42 = vld [vmem:[%s10740_s0 + $0x24] sm:$0xf] }
  0x26   :  { %720 = vmatpush.bf16.xpose.msra.mxu2 %v686_v6  ;;  %v645_v14 = vunpack.c.l.b16 %v558_v7  ;;  %v646_v15 = vunpack.c.l.b16 %v568_v10  ;;  %v336_v16 = vor.u32 %v335_v62, %v332_v61  ;;  %v346_v18 = vor.u32 %v345_v2, %v341_v1  ;;  %v7111_v57 = vld [vmem:[%s10740_s0 + $0x2c] sm:$0x1]  ;;  %v7121_v10 = vld [vmem:[%s10740_s0 + $0x84] sm:$0xf] }
  0x27   :  { %v522_v19 = vshrl.u32 %v7065_v60, 16  ;;  %v525_v20 = vshll.u32 %v7065_v60, 16  ;;  %v531_v23 = vshll.u32 %v7070_v3, 16  ;;  %v535_v24 = vshrl.u32 %v7070_v3, 16 }
  0x28   :  { %v664_v25 = vpack.c.b16 %v646_v15, %v645_v14  ;;  %v337_v26 = vrot.slane %v336_v16, 4  ;;  %v347_v28 = vrot.slane %v346_v18, 4  ;;  %v541_v30 = vshll.u32 %v7080_v13, 16  ;;  %v7128_v18 = vld [vmem:[%s10740_s0 + $0x88] sm:$0xf] }
  0x29   :  { %v524_v36 = vrot.slane %v522_v19, 4  ;;  %v527_v40 = vrot.slane %v525_v20, 5  ;;  %v533_v37 = vrot.slane %v531_v23, 5  ;;  %v537_v41 = vrot.slane %v535_v24, 4 }
  0x2a   :  { %v710_v45 = vsel %vm150_vm0, %v664_v25, 0  ;;  %v342_v46 = vsel %vm6921_vm3, %v337_v26, %v341_v1  ;;  %v352_v47 = vsel %vm6921_vm3, %v347_v28, %v351_v12  ;;  %v543_v48 = vrot.slane %v541_v30, 5 }
  0x2b   :  { %733 = vmatpush.bf16.xpose.msra.mxu3 %v710_v45  ;;  %v627_v53 = vunpack.c.l.b16 %v342_v46  ;;  %v628_v54 = vunpack.c.l.b16 %v352_v47  ;;  %v528_v55 = vor.u32 %v527_v40, %v524_v36  ;;  %v538_v56 = vor.u32 %v537_v41, %v533_v37  ;;  %v6702_v41 = vld [vmem:[%s10740_s0 + $0xc] sm:$0xff] }
  0x2c   :  { %v161_v58 = vsel %vm150_vm0, %v6703_v31, 0  ;;  %v185_v59 = vsel %vm150_vm0, %v6711_v35, 0  ;;  %v306_v61 = vshrl.u32 %v7096_v42, 16  ;;  %v309_v62 = vshll.u32 %v7096_v42, 16  ;;  %v7138_v31 = vld [vmem:[%s10740_s0 + $0x8c] sm:$0x1] }
  0x2d   :  { %v655_v1 = vpack.c.b16 %v628_v54, %v627_v53  ;;  %v529_v2 = vrot.slane %v528_v55, 4  ;;  %v539_v6 = vrot.slane %v538_v56, 4  ;;  %207 = vmatpush.bf16.xpose.msra.mxu0 %v161_v58  ;;  %220 = vmatpush.bf16.xpose.msra.mxu1 %v185_v59  ;;  %v315_v7 = vshll.u32 %v7106_v51, 16  ;;  %v6710_v53 = vld [vmem:[%s10740_s0 + $0x6c] sm:$0xff]  ;;  %v7154_v59 = vld [vmem:[%s10740_s0 + $0x18] sm:$0xf] }
  0x2e   :  { %v308_v12 = vrot.slane %v306_v61, 4  ;;  %v311_v14 = vrot.slane %v309_v62, 5  ;;  %v319_v15 = vshrl.u32 %v7106_v51, 16  ;;  %v325_v16 = vshll.u32 %v7111_v57, 16 }
  0x2f   :  { %v683_v19 = vsel %vm150_vm0, %v655_v1, 0  ;;  %v534_v20 = vsel %vm6921_vm3, %v529_v2, %v533_v37  ;;  %v544_v23 = vsel %vm6921_vm3, %v539_v6, %v543_v48  ;;  %v317_v24 = vrot.slane %v315_v7, 5  ;;  %v7162_v6 = vld [vmem:[%s10740_s0 + $0x1c] sm:$0xf] }
  0x30   :  { %721 = vmatpush.bf16.xpose.msra.mxu2 %v683_v19  ;;  %v643_v25 = vunpack.c.l.b16 %v534_v20  ;;  %v644_v26 = vunpack.c.l.b16 %v544_v23  ;;  %v312_v28 = vor.u32 %v311_v14, %v308_v12  ;;  %v321_v30 = vrot.slane %v319_v15, 4 }
  0x31   :  { %v327_v35 = vrot.slane %v325_v16, 5  ;;  %v498_v36 = vshrl.u32 %v7121_v10, 16  ;;  %v501_v40 = vshll.u32 %v7121_v10, 16  ;;  %v507_v37 = vshll.u32 %v7128_v18, 16  ;;  %v7168_v16 = vld [vmem:[%s10740_s0 + $0x20] sm:$0x1] }
  0x32   :  { %v663_v45 = vpack.c.b16 %v644_v26, %v643_v25  ;;  %v313_v46 = vrot.slane %v312_v28, 4  ;;  %v322_v47 = vor.u32 %v321_v30, %v317_v24  ;;  %v511_v48 = vshrl.u32 %v7128_v18, 16 }
  0x33   :  { %v500_v54 = vrot.slane %v498_v36, 4  ;;  %v503_v55 = vrot.slane %v501_v40, 5  ;;  %v509_v56 = vrot.slane %v507_v37, 5  ;;  %v517_v58 = vshll.u32 %v7138_v31, 16 }
  0x34   :  { %v707_v61 = vsel %vm150_vm0, %v663_v45, 0  ;;  %v318_v62 = vsel %vm6921_vm3, %v313_v46, %v317_v24  ;;  %v323_v1 = vrot.slane %v322_v47, 4  ;;  %v513_v2 = vrot.slane %v511_v48, 4 }
  0x35   :  { %734 = vmatpush.bf16.xpose.msra.mxu3 %v707_v61  ;;  %v625_v7 = vunpack.c.l.b16 %v318_v62  ;;  %v504_v12 = vor.u32 %v503_v55, %v500_v54  ;;  %v519_v14 = vrot.slane %v517_v58, 5  ;;  %v158_v15 = vsel %vm150_vm0, %v6702_v41, 0  ;;  %v7195_v62 = vld [vmem:[%s10740_s0 + $0x80] sm:$0x1] }
  0x36   :  { %v328_v19 = vsel %vm6921_vm3, %v323_v1, %v327_v35  ;;  %v514_v20 = vor.u32 %v513_v2, %v509_v56  ;;  %208 = vmatpush.bf16.xpose.msra.mxu0 %v158_v15  ;;  %v182_v23 = vsel %vm150_vm0, %v6710_v53, 0  ;;  %v282_v24 = vshrl.u32 %v7154_v59, 16  ;;  %v7181_v35 = vld [vmem:[%s10740_s0 + $0x78] sm:$0xf]  ;;  %v7188_v53 = vld [vmem:[%s10740_s0 + $0x7c] sm:$0xf] }
  0x37   :  { %v626_v25 = vunpack.c.l.b16 %v328_v19  ;;  %v505_v26 = vrot.slane %v504_v12, 4  ;;  %221 = vmatpush.bf16.xpose.msra.mxu1 %v182_v23  ;;  %v285_v28 = vshll.u32 %v7154_v59, 16  ;;  %v291_v30 = vshll.u32 %v7162_v6, 16  ;;  %v6701_v12 = vld [vmem:[%s10740_s0] sm:$0xff] }
  0x38   :  { %v515_v36 = vrot.slane %v514_v20, 4  ;;  %v284_v40 = vrot.slane %v282_v24, 4  ;;  %v295_v37 = vshrl.u32 %v7162_v6, 16  ;;  %v301_v41 = vshll.u32 %v7168_v16, 16 }
  0x39   :  { %v654_v45 = vpack.c.b16 %v626_v25, %v625_v7  ;;  %v510_v46 = vsel %vm6921_vm3, %v505_v26, %v509_v56  ;;  %v287_v47 = vrot.slane %v285_v28, 5  ;;  %v293_v48 = vrot.slane %v291_v30, 5  ;;  %v6709_v28 = vld [vmem:[%s10740_s0 + $0x60] sm:$0xff] }
  0x3a   :  { %v520_v54 = vsel %vm6921_vm3, %v515_v36, %v519_v14  ;;  %v641_v55 = vunpack.c.l.b16 %v510_v46  ;;  %v297_v58 = vrot.slane %v295_v37, 4  ;;  %v303_v61 = vrot.slane %v301_v41, 5 }
  0x3b   :  { %v680_v56 = vsel %vm150_vm0, %v654_v45, 0  ;;  %v642_v1 = vunpack.c.l.b16 %v520_v54  ;;  %v288_v2 = vor.u32 %v287_v47, %v284_v40  ;;  %v474_v7 = vshrl.u32 %v7181_v35, 16 }
  0x3c   :  { %722 = vmatpush.bf16.xpose.msra.mxu2 %v680_v56  ;;  %v298_v14 = vor.u32 %v297_v58, %v293_v48  ;;  %v477_v15 = vshll.u32 %v7181_v35, 16  ;;  %v483_v19 = vshll.u32 %v7188_v53, 16  ;;  %v487_v20 = vshrl.u32 %v7188_v53, 16 }
  0x3d   :  { %v662_v23 = vpack.c.b16 %v642_v1, %v641_v55  ;;  %v289_v24 = vrot.slane %v288_v2, 4  ;;  %v476_v25 = vrot.slane %v474_v7, 4  ;;  %v493_v26 = vshll.u32 %v7195_v62, 16 }
  0x3e   :  { %v299_v30 = vrot.slane %v298_v14, 4  ;;  %v479_v36 = vrot.slane %v477_v15, 5  ;;  %v485_v40 = vrot.slane %v483_v19, 5  ;;  %v489_v37 = vrot.slane %v487_v20, 4 }
  0x3f   :  { %v704_v41 = vsel %vm150_vm0, %v662_v23, 0  ;;  %v294_v45 = vsel %vm6921_vm3, %v289_v24, %v293_v48  ;;  %v495_v46 = vrot.slane %v493_v26, 5  ;;  %v155_v47 = vsel %vm150_vm0, %v6701_v12, 0 }
  0x40   :  { %735 = vmatpush.bf16.xpose.msra.mxu3 %v704_v41  ;;  %v304_v54 = vsel %vm6921_vm3, %v299_v30, %v303_v61  ;;  %v623_v55 = vunpack.c.l.b16 %v294_v45  ;;  %v480_v58 = vor.u32 %v479_v36, %v476_v25  ;;  %v490_v56 = vor.u32 %v489_v37, %v485_v40  ;;  %209 = vmatpush.bf16.xpose.msra.mxu0 %v155_v47  ;;  %v7240_v30 = vld [vmem:[%s10740_s0 + $0x10] sm:$0xf] }
  0x41   :  { %v624_v1 = vunpack.c.l.b16 %v304_v54  ;;  %v179_v2 = vsel %vm150_vm0, %v6709_v28, 0  ;;  %vm762_vm4 = vcmask 1042432   ;;  %vm763_vm5 = vcmask 1046532   ;;  %v7250_v54 = vld [vmem:[%s10740_s0 + $0x14] sm:$0x1] }
  0x42   :  { %v481_v7 = vrot.slane %v480_v58, 4  ;;  %v491_v14 = vrot.slane %v490_v56, 4  ;;  %222 = vmatpush.bf16.xpose.msra.mxu1 %v179_v2  ;;  %vm7216_vm6 = vmor %vm762_vm4, %vm763_vm5  ;;  %v6005_v12 = vrot.slane %v6867_v4, 9  ;;  %v816_v61 = vrot.slane %v6872_v5, 5  ;;  %v7234_v4 = vld [vmem:[%s10740_s0 + $0xc] sm:$0xf] }
  0x43   :  { %v653_v15 = vpack.c.b16 %v624_v1, %v623_v55  ;;  %v819_v19 = vrot.slane %v6880_v9, 5  ;;  %v6013_v20 = vrot.slane %v6891_v17, 9  ;;  %v872_v23 = vrot.slane %v6899_v21, 5 }
  0x44   :  { %v486_v24 = vsel %vm6921_vm3, %v481_v7, %v485_v40  ;;  %v496_v25 = vsel %vm6921_vm3, %v491_v14, %v495_v46  ;;  %v817_v26 = vsel %vm7216_vm6, %v6005_v12, %v816_v61  ;;  %v818_v28 = vrot.slane %v816_v61, 4 }
  0x45   :  { %v677_v5 = vsel %vm150_vm0, %v653_v15, 0  ;;  %v639_v9 = vunpack.c.l.b16 %v486_v24  ;;  %v640_v17 = vunpack.c.l.b16 %v496_v25  ;;  %v893_v21 = vunpack.c.l.b16 %v817_v26  ;;  %v7267_v15 = vld [vmem:[%s10740_s0 + $0x70] sm:$0xf] }
  0x46   :  { %723 = vmatpush.bf16.xpose.msra.mxu2 %v677_v5  ;;  %v820_v36 = vsel %vm7216_vm6, %v818_v28, %v819_v19  ;;  %v873_v40 = vsel %vm7216_vm6, %v6013_v20, %v872_v23  ;;  %v874_v37 = vrot.slane %v872_v23, 4  ;;  %v875_v41 = vrot.slane %v6904_v22, 5  ;;  %v7261_v22 = vld [vmem:[%s10740_s0 + $0x6c] sm:$0xf]  ;;  %v7274_v28 = vld [vmem:[%s10740_s0 + $0x74] sm:$0x1] }
  0x47   :  { %v661_v45 = vpack.c.b16 %v640_v17, %v639_v9  ;;  %v894_v46 = vunpack.c.l.b16 %v820_v36  ;;  %v909_v47 = vunpack.c.l.b16 %v873_v40  ;;  %v258_v55 = vshrl.u32 %v7234_v4, 16 }
  0x48   :  { %v876_v58 = vsel %vm7216_vm6, %v874_v37, %v875_v41  ;;  %v261_v56 = vshll.u32 %v7234_v4, 16  ;;  %v267_v1 = vshll.u32 %v7240_v30, 16  ;;  %v271_v2 = vshrl.u32 %v7240_v30, 16 }
  0x49   :  { %v701_v7 = vsel %vm150_vm0, %v661_v45, 0  ;;  %v918_v14 = vpack.c.b16 %v894_v46, %v893_v21  ;;  %v910_v12 = vunpack.c.l.b16 %v876_v58  ;;  %v260_v61 = vrot.slane %v258_v55, 4 }
  0x4a   :  { %736 = vmatpush.bf16.xpose.msra.mxu3 %v701_v7  ;;  %v263_v19 = vrot.slane %v261_v56, 5  ;;  %v269_v20 = vrot.slane %v267_v1, 5  ;;  %v273_v23 = vrot.slane %v271_v2, 4  ;;  %v277_v24 = vshll.u32 %v7250_v54, 16 }
  0x4b   :  { %v952_v25 = vsel %vm150_vm0, %v918_v14, 0  ;;  %v926_v26 = vpack.c.b16 %v910_v12, %v909_v47  ;;  %v450_v5 = vshrl.u32 %v7261_v22, 16  ;;  %v453_v9 = vshll.u32 %v7261_v22, 16 }
  0x4c   :  { %978 = vmatpush.bf16.xpose.msrb.mxu0 %v952_v25  ;;  %v264_v17 = vor.u32 %v263_v19, %v260_v61  ;;  %v274_v21 = vor.u32 %v273_v23, %v269_v20  ;;  %v279_v36 = vrot.slane %v277_v24, 5  ;;  %v459_v40 = vshll.u32 %v7267_v15, 16 }
  0x4d   :  { %v976_v37 = vsel %vm150_vm0, %v926_v26, 0  ;;  %v452_v41 = vrot.slane %v450_v5, 4  ;;  %v455_v45 = vrot.slane %v453_v9, 5  ;;  %v463_v46 = vshrl.u32 %v7267_v15, 16 }
  0x4e   :  { %991 = vmatpush.bf16.xpose.msrb.mxu1 %v976_v37  ;;  %v265_v47 = vrot.slane %v264_v17, 4  ;;  %v275_v55 = vrot.slane %v274_v21, 4  ;;  %v461_v58 = vrot.slane %v459_v40, 5  ;;  %v469_v56 = vshll.u32 %v7274_v28, 16 }
  0x4f   :  { %v456_v1 = vor.u32 %v455_v45, %v452_v41  ;;  %v465_v2 = vrot.slane %v463_v46, 4  ;;  %v6004_v7 = vrot.slane %v6917_v32, 9  ;;  %v809_v14 = vrot.slane %v6929_v38, 5 }
  0x50   :  { %v270_v12 = vsel %vm6921_vm3, %v265_v47, %v269_v20  ;;  %v280_v61 = vsel %vm6921_vm3, %v275_v55, %v279_v36  ;;  %v471_v19 = vrot.slane %v469_v56, 5  ;;  %v812_v23 = vrot.slane %v6938_v49, 5  ;;  %v7298_v49 = vld [vmem:[%s10740_s0] sm:$0xf] }
  0x51   :  { %v621_v24 = vunpack.c.l.b16 %v270_v12  ;;  %v622_v25 = vunpack.c.l.b16 %v280_v61  ;;  %v457_v26 = vrot.slane %v456_v1, 4  ;;  %v466_v5 = vor.u32 %v465_v2, %v461_v58  ;;  %v7316_v2 = vld [vmem:[%s10740_s0 + $0x8] sm:$0x1] }
  0x52   :  { %v810_v9 = vsel %vm7216_vm6, %v6004_v7, %v809_v14  ;;  %v811_v17 = vrot.slane %v809_v14, 4  ;;  %v6012_v32 = vrot.slane %v6945_v52, 9  ;;  %v865_v38 = vrot.slane %v6956_v0, 5  ;;  %v7307_v0 = vld [vmem:[%s10740_s0 + $0x4] sm:$0xf] }
  0x53   :  { %v652_v21 = vpack.c.b16 %v622_v25, %v621_v24  ;;  %v462_v20 = vsel %vm6921_vm3, %v457_v26, %v461_v58  ;;  %v467_v36 = vrot.slane %v466_v5, 4  ;;  %v891_v40 = vunpack.c.l.b16 %v810_v9  ;;  %v7332_v9 = vld [vmem:[%s10740_s0 + $0x64] sm:$0xf] }
  0x54   :  { %v637_v37 = vunpack.c.l.b16 %v462_v20  ;;  %v813_v41 = vsel %vm7216_vm6, %v811_v17, %v812_v23  ;;  %v866_v52 = vsel %vm7216_vm6, %v6012_v32, %v865_v38  ;;  %v867_v45 = vrot.slane %v865_v38, 4  ;;  %v7327_v23 = vld [vmem:[%s10740_s0 + $0x60] sm:$0xf] }
  0x55   :  { %v674_v46 = vsel %vm150_vm0, %v652_v21, 0  ;;  %v472_v47 = vsel %vm6921_vm3, %v467_v36, %v471_v19  ;;  %v892_v55 = vunpack.c.l.b16 %v813_v41  ;;  %v868_v58 = vrot.slane %v6964_v8, 5 }
  0x56   :  { %724 = vmatpush.bf16.xpose.msra.mxu2 %v674_v46  ;;  %v638_v56 = vunpack.c.l.b16 %v472_v47  ;;  %v907_v1 = vunpack.c.l.b16 %v866_v52  ;;  %v234_v7 = vshrl.u32 %v7298_v49, 16  ;;  %v237_v14 = vshll.u32 %v7298_v49, 16  ;;  %v6724_v52 = vld [vmem:[%s10740_s0 + $0x60] sm:$0xff] }
  0x57   :  { %v917_v12 = vpack.c.b16 %v892_v55, %v891_v40  ;;  %v869_v61 = vsel %vm7216_vm6, %v867_v45, %v868_v58  ;;  %v243_v19 = vshll.u32 %v7307_v0, 16  ;;  %v247_v8 = vshrl.u32 %v7307_v0, 16  ;;  %v6732_v45 = vld [vmem:[%s10740_s0 + $0xc0] sm:$0xff] }
  0x58   :  { %v660_v24 = vpack.c.b16 %v638_v56, %v637_v37  ;;  %v908_v25 = vunpack.c.l.b16 %v869_v61  ;;  %v236_v26 = vrot.slane %v234_v7, 4  ;;  %v239_v5 = vrot.slane %v237_v14, 5  ;;  %v7340_v37 = vld [vmem:[%s10740_s0 + $0x68] sm:$0x1] }
  0x59   :  { %v949_v17 = vsel %vm150_vm0, %v917_v12, 0  ;;  %v245_v32 = vrot.slane %v243_v19, 5  ;;  %v249_v38 = vrot.slane %v247_v8, 4  ;;  %v253_v21 = vshll.u32 %v7316_v2, 16 }
  0x5a   :  { %v698_v20 = vsel %vm150_vm0, %v660_v24, 0  ;;  %979 = vmatpush.bf16.xpose.msrb.mxu0 %v949_v17  ;;  %v925_v36 = vpack.c.b16 %v908_v25, %v907_v1  ;;  %v240_v40 = vor.u32 %v239_v5, %v236_v26  ;;  %v426_v41 = vshrl.u32 %v7327_v23, 16 }
  0x5b   :  { %737 = vmatpush.bf16.xpose.msra.mxu3 %v698_v20  ;;  %v250_v46 = vor.u32 %v249_v38, %v245_v32  ;;  %v255_v47 = vrot.slane %v253_v21, 5  ;;  %v429_v55 = vshll.u32 %v7327_v23, 16  ;;  %v435_v58 = vshll.u32 %v7332_v9, 16 }
  0x5c   :  { %v973_v56 = vsel %vm150_vm0, %v925_v36, 0  ;;  %v241_v1 = vrot.slane %v240_v40, 4  ;;  %v428_v7 = vrot.slane %v426_v41, 4  ;;  %v439_v14 = vshrl.u32 %v7332_v9, 16 }
  0x5d   :  { %992 = vmatpush.bf16.xpose.msrb.mxu1 %v973_v56  ;;  %v251_v12 = vrot.slane %v250_v46, 4  ;;  %v431_v61 = vrot.slane %v429_v55, 5  ;;  %v437_v19 = vrot.slane %v435_v58, 5  ;;  %v445_v8 = vshll.u32 %v7340_v37, 16 }
  0x5e   :  { %v246_v24 = vsel %vm6921_vm3, %v241_v1, %v245_v32  ;;  %v441_v25 = vrot.slane %v439_v14, 4  ;;  %v1162_v26 = vsel %vm150_vm0, %v6724_v52, 0  ;;  %v1186_v5 = vsel %vm150_vm0, %v6732_v45, 0 }
  0x5f   :  { %v256_v17 = vsel %vm6921_vm3, %v251_v12, %v255_v47  ;;  %v619_v38 = vunpack.c.l.b16 %v246_v24  ;;  %v432_v21 = vor.u32 %v431_v61, %v428_v7  ;;  %v447_v20 = vrot.slane %v445_v8, 5  ;;  %v6723_v7 = vld [vmem:[%s10740_s0 + $0x54] sm:$0xff] }
  0x60   :  { %v620_v36 = vunpack.c.l.b16 %v256_v17  ;;  %v442_v40 = vor.u32 %v441_v25, %v437_v19  ;;  %v6003_v41 = vrot.slane %v6980_v27, 9  ;;  %v802_v46 = vrot.slane %v6988_v34, 5  ;;  %v6731_v27 = vld [vmem:[%s10740_s0 + $0xb4] sm:$0xff] }
  0x61   :  { %v433_v55 = vrot.slane %v432_v21, 4  ;;  %v805_v32 = vrot.slane %v6995_v43, 5  ;;  %v6011_v58 = vrot.slane %v7005_v50, 9  ;;  %v858_v52 = vrot.slane %v7014_v63, 5 }
  0x62   :  { %v651_v45 = vpack.c.b16 %v620_v36, %v619_v38  ;;  %v443_v56 = vrot.slane %v442_v40, 4  ;;  %v803_v47 = vsel %vm7216_vm6, %v6003_v41, %v802_v46  ;;  %v804_v1 = vrot.slane %v802_v46, 4 }
  0x63   :  { %v438_v34 = vsel %vm6921_vm3, %v433_v55, %v437_v19  ;;  %v889_v43 = vunpack.c.l.b16 %v803_v47  ;;  %v859_v50 = vsel %vm7216_vm6, %v6011_v58, %v858_v52  ;;  %v860_v63 = vrot.slane %v858_v52, 4 }
  0x64   :  { %v671_v14 = vsel %vm150_vm0, %v651_v45, 0  ;;  %v448_v12 = vsel %vm6921_vm3, %v443_v56, %v447_v20  ;;  %v635_v61 = vunpack.c.l.b16 %v438_v34  ;;  %v806_v8 = vsel %vm7216_vm6, %v804_v1, %v805_v32  ;;  %v6722_v20 = vld [vmem:[%s10740_s0 + $0x48] sm:$0xff] }
  0x65   :  { %725 = vmatpush.bf16.xpose.msra.mxu2 %v671_v14  ;;  %v636_v24 = vunpack.c.l.b16 %v448_v12  ;;  %v890_v25 = vunpack.c.l.b16 %v806_v8  ;;  %v861_v17 = vrot.slane %v7025_v11, 5  ;;  %v905_v19 = vunpack.c.l.b16 %v859_v50 }
  0x66   :  { %v1159_v38 = vsel %vm150_vm0, %v6723_v7, 0  ;;  %v1183_v21 = vsel %vm150_vm0, %v6731_v27, 0  ;;  %v6002_v36 = vrot.slane %v7039_v29, 9  ;;  %v795_v40 = vrot.slane %v7046_v39, 5 }
  0x67   :  { %v659_v41 = vpack.c.b16 %v636_v24, %v635_v61  ;;  %v916_v46 = vpack.c.b16 %v890_v25, %v889_v43  ;;  %v862_v55 = vsel %vm7216_vm6, %v860_v63, %v861_v17  ;;  %v798_v11 = vrot.slane %v7054_v44, 5  ;;  %v6729_v25 = vld [vmem:[%s10740_s0 + $0x9c] sm:$0xff] }
  0x68   :  { %v906_v32 = vunpack.c.l.b16 %v862_v55  ;;  %v796_v29 = vsel %vm7216_vm6, %v6002_v36, %v795_v40  ;;  %v797_v39 = vrot.slane %v795_v40, 4  ;;  %v6010_v58 = vrot.slane %v7065_v60, 9 }
  0x69   :  { %v695_v52 = vsel %vm150_vm0, %v659_v41, 0  ;;  %v946_v45 = vsel %vm150_vm0, %v916_v46, 0  ;;  %v887_v56 = vunpack.c.l.b16 %v796_v29  ;;  %v851_v47 = vrot.slane %v7070_v3, 5  ;;  %v6721_v3 = vld [vmem:[%s10740_s0 + $0x3c] sm:$0xff] }
  0x6a   :  { %738 = vmatpush.bf16.xpose.msra.mxu3 %v695_v52  ;;  %980 = vmatpush.bf16.xpose.msrb.mxu0 %v946_v45  ;;  %v924_v44 = vpack.c.b16 %v906_v32, %v905_v19  ;;  %v799_v1 = vsel %vm7216_vm6, %v797_v39, %v798_v11  ;;  %v854_v7 = vrot.slane %v7080_v13, 5  ;;  %v1156_v27 = vsel %vm150_vm0, %v6722_v20, 0  ;;  %v6728_v52 = vld [vmem:[%s10740_s0 + $0x90] sm:$0xff] }
  0x6b   :  { %v888_v34 = vunpack.c.l.b16 %v799_v1  ;;  %v852_v60 = vsel %vm7216_vm6, %v6010_v58, %v851_v47  ;;  %v853_v43 = vrot.slane %v851_v47, 4  ;;  %v6001_v13 = vrot.slane %v7096_v42, 9 }
  0x6c   :  { %v970_v63 = vsel %vm150_vm0, %v924_v44, 0  ;;  %v903_v14 = vunpack.c.l.b16 %v852_v60  ;;  %v788_v12 = vrot.slane %v7106_v51, 5  ;;  %v791_v8 = vrot.slane %v7111_v57, 5 }
  0x6d   :  { %1188 = vmatpush.bf16.xpose.msrb.mxu2 %v1162_v26  ;;  %v6730_v26 = vld [vmem:[%s10740_s0 + $0xa8] sm:$0xff]  ;;  %993 = vmatpush.bf16.xpose.msrb.mxu1 %v970_v63  ;;  %v855_v61 = vsel %vm7216_vm6, %v853_v43, %v854_v7  ;;  %v6009_v24 = vrot.slane %v7121_v10, 9  ;;  %v844_v51 = vrot.slane %v7128_v18, 5  ;;  %v847_v20 = vrot.slane %v7138_v31, 5  ;;  %v6720_v18 = vld [vmem:[%s10740_s0 + $0x30] sm:$0xff] }
  0x6e   :  { %v7409_v50 = vsel %vm150_vm0, %v6730_v26, 0  ;;  %v904_v17 = vunpack.c.l.b16 %v855_v61  ;;  %v789_v42 = vsel %vm7216_vm6, %v6001_v13, %v788_v12  ;;  %v790_v19 = vrot.slane %v788_v12, 4  ;;  %v5995_v63 = vld [vmem:[%s10741_s1 + $0x2] sm:$0x3] }
  0x6f   :  { %v885_v40 = vunpack.c.l.b16 %v789_v42  ;;  %v7430_v57 = vsel %vm150_vm0, %v6721_v3, 0  ;;  %v846_v46 = vrot.slane %v844_v51, 4  ;;  %v7440_v26 = vsel %vm150_vm0, %v6729_v25, 0  ;;  %5996 = vmatmul.msk.bf16.vlgmr.msra.gmra.mxu2 %vm150_vm0, %v5995_v63  ;;  %v6719_v25 = vld [vmem:[%s10740_s0 + $0x24] sm:$0xff] }
  0x70   :  { %v923_v10 = vpack.c.b16 %v904_v17, %v903_v14  ;;  %v792_v41 = vsel %vm7216_vm6, %v790_v19, %v791_v8  ;;  %v6000_v31 = vrot.slane %v7154_v59, 9  ;;  %v781_v39 = vrot.slane %v7162_v6, 5 }
  0x71   :  { %v886_v55 = vunpack.c.l.b16 %v792_v41  ;;  %v848_v29 = vsel %vm7216_vm6, %v846_v46, %v847_v20  ;;  %v784_v58 = vrot.slane %v7168_v16, 5  ;;  %v6008_v47 = vrot.slane %v7181_v35, 9  ;;  %v69_v35 = vld [vmem:[%s10741_s1] sm:$0x3]  ;;  %5997 = vmatmul.msk.bf16.vlgmr.msra.gmra.mxu3 %vm150_vm0, %v5995_v63  ;;  %v7555_v63 = vld [vmem:[%s10740_s0 + $0xc4] sm:$0xf] }
  0x72   :  { %1201 = vmatpush.bf16.xpose.msrb.mxu3 %v1186_v5  ;;  %v915_v5 = vpack.c.b16 %v888_v34, %v887_v56  ;;  %v967_v32 = vsel %vm150_vm0, %v923_v10, 0  ;;  %v902_v56 = vunpack.c.l.b16 %v848_v29  ;;  %v837_v59 = vrot.slane %v7188_v53, 5  ;;  %5993 = vmatmul.msk.bf16.vlgmr.msra.gmra.mxu0 %vm150_vm0, %v69_v35 }
  0x73   :  { %v914_v45 = vpack.c.b16 %v886_v55, %v885_v40  ;;  %v782_v44 = vsel %vm7216_vm6, %v6000_v31, %v781_v39  ;;  %v783_v1 = vrot.slane %v781_v39, 4  ;;  %v840_v7 = vrot.slane %v7195_v62, 5  ;;  %5994 = vmatmul.msk.bf16.vlgmr.msra.gmra.mxu1 %vm150_vm0, %v69_v35 }
  0x74   :  { %v943_v36 = vsel %vm150_vm0, %v915_v5, 0  ;;  %v7457_v6 = vsel %vm150_vm0, %v6720_v18, 0  ;;  %v838_v60 = vsel %vm7216_vm6, %v6008_v47, %v837_v59  ;;  %v839_v62 = vrot.slane %v837_v59, 4  ;;  %v7534_v47 = vld [vmem:[%s10740_s0 + $0x68] sm:$0x1] }
  0x75   :  { %1189 = vmatpush.bf16.xpose.msrb.mxu2 %v1159_v38  ;;  %v845_v38 = vsel %vm7216_vm6, %v6009_v24, %v844_v51  ;;  %981 = vmatpush.bf16.xpose.msrb.mxu0 %v943_v36  ;;  %v940_v16 = vsel %vm150_vm0, %v914_v45, 0  ;;  %v785_v53 = vsel %vm7216_vm6, %v783_v1, %v784_v58  ;;  %v899_v43 = vunpack.c.l.b16 %v838_v60  ;;  %v7518_v58 = vld [vmem:[%s10740_s0 + $0x60] sm:$0xf] }
  0x76   :  { %v901_v11 = vunpack.c.l.b16 %v845_v38  ;;  %994 = vmatpush.bf16.xpose.msrb.mxu1 %v967_v32  ;;  %v7468_v3 = vsel %vm150_vm0, %v6728_v52, 0  ;;  %v884_v13 = vunpack.c.l.b16 %v785_v53  ;;  %v5999_v12 = vrot.slane %v7234_v4, 9  ;;  %v6727_v4 = vld [vmem:[%s10740_s0 + $0x84] sm:$0xff] }
  0x77   :  { %v841_v5 = vsel %vm7216_vm6, %v839_v62, %v840_v7  ;;  %v777_v61 = vrot.slane %v7250_v54, 5  ;;  %v6007_v8 = vrot.slane %v7261_v22, 9  ;;  %v830_v24 = vrot.slane %v7267_v15, 5  ;;  %v7543_v7 = vld [vmem:[%s10740_s0 + $0xc0] sm:$0xf] }
  0x78   :  { %v922_v34 = vpack.c.b16 %v902_v56, %v901_v11  ;;  %v900_v17 = vunpack.c.l.b16 %v841_v5  ;;  %v833_v51 = vrot.slane %v7274_v28, 5  ;;  %v7503_v46 = vsel %vm150_vm0, %v6719_v25, 0 }
  0x79   :  { %v831_v15 = vsel %vm7216_vm6, %v6007_v8, %v830_v24  ;;  %v832_v19 = vrot.slane %v830_v24, 4  ;;  %v7506_v18 = vsel %vm150_vm0, %v6727_v4, 0  ;;  %v5998_v55 = vrot.slane %v7298_v49, 9  ;;  %v7564_v24 = vld [vmem:[%s10740_s0 + $0xc8] sm:$0x1]  ;;  %v6726_v4 = vld [vmem:[%s10740_s0 + $0x78] sm:$0xff] }
  0x7a   :  { %1202 = vmatpush.bf16.xpose.msrb.mxu3 %v1183_v21  ;;  %v883_v21 = vunpack.c.l.b16 %v782_v44  ;;  %v964_v14 = vsel %vm150_vm0, %v922_v34, 0  ;;  %v921_v40 = vpack.c.b16 %v900_v17, %v899_v43  ;;  %v897_v10 = vunpack.c.l.b16 %v831_v15 }
  0x7b   :  { %v834_v38 = vsel %vm7216_vm6, %v832_v19, %v833_v51  ;;  %v767_v11 = vrot.slane %v7307_v0, 5  ;;  %v770_v32 = vrot.slane %v7316_v2, 5  ;;  %v6006_v29 = vrot.slane %v7327_v23, 9  ;;  %v7526_v2 = vld [vmem:[%s10740_s0 + $0x64] sm:$0xf] }
  0x7c   :  { %v961_v28 = vsel %vm150_vm0, %v921_v40, 0  ;;  %v823_v39 = vrot.slane %v7332_v9, 5  ;;  %v826_v0 = vrot.slane %v7340_v37, 5  ;;  %v1385_v1 = vshrl.u32 %v7518_v58, 16 }
  0x7d   :  { %1190 = vmatpush.bf16.xpose.msrb.mxu2 %v1156_v27  ;;  %v774_v27 = vrot.slane %v7240_v30, 5  ;;  %v913_v30 = vpack.c.b16 %v884_v13, %v883_v21  ;;  %982 = vmatpush.bf16.xpose.msrb.mxu0 %v940_v16  ;;  %v768_v49 = vsel %vm7216_vm6, %v5998_v55, %v767_v11  ;;  %v769_v45 = vrot.slane %v767_v11, 4  ;;  %v7592_v55 = vld [vmem:[%s10740_s0 + $0x58] sm:$0xf] }
  0x7e   :  { %995 = vmatpush.bf16.xpose.msrb.mxu1 %v964_v14  ;;  %v879_v9 = vunpack.c.l.b16 %v768_v49  ;;  %v825_v56 = vrot.slane %v823_v39, 4  ;;  %v1388_v21 = vshll.u32 %v7518_v58, 16  ;;  %v1394_v60 = vshll.u32 %v7526_v2, 16 }
  0x7f   :  { %v775_v42 = vsel %vm7216_vm6, %v5999_v12, %v774_v27  ;;  %v776_v54 = vrot.slane %v774_v27, 4  ;;  %v937_v36 = vsel %vm150_vm0, %v913_v30, 0  ;;  %v771_v37 = vsel %vm7216_vm6, %v769_v45, %v770_v32  ;;  %v7599_v32 = vld [vmem:[%s10740_s0 + $0x5c] sm:$0x1] }
  0x80   :  { %v881_v22 = vunpack.c.l.b16 %v775_v42  ;;  %v880_v16 = vunpack.c.l.b16 %v771_v37  ;;  %v827_v34 = vsel %vm7216_vm6, %v825_v56, %v826_v0  ;;  %v1387_v53 = vrot.slane %v1385_v1, 4  ;;  %v7610_v37 = vld [vmem:[%s10740_s0 + $0xb4] sm:$0xf] }
  0x81   :  { %v778_v20 = vsel %vm7216_vm6, %v776_v54, %v777_v61  ;;  %v896_v35 = vunpack.c.l.b16 %v827_v34  ;;  %v1398_v62 = vshrl.u32 %v7526_v2, 16  ;;  %v1404_v43 = vshll.u32 %v7534_v47, 16 }
  0x82   :  { %1203 = vmatpush.bf16.xpose.msrb.mxu3 %v7409_v50  ;;  %v882_v41 = vunpack.c.l.b16 %v778_v20  ;;  %v898_v50 = vunpack.c.l.b16 %v834_v38  ;;  %v911_v14 = vpack.c.b16 %v880_v16, %v879_v9  ;;  %v1390_v13 = vrot.slane %v1388_v21, 5 }
  0x83   :  { %v1396_v12 = vrot.slane %v1394_v60, 5  ;;  %v1577_v27 = vshrl.u32 %v7543_v7, 16  ;;  %v1400_v61 = vrot.slane %v1398_v62, 4  ;;  %v1406_v8 = vrot.slane %v1404_v43, 5 }
  0x84   :  { %v912_v31 = vpack.c.b16 %v882_v41, %v881_v22  ;;  %v920_v52 = vpack.c.b16 %v898_v50, %v897_v10  ;;  %v1580_v25 = vshll.u32 %v7543_v7, 16  ;;  %v931_v30 = vsel %vm150_vm0, %v911_v14, 0  ;;  %v7627_v14 = vld [vmem:[%s10740_s0 + $0xbc] sm:$0x1] }
  0x85   :  { %1191 = vmatpush.bf16.xpose.msrb.mxu2 %v7430_v57  ;;  %v824_v57 = vsel %vm7216_vm6, %v6006_v29, %v823_v39  ;;  %983 = vmatpush.bf16.xpose.msrb.mxu0 %v937_v36  ;;  %v1391_v17 = vor.u32 %v1390_v13, %v1387_v53  ;;  %v1579_v42 = vrot.slane %v1577_v27, 4  ;;  %v1586_v54 = vshll.u32 %v7555_v63, 16  ;;  %v7580_v36 = vld [vmem:[%s10740_s0 + $0x54] sm:$0xf]  ;;  %v7620_v53 = vld [vmem:[%s10740_s0 + $0xb8] sm:$0xf] }
  0x86   :  { %v934_v23 = vsel %vm150_vm0, %v912_v31, 0  ;;  %v958_v59 = vsel %vm150_vm0, %v920_v52, 0  ;;  %v895_v44 = vunpack.c.l.b16 %v824_v57  ;;  %996 = vmatpush.bf16.xpose.msrb.mxu1 %v961_v28  ;;  %v1401_v15 = vor.u32 %v1400_v61, %v1396_v12 }
  0x87   :  { %v1582_v19 = vrot.slane %v1580_v25, 5  ;;  %v1590_v51 = vshrl.u32 %v7555_v63, 16  ;;  %v1392_v40 = vrot.slane %v1391_v17, 4  ;;  %v1596_v20 = vshll.u32 %v7564_v24, 16  ;;  %v6725_v17 = vld [vmem:[%s10740_s0 + $0x6c] sm:$0xff] }
  0x88   :  { %v919_v5 = vpack.c.b16 %v896_v35, %v895_v44  ;;  %v1402_v41 = vrot.slane %v1401_v15, 4  ;;  %v7587_v50 = vsel %vm150_vm0, %v6726_v4, 0  ;;  %v1361_v29 = vshrl.u32 %v7580_v36, 16 }
  0x89   :  { %v1583_v38 = vor.u32 %v1582_v19, %v1579_v42  ;;  %v1592_v28 = vrot.slane %v1590_v51, 4  ;;  %v1397_v11 = vsel %vm6921_vm3, %v1392_v40, %v1396_v12  ;;  %v1598_v31 = vrot.slane %v1596_v20, 5 }
  0x8a   :  { %1204 = vmatpush.bf16.xpose.msrb.mxu3 %v7440_v26  ;;  %v6718_v26 = vld [vmem:[%s10740_s0 + $0x18] sm:$0xff]  ;;  %v7574_v22 = vsel %vm150_vm0, %v919_v5, 0  ;;  %v1364_v39 = vshll.u32 %v7580_v36, 16  ;;  %v1407_v52 = vsel %vm6921_vm3, %v1402_v41, %v1406_v8  ;;  %v1616_v49 = vunpack.c.l.b16 %v1397_v11  ;;  %v6717_v5 = vld [vmem:[%s10740_s0 + $0xc] sm:$0xff] }
  0x8b   :  { %v7584_v10 = vsel %vm150_vm0, %v6718_v26, 0  ;;  %v1584_v45 = vrot.slane %v1583_v38, 4  ;;  %v1363_v9 = vrot.slane %v1361_v29, 4  ;;  %v1370_v56 = vshll.u32 %v7592_v55, 16 }
  0x8c   :  { %v1366_v57 = vrot.slane %v1364_v39, 5  ;;  %v1374_v1 = vshrl.u32 %v7592_v55, 16  ;;  %v1380_v16 = vshll.u32 %v7599_v32, 16  ;;  %v1556_v26 = vshll.u32 %v7610_v37, 16 }
  0x8d   :  { %1192 = vmatpush.bf16.xpose.msrb.mxu2 %v7457_v6  ;;  %v1588_v6 = vrot.slane %v1586_v54, 5  ;;  %984 = vmatpush.bf16.xpose.msrb.mxu0 %v934_v23  ;;  %v1617_v23 = vunpack.c.l.b16 %v1407_v52  ;;  %v1372_v35 = vrot.slane %v1370_v56, 5  ;;  %v1562_v25 = vshll.u32 %v7620_v53, 16 }
  0x8e   :  { %997 = vmatpush.bf16.xpose.msrb.mxu1 %v958_v59  ;;  %v1367_v60 = vor.u32 %v1366_v57, %v1363_v9  ;;  %v1376_v62 = vrot.slane %v1374_v1, 4  ;;  %v1382_v43 = vrot.slane %v1380_v16, 5  ;;  %v1566_v4 = vshrl.u32 %v7620_v53, 16 }
  0x8f   :  { %v1593_v0 = vor.u32 %v1592_v28, %v1588_v6  ;;  %v1641_v34 = vpack.c.b16 %v1617_v23, %v1616_v49  ;;  %v1558_v15 = vrot.slane %v1556_v26, 5  ;;  %v1572_v19 = vshll.u32 %v7627_v14, 16 }
  0x90   :  { %v1368_v27 = vrot.slane %v1367_v60, 4  ;;  %v1377_v61 = vor.u32 %v1376_v62, %v1372_v35  ;;  %v1568_v20 = vrot.slane %v1566_v4, 4  ;;  %v7650_v29 = vsel %vm150_vm0, %v6725_v17, 0 }
  0x91   :  { %v1594_v44 = vrot.slane %v1593_v0, 4  ;;  %v1675_v13 = vsel %vm150_vm0, %v1641_v34, 0  ;;  %v1574_v28 = vrot.slane %v1572_v19, 5  ;;  %v1796_v49 = vrot.slane %v7526_v2, 5 }
  0x92   :  { %1205 = vmatpush.bf16.xpose.msrb.mxu3 %v7468_v3  ;;  %v1589_v3 = vsel %vm6921_vm3, %v1584_v45, %v1588_v6  ;;  %v1373_v54 = vsel %vm6921_vm3, %v1368_v27, %v1372_v35  ;;  %v1378_v51 = vrot.slane %v1377_v61, 4  ;;  %v1564_v6 = vrot.slane %v1562_v25, 5  ;;  %v7699_v27 = vld [vmem:[%s10740_s0 + $0xa8] sm:$0xf]  ;;  %v7705_v25 = vld [vmem:[%s10740_s0 + $0xac] sm:$0xf] }
  0x93   :  { %v1632_v21 = vunpack.c.l.b16 %v1589_v3  ;;  %v1599_v59 = vsel %vm6921_vm3, %v1594_v44, %v1598_v31  ;;  %v1614_v40 = vunpack.c.l.b16 %v1373_v54  ;;  %v1799_v45 = vrot.slane %v7534_v47, 5  ;;  %v7669_v47 = vld [vmem:[%s10740_s0 + $0x48] sm:$0xf]  ;;  %v7678_v44 = vld [vmem:[%s10740_s0 + $0x4c] sm:$0xf] }
  0x94   :  { %v1633_v12 = vunpack.c.l.b16 %v1599_v59  ;;  %v1383_v11 = vsel %vm6921_vm3, %v1378_v51, %v1382_v43  ;;  %v1569_v31 = vor.u32 %v1568_v20, %v1564_v6  ;;  %v6150_v23 = vrot.slane %v7543_v7, 9  ;;  %v7688_v59 = vld [vmem:[%s10740_s0 + $0x50] sm:$0x1] }
  0x95   :  { %1193 = vmatpush.bf16.xpose.msrb.mxu2 %v7503_v46  ;;  %v1553_v46 = vshrl.u32 %v7610_v37, 16  ;;  %985 = vmatpush.bf16.xpose.msrb.mxu0 %v931_v30  ;;  %v1141_v30 = vsel %vm150_vm0, %v6717_v5, 0  ;;  %v1615_v39 = vunpack.c.l.b16 %v1383_v11  ;;  %v1852_v9 = vrot.slane %v7555_v63, 5 }
  0x96   :  { %v1649_v42 = vpack.c.b16 %v1633_v12, %v1632_v21  ;;  %998 = vmatpush.bf16.xpose.msrb.mxu1 %v7574_v22  ;;  %v6014_v22 = vld [vmem:[%s10741_s1 + $0x4] sm:$0x3]  ;;  %v1570_v0 = vrot.slane %v1569_v31, 4  ;;  %v1798_v56 = vrot.slane %v1796_v49, 4  ;;  %v1337_v62 = vshrl.u32 %v7669_v47, 16 }
  0x97   :  { %v1555_v8 = vrot.slane %v1553_v46, 4  ;;  %v1640_v57 = vpack.c.b16 %v1615_v39, %v1614_v40  ;;  %v1854_v21 = vrot.slane %v1852_v9, 4  ;;  %v1340_v43 = vshll.u32 %v7669_v47, 16  ;;  %v7713_v40 = vld [vmem:[%s10740_s0 + $0xb0] sm:$0x1] }
  0x98   :  { %v1699_v41 = vsel %vm150_vm0, %v1649_v42, 0  ;;  %v1575_v7 = vsel %vm6921_vm3, %v1570_v0, %v1574_v28  ;;  %v1800_v34 = vsel %vm7216_vm6, %v1798_v56, %v1799_v45  ;;  %v1346_v12 = vshll.u32 %v7678_v44, 16 }
  0x99   :  { %v1559_v38 = vor.u32 %v1558_v15, %v1555_v8  ;;  %v1672_v1 = vsel %vm150_vm0, %v1640_v57, 0  ;;  %v1631_v16 = vunpack.c.l.b16 %v1575_v7  ;;  %v1874_v60 = vunpack.c.l.b16 %v1800_v34 }
  0x9a   :  { %1206 = vmatpush.bf16.xpose.msrb.mxu3 %v7506_v18  ;;  %v6142_v18 = vrot.slane %v7518_v58, 9  ;;  %v1855_v58 = vrot.slane %v7564_v24, 5  ;;  %v1853_v24 = vsel %vm7216_vm6, %v6150_v23, %v1852_v9  ;;  %v1339_v61 = vrot.slane %v1337_v62, 4 }
  0x9b   :  { %v1560_v52 = vrot.slane %v1559_v38, 4  ;;  %v1889_v35 = vunpack.c.l.b16 %v1853_v24  ;;  %v1342_v8 = vrot.slane %v1340_v43, 5  ;;  %v1348_v17 = vrot.slane %v1346_v12, 5 }
  0x9c   :  { %v1797_v2 = vsel %vm7216_vm6, %v6142_v18, %v1796_v49  ;;  %6015 = vmatmul.msk.bf16.vlgmr.msrb.gmra.mxu0 %vm150_vm0, %v6014_v22  ;;  %v1356_v54 = vshll.u32 %v7688_v59, 16  ;;  %v1532_v38 = vshll.u32 %v7699_v27, 16  ;;  %v1538_v28 = vshll.u32 %v7705_v25, 16 }
  0x9d   :  { %1701 = vmatpush.bf16.xpose.msra.mxu0 %v1675_v13  ;;  %1194 = vmatpush.bf16.xpose.msrb.mxu2 %v7584_v10  ;;  %v1565_v10 = vsel %vm6921_vm3, %v1560_v52, %v1564_v6  ;;  %v1873_v63 = vunpack.c.l.b16 %v1797_v2  ;;  %v1856_v13 = vsel %vm7216_vm6, %v1854_v21, %v1855_v58  ;;  %v1343_v51 = vor.u32 %v1342_v8, %v1339_v61 }
  0x9e   :  { %1714 = vmatpush.bf16.xpose.msra.mxu1 %v1699_v41  ;;  %v1630_v3 = vunpack.c.l.b16 %v1565_v10  ;;  %v1890_v5 = vunpack.c.l.b16 %v1856_v13  ;;  %v1529_v6 = vshrl.u32 %v7699_v27, 16  ;;  %v1358_v41 = vrot.slane %v1356_v54, 5 }
  0x9f   :  { %6016 = vmatmul.msk.bf16.vlgmr.msrb.gmra.mxu1 %vm150_vm0, %v6014_v22  ;;  %v1898_v26 = vpack.c.b16 %v1874_v60, %v1873_v63  ;;  %v1344_v11 = vrot.slane %v1343_v51, 4  ;;  %v1542_v18 = vshrl.u32 %v7705_v25, 16  ;;  %v1534_v52 = vrot.slane %v1532_v38, 5  ;;  %v6065_v22 = vld [vmem:[%s10741_s1 + $0x6] sm:$0x3] }
  0xa0   :  { %v1648_v46 = vpack.c.b16 %v1631_v16, %v1630_v3  ;;  %v1906_v19 = vpack.c.b16 %v1890_v5, %v1889_v35  ;;  %v1531_v31 = vrot.slane %v1529_v6, 4  ;;  %v1540_v49 = vrot.slane %v1538_v28, 5 }
  0xa1   :  { %v1932_v15 = vsel %vm150_vm0, %v1898_v26, 0  ;;  %v1548_v45 = vshll.u32 %v7713_v40, 16  ;;  %v1349_v0 = vsel %vm6921_vm3, %v1344_v11, %v1348_v17  ;;  %v1544_v23 = vrot.slane %v1542_v18, 4 }
  0xa2   :  { %1207 = vmatpush.bf16.xpose.msrb.mxu3 %v7587_v50  ;;  %v1350_v50 = vshrl.u32 %v7678_v44, 16  ;;  %v1696_v4 = vsel %vm150_vm0, %v1648_v46, 0  ;;  %v6141_v9 = vrot.slane %v7580_v36, 9  ;;  %v1789_v58 = vrot.slane %v7592_v55, 5  ;;  %v7737_v36 = vld [vmem:[%s10740_s0 + $0x3c] sm:$0xf] }
  0xa3   :  { %v1612_v10 = vunpack.c.l.b16 %v1349_v0  ;;  %v1535_v2 = vor.u32 %v1534_v52, %v1531_v31  ;;  %v1550_v56 = vrot.slane %v1548_v45, 5  ;;  %v1545_v3 = vor.u32 %v1544_v23, %v1540_v49  ;;  %v7750_v46 = vld [vmem:[%s10740_s0 + $0x40] sm:$0xf]  ;;  %v7784_v31 = vld [vmem:[%s10740_s0 + $0xa4] sm:$0x1] }
  0xa4   :  { %v1352_v42 = vrot.slane %v1350_v50, 4  ;;  %v1791_v63 = vrot.slane %v1789_v58, 4  ;;  %v1792_v24 = vrot.slane %v7599_v32, 5  ;;  %v6149_v16 = vrot.slane %v7610_v37, 9  ;;  %v7760_v50 = vld [vmem:[%s10740_s0 + $0x44] sm:$0x1] }
  0xa5   :  { %1702 = vmatpush.bf16.xpose.msra.mxu0 %v1672_v1  ;;  %1195 = vmatpush.bf16.xpose.msrb.mxu2 %v1141_v30  ;;  %v1956_v30 = vsel %vm150_vm0, %v1906_v19, 0  ;;  %v1536_v55 = vrot.slane %v1535_v2, 4  ;;  %v1546_v21 = vrot.slane %v1545_v3, 4  ;;  %v1845_v60 = vrot.slane %v7620_v53, 5 }
  0xa6   :  { %1715 = vmatpush.bf16.xpose.msra.mxu1 %v1696_v4  ;;  %v1353_v20 = vor.u32 %v1352_v42, %v1348_v17  ;;  %v1848_v35 = vrot.slane %v7627_v14, 5  ;;  %v1793_v43 = vsel %vm7216_vm6, %v1791_v63, %v1792_v24  ;;  %v1313_v32 = vshrl.u32 %v7737_v36, 16 }
  0xa7   :  { %v1541_v62 = vsel %vm6921_vm3, %v1536_v55, %v1540_v49  ;;  %v1316_v37 = vshll.u32 %v7737_v36, 16  ;;  %v1551_v53 = vsel %vm6921_vm3, %v1546_v21, %v1550_v56  ;;  %v1872_v12 = vunpack.c.l.b16 %v1793_v43 }
  0xa8   :  { %v1354_v39 = vrot.slane %v1353_v20, 4  ;;  %v1628_v14 = vunpack.c.l.b16 %v1541_v62  ;;  %v1629_v26 = vunpack.c.l.b16 %v1551_v53  ;;  %v1846_v5 = vsel %vm7216_vm6, %v6149_v16, %v1845_v60 }
  0xa9   :  { %v1847_v61 = vrot.slane %v1845_v60, 4  ;;  %v1315_v8 = vrot.slane %v1313_v32, 4  ;;  %v1887_v17 = vunpack.c.l.b16 %v1846_v5  ;;  %v1318_v42 = vrot.slane %v1316_v37, 5  ;;  %v7807_v37 = vld [vmem:[%s10740_s0 + $0x30] sm:$0xf] }
  0xaa   :  { %1208 = vmatpush.bf16.xpose.msrb.mxu3 %v7650_v29  ;;  %v1359_v57 = vsel %vm6921_vm3, %v1354_v39, %v1358_v41  ;;  %v1790_v29 = vsel %vm7216_vm6, %v6141_v9, %v1789_v58  ;;  %v1322_v54 = vshll.u32 %v7750_v46, 16  ;;  %v1647_v19 = vpack.c.b16 %v1629_v26, %v1628_v14  ;;  %v7778_v41 = vld [vmem:[%s10740_s0 + $0xa0] sm:$0xf] }
  0xab   :  { %v1613_v7 = vunpack.c.l.b16 %v1359_v57  ;;  %v1871_v1 = vunpack.c.l.b16 %v1790_v29  ;;  %v1849_v51 = vsel %vm7216_vm6, %v1847_v61, %v1848_v35  ;;  %v1326_v6 = vshrl.u32 %v7750_v46, 16 }
  0xac   :  { %6130 = vmatmul.msk.bf16.vlgmr.msrb.gmra.mxu2 %vm150_vm0, %v6065_v22  ;;  %v1332_v20 = vshll.u32 %v7760_v50, 16  ;;  %v1888_v28 = vunpack.c.l.b16 %v1849_v51  ;;  %v1324_v11 = vrot.slane %v1322_v54, 5  ;;  %v1693_v18 = vsel %vm150_vm0, %v1647_v19, 0  ;;  %v7830_v54 = vld [vmem:[%s10740_s0 + $0x38] sm:$0x1] }
  0xad   :  { %1958 = vmatpush.bf16.xpose.msra.mxu2 %v1932_v15  ;;  %v1639_v34 = vpack.c.b16 %v1613_v7, %v1612_v10  ;;  %v1897_v4 = vpack.c.b16 %v1872_v12, %v1871_v1  ;;  %v7769_v15 = vld [vmem:[%s10740_s0 + $0x9c] sm:$0xf]  ;;  %v1328_v39 = vrot.slane %v1326_v6, 4  ;;  %v1514_v23 = vshll.u32 %v7778_v41, 16  ;;  %v15_v1 = vld [vmem:[%s10742_s2] sm:$0xf] }
  0xae   :  { %v1334_v52 = vrot.slane %v1332_v20, 5  ;;  %v1505_v49 = vshrl.u32 %v7769_v15, 16  ;;  %1716 = vmatpush.bf16.xpose.msra.mxu1 %v1693_v18  ;;  %v1905_v45 = vpack.c.b16 %v1888_v28, %v1887_v17  ;;  %v1508_v0 = vshll.u32 %v7769_v15, 16  ;;  %v7838_v18 = vld [vmem:[%s10740_s0 + $0x90] sm:$0xf]  ;;  %s5917_s2 = sshll.u32 %s10743_s3, 4  ;;  %s5918_s2 = int_to_ptr.hbm [resolvable:$true] %s5917_s2 }
  0xaf   :  { %v1669_v13 = vsel %vm150_vm0, %v1639_v34, 0  ;;  %v1929_v38 = vsel %vm150_vm0, %v1897_v4, 0  ;;  %v1329_v9 = vor.u32 %v1328_v39, %v1324_v11  ;;  %v1518_v57 = vshrl.u32 %v7778_v41, 16 }
  0xb0   :  { %1703 = vmatpush.bf16.xpose.msra.mxu0 %v1669_v13  ;;  %v1507_v58 = vrot.slane %v1505_v49, 4  ;;  %v1524_v10 = vshll.u32 %v7784_v31, 16  ;;  %v1953_v2 = vsel %vm150_vm0, %v1905_v45, 0  ;;  %v1510_v7 = vrot.slane %v1508_v0, 5 }
  0xb1   :  { %6131 = vmatmul.msk.bf16.vlgmr.msrb.gmra.mxu3 %vm150_vm0, %v6065_v22  ;;  %v1516_v3 = vrot.slane %v1514_v23, 5  ;;  %v1330_v29 = vrot.slane %v1329_v9, 4  ;;  %v1520_v55 = vrot.slane %v1518_v57, 4  ;;  %v6140_v34 = vrot.slane %v7669_v47, 9  ;;  %v7853_v57 = vld [vmem:[%s10740_s0 + $0x98] sm:$0x1] }
  0xb2   :  { %1971 = vmatpush.bf16.xpose.msra.mxu3 %v1956_v30  ;;  %v1319_v30 = vor.u32 %v1318_v42, %v1315_v8  ;;  %v1526_v24 = vrot.slane %v1524_v10, 5  ;;  %v1511_v16 = vor.u32 %v1510_v7, %v1507_v58  ;;  %v1782_v21 = vrot.slane %v7678_v44, 5  ;;  %v7820_v8 = vld [vmem:[%s10740_s0 + $0x34] sm:$0xf] }
  0xb3   :  { %v1335_v60 = vsel %vm6921_vm3, %v1330_v29, %v1334_v52  ;;  %v1521_v35 = vor.u32 %v1520_v55, %v1516_v3  ;;  %v6828_v62 = vmov 0   ;;  %v1785_v43 = vrot.slane %v7688_v59, 5 }
  0xb4   :  { %v1320_v22 = vrot.slane %v1319_v30, 4  ;;  %6801 = vset.pattern.permute.xlu0 %v6828_v62  ;;  %v6148_v32 = vrot.slane %v7699_v27, 9  ;;  %v1611_v13 = vunpack.c.l.b16 %v1335_v60  ;;  %v1512_v53 = vrot.slane %v1511_v16, 4 }
  0xb5   :  { %1959 = vmatpush.bf16.xpose.msra.mxu2 %v1929_v38  ;;  %18 = vperm.xlu0 %6801, %v15_v1   ;;  %v1783_v47 = vsel %vm7216_vm6, %v6140_v34, %v1782_v21  ;;  %v1784_v44 = vrot.slane %v1782_v21, 4  ;;  %v1522_v14 = vrot.slane %v1521_v35, 4  ;;  %v1838_v26 = vrot.slane %v7705_v25, 5 }
  0xb6   :  { %v1325_v56 = vsel %vm6921_vm3, %v1320_v22, %v1324_v11  ;;  %v1869_v12 = vunpack.c.l.b16 %v1783_v47  ;;  %v1841_v59 = vrot.slane %v7713_v40, 5  ;;  %v1517_v27 = vsel %vm6921_vm3, %v1512_v53, %v1516_v3  ;;  %v7847_v22 = vld [vmem:[%s10740_s0 + $0x94] sm:$0xf] }
  0xb7   :  { %v1610_v63 = vunpack.c.l.b16 %v1325_v56  ;;  %v1786_v61 = vsel %vm7216_vm6, %v1784_v44, %v1785_v43  ;;  %v1289_v4 = vshrl.u32 %v7807_v37, 16  ;;  %v1527_v17 = vsel %vm6921_vm3, %v1522_v14, %v1526_v24 }
  0xb8   :  { %v1626_v25 = vunpack.c.l.b16 %v1517_v27  ;;  %v1870_v42 = vunpack.c.l.b16 %v1786_v61  ;;  %v1839_v40 = vsel %vm7216_vm6, %v6148_v32, %v1838_v26  ;;  %v1627_v51 = vunpack.c.l.b16 %v1527_v17  ;;  %v7873_v61 = vld [vmem:[%s10740_s0 + $0x24] sm:$0xf] }
  0xb9   :  { %v1638_v5 = vpack.c.b16 %v1611_v13, %v1610_v63  ;;  %v1840_v6 = vrot.slane %v1838_v26, 4  ;;  %v1885_v20 = vunpack.c.l.b16 %v1839_v40  ;;  %v1291_v28 = vrot.slane %v1289_v4, 4 }
  0xba   :  { %1972 = vmatpush.bf16.xpose.msra.mxu3 %v1953_v2  ;;  %v1896_v38 = vpack.c.b16 %v1870_v42, %v1869_v12  ;;  %v1292_v30 = vshll.u32 %v7807_v37, 16  ;;  %v1298_v11 = vshll.u32 %v7820_v8, 16  ;;  %v1646_v39 = vpack.c.b16 %v1627_v51, %v1626_v25 }
  0xbb   :  { %v1666_v19 = vsel %vm150_vm0, %v1638_v5, 0  ;;  %v1842_v52 = vsel %vm7216_vm6, %v1840_v6, %v1841_v59  ;;  %v1302_v49 = vshrl.u32 %v7820_v8, 16  ;;  %v1308_v45 = vshll.u32 %v7830_v54, 16  ;;  %v7886_v6 = vld [vmem:[%s10740_s0 + $0x28] sm:$0xf] }
  0xbc   :  { %1704 = vmatpush.bf16.xpose.msra.mxu0 %v1666_v19  ;;  %v1926_v0 = vsel %vm150_vm0, %v1896_v38, 0  ;;  %v1886_v23 = vunpack.c.l.b16 %v1842_v52  ;;  %v1294_v9 = vrot.slane %v1292_v30, 5  ;;  %v1300_v58 = vrot.slane %v1298_v11, 5  ;;  %v7896_v30 = vld [vmem:[%s10740_s0 + $0x2c] sm:$0x1] }
  0xbd   :  { %v1690_v10 = vsel %vm150_vm0, %v1646_v39, 0  ;;  %1960 = vmatpush.bf16.xpose.msra.mxu2 %v1926_v0  ;;  %v1304_v2 = vrot.slane %v1302_v49, 4  ;;  %v1310_v56 = vrot.slane %v1308_v45, 5  ;;  %v1481_v7 = vshrl.u32 %v7838_v18, 16 }
  0xbe   :  { %1717 = vmatpush.bf16.xpose.msra.mxu1 %v1690_v10  ;;  %v1904_v3 = vpack.c.b16 %v1886_v23, %v1885_v20  ;;  %v1295_v29 = vor.u32 %v1294_v9, %v1291_v28  ;;  %v1484_v63 = vshll.u32 %v7838_v18, 16  ;;  %v1490_v55 = vshll.u32 %v7847_v22, 16 }
  0xbf   :  { %v1305_v24 = vor.u32 %v1304_v2, %v1300_v58  ;;  %v1483_v1 = vrot.slane %v1481_v7, 4  ;;  %v1494_v16 = vshrl.u32 %v7847_v22, 16  ;;  %v1500_v34 = vshll.u32 %v7853_v57, 16 }
  0xc0   :  { %v1950_v21 = vsel %vm150_vm0, %v1904_v3, 0  ;;  %v1296_v60 = vrot.slane %v1295_v29, 4  ;;  %v1486_v35 = vrot.slane %v1484_v63, 5  ;;  %v1492_v62 = vrot.slane %v1490_v55, 5  ;;  %v7913_v3 = vld [vmem:[%s10740_s0 + $0x88] sm:$0xf] }
  0xc1   :  { %v1306_v43 = vrot.slane %v1305_v24, 4  ;;  %v1496_v32 = vrot.slane %v1494_v16, 4  ;;  %v1502_v13 = vrot.slane %v1500_v34, 5  ;;  %v6139_v53 = vrot.slane %v7737_v36, 9 }
  0xc2   :  { %1973 = vmatpush.bf16.xpose.msra.mxu3 %v1950_v21  ;;  %v1301_v47 = vsel %vm6921_vm3, %v1296_v60, %v1300_v58  ;;  %v1487_v44 = vor.u32 %v1486_v35, %v1483_v1  ;;  %v1775_v14 = vrot.slane %v7750_v46, 5  ;;  %v1778_v12 = vrot.slane %v7760_v50, 5  ;;  %v7904_v58 = vld [vmem:[%s10740_s0 + $0x84] sm:$0xf]  ;;  %v7919_v1 = vld [vmem:[%s10740_s0 + $0x8c] sm:$0x1] }
  0xc3   :  { %v1311_v26 = vsel %vm6921_vm3, %v1306_v43, %v1310_v56  ;;  %v1608_v59 = vunpack.c.l.b16 %v1301_v47  ;;  %v1497_v5 = vor.u32 %v1496_v32, %v1492_v62  ;;  %v6147_v27 = vrot.slane %v7769_v15, 9 }
  0xc4   :  { %v1609_v36 = vunpack.c.l.b16 %v1311_v26  ;;  %v1488_v4 = vrot.slane %v1487_v44, 4  ;;  %v1776_v17 = vsel %vm7216_vm6, %v6139_v53, %v1775_v14  ;;  %v1777_v46 = vrot.slane %v1775_v14, 4 }
  0xc5   :  { %v1498_v25 = vrot.slane %v1497_v5, 4  ;;  %v1867_v50 = vunpack.c.l.b16 %v1776_v17  ;;  %v1831_v42 = vrot.slane %v7778_v41, 5  ;;  %v1834_v40 = vrot.slane %v7784_v31, 5 }
  0xc6   :  { %v1637_v19 = vpack.c.b16 %v1609_v36, %v1608_v59  ;;  %v1493_v15 = vsel %vm6921_vm3, %v1488_v4, %v1492_v62  ;;  %v1779_v51 = vsel %vm7216_vm6, %v1777_v46, %v1778_v12  ;;  %v1265_v20 = vshrl.u32 %v7873_v61, 16 }
  0xc7   :  { %v1503_v38 = vsel %vm6921_vm3, %v1498_v25, %v1502_v13  ;;  %v1624_v41 = vunpack.c.l.b16 %v1493_v15  ;;  %v1868_v28 = vunpack.c.l.b16 %v1779_v51  ;;  %v1832_v31 = vsel %vm7216_vm6, %v6147_v27, %v1831_v42  ;;  %v7939_v51 = vld [vmem:[%s10740_s0 + $0x18] sm:$0xf] }
  0xc8   :  { %v1663_v11 = vsel %vm150_vm0, %v1637_v19, 0  ;;  %v1625_v39 = vunpack.c.l.b16 %v1503_v38  ;;  %v1833_v52 = vrot.slane %v1831_v42, 4  ;;  %v1883_v49 = vunpack.c.l.b16 %v1832_v31 }
  0xc9   :  { %1705 = vmatpush.bf16.xpose.msra.mxu0 %v1663_v11  ;;  %v1895_v45 = vpack.c.b16 %v1868_v28, %v1867_v50  ;;  %v1267_v0 = vrot.slane %v1265_v20, 4  ;;  %v1268_v23 = vshll.u32 %v7873_v61, 16  ;;  %v1274_v9 = vshll.u32 %v7886_v6, 16 }
  0xca   :  { %v1645_v10 = vpack.c.b16 %v1625_v39, %v1624_v41  ;;  %v1835_v2 = vsel %vm7216_vm6, %v1833_v52, %v1834_v40  ;;  %v1278_v56 = vshrl.u32 %v7886_v6, 16  ;;  %v1284_v7 = vshll.u32 %v7896_v30, 16  ;;  %v7952_v52 = vld [vmem:[%s10740_s0 + $0x1c] sm:$0xf] }
  0xcb   :  { %v1923_v29 = vsel %vm150_vm0, %v1895_v45, 0  ;;  %v1884_v63 = vunpack.c.l.b16 %v1835_v2  ;;  %v1270_v55 = vrot.slane %v1268_v23, 5  ;;  %v1276_v24 = vrot.slane %v1274_v9, 5  ;;  %v7962_v23 = vld [vmem:[%s10740_s0 + $0x20] sm:$0x1] }
  0xcc   :  { %v1687_v16 = vsel %vm150_vm0, %v1645_v10, 0  ;;  %1961 = vmatpush.bf16.xpose.msra.mxu2 %v1923_v29  ;;  %v1280_v34 = vrot.slane %v1278_v56, 4  ;;  %v1286_v21 = vrot.slane %v1284_v7, 5  ;;  %v1457_v60 = vshrl.u32 %v7904_v58, 16 }
  0xcd   :  { %1718 = vmatpush.bf16.xpose.msra.mxu1 %v1687_v16  ;;  %v1903_v35 = vpack.c.b16 %v1884_v63, %v1883_v49  ;;  %v1271_v62 = vor.u32 %v1270_v55, %v1267_v0  ;;  %v1460_v43 = vshll.u32 %v7904_v58, 16  ;;  %v1466_v32 = vshll.u32 %v7913_v3, 16 }
  0xce   :  { %v1281_v13 = vor.u32 %v1280_v34, %v1276_v24  ;;  %v1459_v53 = vrot.slane %v1457_v60, 4  ;;  %v1470_v47 = vshrl.u32 %v7913_v3, 16  ;;  %v1476_v44 = vshll.u32 %v7919_v1, 16 }
  0xcf   :  { %v1947_v14 = vsel %vm150_vm0, %v1903_v35, 0  ;;  %v1272_v12 = vrot.slane %v1271_v62, 4  ;;  %v1462_v26 = vrot.slane %v1460_v43, 5  ;;  %v1468_v59 = vrot.slane %v1466_v32, 5  ;;  %v7979_v35 = vld [vmem:[%s10740_s0 + $0x7c] sm:$0xf] }
  0xd0   :  { %1974 = vmatpush.bf16.xpose.msra.mxu3 %v1947_v14  ;;  %v1282_v5 = vrot.slane %v1281_v13, 4  ;;  %v1472_v27 = vrot.slane %v1470_v47, 4  ;;  %v1478_v36 = vrot.slane %v1476_v44, 5  ;;  %v6138_v4 = vrot.slane %v7807_v37, 9 }
  0xd1   :  { %v1277_v17 = vsel %vm6921_vm3, %v1272_v12, %v1276_v24  ;;  %v1463_v46 = vor.u32 %v1462_v26, %v1459_v53  ;;  %v1768_v25 = vrot.slane %v7820_v8, 5  ;;  %v1771_v50 = vrot.slane %v7830_v54, 5  ;;  %v7970_v24 = vld [vmem:[%s10740_s0 + $0x78] sm:$0xf]  ;;  %v7985_v53 = vld [vmem:[%s10740_s0 + $0x80] sm:$0x1] }
  0xd2   :  { %v1287_v42 = vsel %vm6921_vm3, %v1282_v5, %v1286_v21  ;;  %v1606_v40 = vunpack.c.l.b16 %v1277_v17  ;;  %v1473_v19 = vor.u32 %v1472_v27, %v1468_v59  ;;  %v6146_v15 = vrot.slane %v7838_v18, 9 }
  0xd3   :  { %v1607_v37 = vunpack.c.l.b16 %v1287_v42  ;;  %v1464_v20 = vrot.slane %v1463_v46, 4  ;;  %v1769_v38 = vsel %vm7216_vm6, %v6138_v4, %v1768_v25  ;;  %v1770_v8 = vrot.slane %v1768_v25, 4 }
  0xd4   :  { %v1474_v41 = vrot.slane %v1473_v19, 4  ;;  %v1865_v54 = vunpack.c.l.b16 %v1769_v38  ;;  %v1824_v28 = vrot.slane %v7847_v22, 5  ;;  %v1827_v31 = vrot.slane %v7853_v57, 5 }
  0xd5   :  { %v1636_v11 = vpack.c.b16 %v1607_v37, %v1606_v40  ;;  %v1469_v18 = vsel %vm6921_vm3, %v1464_v20, %v1468_v59  ;;  %v1772_v39 = vsel %vm7216_vm6, %v1770_v8, %v1771_v50  ;;  %v1241_v49 = vshrl.u32 %v7939_v51, 16 }
  0xd6   :  { %v1479_v45 = vsel %vm6921_vm3, %v1474_v41, %v1478_v36  ;;  %v1622_v22 = vunpack.c.l.b16 %v1469_v18  ;;  %v1866_v0 = vunpack.c.l.b16 %v1772_v39  ;;  %v1825_v57 = vsel %vm7216_vm6, %v6146_v15, %v1824_v28  ;;  %v8005_v39 = vld [vmem:[%s10740_s0 + $0xc] sm:$0xf] }
  0xd7   :  { %v1660_v9 = vsel %vm150_vm0, %v1636_v11, 0  ;;  %v1623_v10 = vunpack.c.l.b16 %v1479_v45  ;;  %v1826_v2 = vrot.slane %v1824_v28, 4  ;;  %v1881_v56 = vunpack.c.l.b16 %v1825_v57 }
  0xd8   :  { %1706 = vmatpush.bf16.xpose.msra.mxu0 %v1660_v9  ;;  %v1894_v7 = vpack.c.b16 %v1866_v0, %v1865_v54  ;;  %v1243_v29 = vrot.slane %v1241_v49, 4  ;;  %v1244_v63 = vshll.u32 %v7939_v51, 16  ;;  %v1250_v55 = vshll.u32 %v7952_v52, 16 }
  0xd9   :  { %v1644_v16 = vpack.c.b16 %v1623_v10, %v1622_v22  ;;  %v1828_v34 = vsel %vm7216_vm6, %v1826_v2, %v1827_v31  ;;  %v1254_v21 = vshrl.u32 %v7952_v52, 16  ;;  %v1260_v60 = vshll.u32 %v7962_v23, 16  ;;  %v8018_v2 = vld [vmem:[%s10740_s0 + $0x10] sm:$0xf] }
  0xda   :  { %v1920_v62 = vsel %vm150_vm0, %v1894_v7, 0  ;;  %v1882_v43 = vunpack.c.l.b16 %v1828_v34  ;;  %v1246_v32 = vrot.slane %v1244_v63, 5  ;;  %v1252_v13 = vrot.slane %v1250_v55, 5  ;;  %v8028_v63 = vld [vmem:[%s10740_s0 + $0x14] sm:$0x1] }
  0xdb   :  { %v1684_v47 = vsel %vm150_vm0, %v1644_v16, 0  ;;  %1962 = vmatpush.bf16.xpose.msra.mxu2 %v1920_v62  ;;  %v1256_v44 = vrot.slane %v1254_v21, 4  ;;  %v1262_v14 = vrot.slane %v1260_v60, 5  ;;  %v1433_v12 = vshrl.u32 %v7970_v24, 16 }
  0xdc   :  { %1719 = vmatpush.bf16.xpose.msra.mxu1 %v1684_v47  ;;  %v1902_v26 = vpack.c.b16 %v1882_v43, %v1881_v56  ;;  %v1247_v59 = vor.u32 %v1246_v32, %v1243_v29  ;;  %v1436_v5 = vshll.u32 %v7970_v24, 16  ;;  %v1442_v27 = vshll.u32 %v7979_v35, 16 }
  0xdd   :  { %v1257_v36 = vor.u32 %v1256_v44, %v1252_v13  ;;  %v1435_v4 = vrot.slane %v1433_v12, 4  ;;  %v1446_v17 = vshrl.u32 %v7979_v35, 16  ;;  %v1452_v46 = vshll.u32 %v7985_v53, 16 }
  0xde   :  { %v1944_v25 = vsel %vm150_vm0, %v1902_v26, 0  ;;  %v1248_v50 = vrot.slane %v1247_v59, 4  ;;  %v1438_v42 = vrot.slane %v1436_v5, 5  ;;  %v1444_v40 = vrot.slane %v1442_v27, 5  ;;  %v8045_v26 = vld [vmem:[%s10740_s0 + $0x70] sm:$0xf] }
  0xdf   :  { %1975 = vmatpush.bf16.xpose.msra.mxu3 %v1944_v25  ;;  %v1258_v19 = vrot.slane %v1257_v36, 4  ;;  %v1448_v15 = vrot.slane %v1446_v17, 4  ;;  %v1454_v37 = vrot.slane %v1452_v46, 5  ;;  %v6137_v20 = vrot.slane %v7873_v61, 9 }
  0xe0   :  { %v1253_v38 = vsel %vm6921_vm3, %v1248_v50, %v1252_v13  ;;  %v1439_v8 = vor.u32 %v1438_v42, %v1435_v4  ;;  %v1761_v41 = vrot.slane %v7886_v6, 5  ;;  %v1764_v54 = vrot.slane %v7896_v30, 5  ;;  %v8036_v13 = vld [vmem:[%s10740_s0 + $0x6c] sm:$0xf]  ;;  %v8051_v4 = vld [vmem:[%s10740_s0 + $0x74] sm:$0x1] }
  0xe1   :  { %v1263_v28 = vsel %vm6921_vm3, %v1258_v19, %v1262_v14  ;;  %v1604_v31 = vunpack.c.l.b16 %v1253_v38  ;;  %v1449_v11 = vor.u32 %v1448_v15, %v1444_v40  ;;  %v6145_v18 = vrot.slane %v7904_v58, 9  ;;  %v6740_v42 = vld [vmem:[%s10740_s0 + $0x6c] sm:$0xff] }
  0xe2   :  { %v1605_v61 = vunpack.c.l.b16 %v1263_v28  ;;  %v1440_v49 = vrot.slane %v1439_v8, 4  ;;  %v1762_v45 = vsel %vm7216_vm6, %v6137_v20, %v1761_v41  ;;  %v1763_v6 = vrot.slane %v1761_v41, 4  ;;  %v6748_v20 = vld [vmem:[%s10740_s0 + $0xcc] sm:$0xff] }
  0xe3   :  { %v1450_v22 = vrot.slane %v1449_v11, 4  ;;  %v1863_v30 = vunpack.c.l.b16 %v1762_v45  ;;  %v1817_v0 = vrot.slane %v7913_v3, 5  ;;  %v1820_v57 = vrot.slane %v7919_v1, 5 }
  0xe4   :  { %v1635_v9 = vpack.c.b16 %v1605_v61, %v1604_v31  ;;  %v1445_v58 = vsel %vm6921_vm3, %v1440_v49, %v1444_v40  ;;  %v1765_v10 = vsel %vm7216_vm6, %v1763_v6, %v1764_v54  ;;  %v1217_v56 = vshrl.u32 %v8005_v39, 16 }
  0xe5   :  { %v1455_v7 = vsel %vm6921_vm3, %v1450_v22, %v1454_v37  ;;  %v1620_v3 = vunpack.c.l.b16 %v1445_v58  ;;  %v1864_v29 = vunpack.c.l.b16 %v1765_v10  ;;  %v1818_v1 = vsel %vm7216_vm6, %v6145_v18, %v1817_v0 }
  0xe6   :  { %v1657_v55 = vsel %vm150_vm0, %v1635_v9, 0  ;;  %v1621_v16 = vunpack.c.l.b16 %v1455_v7  ;;  %v1819_v34 = vrot.slane %v1817_v0, 4  ;;  %v1879_v21 = vunpack.c.l.b16 %v1818_v1 }
  0xe7   :  { %1707 = vmatpush.bf16.xpose.msra.mxu0 %v1657_v55  ;;  %v1893_v60 = vpack.c.b16 %v1864_v29, %v1863_v30  ;;  %v1219_v62 = vrot.slane %v1217_v56, 4  ;;  %v1220_v43 = vshll.u32 %v8005_v39, 16  ;;  %v1226_v32 = vshll.u32 %v8018_v2, 16 }
  0xe8   :  { %v1643_v47 = vpack.c.b16 %v1621_v16, %v1620_v3  ;;  %v1821_v44 = vsel %vm7216_vm6, %v1819_v34, %v1820_v57  ;;  %v1230_v14 = vshrl.u32 %v8018_v2, 16  ;;  %v1236_v12 = vshll.u32 %v8028_v63, 16 }
  0xe9   :  { %v1917_v59 = vsel %vm150_vm0, %v1893_v60, 0  ;;  %v1880_v5 = vunpack.c.l.b16 %v1821_v44  ;;  %v1222_v27 = vrot.slane %v1220_v43, 5  ;;  %v1228_v36 = vrot.slane %v1226_v32, 5 }
  0xea   :  { %v1681_v17 = vsel %vm150_vm0, %v1643_v47, 0  ;;  %1963 = vmatpush.bf16.xpose.msra.mxu2 %v1917_v59  ;;  %v1232_v46 = vrot.slane %v1230_v14, 4  ;;  %v1238_v25 = vrot.slane %v1236_v12, 5  ;;  %v1409_v50 = vshrl.u32 %v8036_v13, 16 }
  0xeb   :  { %1720 = vmatpush.bf16.xpose.msra.mxu1 %v1681_v17  ;;  %v1901_v40 = vpack.c.b16 %v1880_v5, %v1879_v21  ;;  %v1223_v19 = vor.u32 %v1222_v27, %v1219_v62  ;;  %v1412_v15 = vshll.u32 %v8036_v13, 16  ;;  %v1418_v37 = vshll.u32 %v8045_v26, 16  ;;  %v6739_v21 = vld [vmem:[%s10740_s0 + $0x60] sm:$0xff] }
  0xec   :  { %v1233_v38 = vor.u32 %v1232_v46, %v1228_v36  ;;  %v1411_v8 = vrot.slane %v1409_v50, 4  ;;  %v1422_v41 = vshrl.u32 %v8045_v26, 16  ;;  %v1428_v54 = vshll.u32 %v8051_v4, 16 }
  0xed   :  { %v1941_v28 = vsel %vm150_vm0, %v1901_v40, 0  ;;  %v1224_v31 = vrot.slane %v1223_v19, 4  ;;  %v1414_v11 = vrot.slane %v1412_v15, 5  ;;  %v1420_v18 = vrot.slane %v1418_v37, 5  ;;  %v8109_v37 = vld [vmem:[%s10740_s0 + $0x6c] sm:$0xf] }
  0xee   :  { %1976 = vmatpush.bf16.xpose.msra.mxu3 %v1941_v28  ;;  %v1234_v61 = vrot.slane %v1233_v38, 4  ;;  %v1424_v49 = vrot.slane %v1422_v41, 4  ;;  %v1430_v45 = vrot.slane %v1428_v54, 5  ;;  %v2142_v6 = vsel %vm150_vm0, %v6740_v42, 0  ;;  %v8128_v28 = vld [vmem:[%s10740_s0 + $0x74] sm:$0x1] }
  0xef   :  { %v1229_v22 = vsel %vm6921_vm3, %v1224_v31, %v1228_v36  ;;  %v1415_v30 = vor.u32 %v1414_v11, %v1411_v8  ;;  %v2166_v0 = vsel %vm150_vm0, %v6748_v20, 0  ;;  %v6136_v57 = vrot.slane %v7939_v51, 9 }
  0xf0   :  { %v1239_v9 = vsel %vm6921_vm3, %v1234_v61, %v1238_v25  ;;  %v1602_v58 = vunpack.c.l.b16 %v1229_v22  ;;  %v1425_v10 = vor.u32 %v1424_v49, %v1420_v18  ;;  %v1754_v56 = vrot.slane %v7952_v52, 5  ;;  %v6747_v52 = vld [vmem:[%s10740_s0 + $0xc0] sm:$0xff] }
  0xf1   :  { %v1603_v7 = vunpack.c.l.b16 %v1239_v9  ;;  %v1416_v3 = vrot.slane %v1415_v30, 4  ;;  %v1757_v29 = vrot.slane %v7962_v23, 5  ;;  %v6144_v1 = vrot.slane %v7970_v24, 9  ;;  %v8140_v30 = vld [vmem:[%s10740_s0 + $0xcc] sm:$0xf] }
  0xf2   :  { %v1426_v55 = vrot.slane %v1425_v10, 4  ;;  %v1755_v16 = vsel %vm7216_vm6, %v6136_v57, %v1754_v56  ;;  %v1756_v34 = vrot.slane %v1754_v56, 4  ;;  %v1810_v51 = vrot.slane %v7979_v35, 5 }
  0xf3   :  { %v1634_v60 = vpack.c.b16 %v1603_v7, %v1602_v58  ;;  %v1421_v23 = vsel %vm6921_vm3, %v1416_v3, %v1420_v18  ;;  %v1861_v24 = vunpack.c.l.b16 %v1755_v16  ;;  %v1813_v62 = vrot.slane %v7985_v53, 5  ;;  %v8150_v58 = vld [vmem:[%s10740_s0 + $0xd0] sm:$0xf] }
  0xf4   :  { %v1431_v43 = vsel %vm6921_vm3, %v1426_v55, %v1430_v45  ;;  %v1618_v32 = vunpack.c.l.b16 %v1421_v23  ;;  %v1758_v35 = vsel %vm7216_vm6, %v1756_v34, %v1757_v29  ;;  %v1811_v47 = vsel %vm7216_vm6, %v6144_v1, %v1810_v51  ;;  %v8155_v29 = vld [vmem:[%s10740_s0 + $0xd4] sm:$0x1] }
  0xf5   :  { %v1654_v44 = vsel %vm150_vm0, %v1634_v60, 0  ;;  %v1619_v14 = vunpack.c.l.b16 %v1431_v43  ;;  %v1862_v12 = vunpack.c.l.b16 %v1758_v35  ;;  %v1812_v59 = vrot.slane %v1810_v51, 4  ;;  %v6738_v51 = vld [vmem:[%s10740_s0 + $0x54] sm:$0xff] }
  0xf6   :  { %1708 = vmatpush.bf16.xpose.msra.mxu0 %v1654_v44  ;;  %v1877_v5 = vunpack.c.l.b16 %v1811_v47  ;;  %v2139_v27 = vsel %vm150_vm0, %v6739_v21, 0  ;;  %v8097_v53 = vsel %vm150_vm0, %v6747_v52, 0  ;;  %v6135_v36 = vrot.slane %v8005_v39, 9  ;;  %v8172_v47 = vld [vmem:[%s10740_s0 + $0x60] sm:$0xf] }
  0xf7   :  { %v1642_v17 = vpack.c.b16 %v1619_v14, %v1618_v32  ;;  %v1892_v46 = vpack.c.b16 %v1862_v12, %v1861_v24  ;;  %v1814_v25 = vsel %vm7216_vm6, %v1812_v59, %v1813_v62  ;;  %v1747_v50 = vrot.slane %v8018_v2, 5  ;;  %v6746_v24 = vld [vmem:[%s10740_s0 + $0xb4] sm:$0xff] }
  0xf8   :  { %v1878_v42 = vunpack.c.l.b16 %v1814_v25  ;;  %v1750_v40 = vrot.slane %v8028_v63, 5  ;;  %v6143_v19 = vrot.slane %v8036_v13, 9  ;;  %v1803_v15 = vrot.slane %v8045_v26, 5  ;;  %v8118_v63 = vld [vmem:[%s10740_s0 + $0x70] sm:$0xf] }
  0xf9   :  { %v1678_v39 = vsel %vm150_vm0, %v1642_v17, 0  ;;  %v1914_v20 = vsel %vm150_vm0, %v1892_v46, 0  ;;  %v1748_v38 = vsel %vm7216_vm6, %v6135_v36, %v1747_v50  ;;  %v1749_v2 = vrot.slane %v1747_v50, 4  ;;  %v6132_v26 = vld [vmem:[%s10741_s1 + $0x8] sm:$0x3] }
  0xfa   :  { %1721 = vmatpush.bf16.xpose.msra.mxu1 %v1678_v39  ;;  %1964 = vmatpush.bf16.xpose.msra.mxu2 %v1914_v20  ;;  %v1900_v13 = vpack.c.b16 %v1878_v42, %v1877_v5  ;;  %v1859_v8 = vunpack.c.l.b16 %v1748_v38  ;;  %v1804_v41 = vsel %vm7216_vm6, %v6143_v19, %v1803_v15  ;;  %v1805_v54 = vrot.slane %v1803_v15, 4  ;;  %v8181_v46 = vld [vmem:[%s10740_s0 + $0x64] sm:$0xf]  ;;  %v8197_v38 = vld [vmem:[%s10740_s0 + $0xc0] sm:$0xf] }
  0xfb   :  { %v1751_v31 = vsel %vm7216_vm6, %v1749_v2, %v1750_v40  ;;  %v1806_v11 = vrot.slane %v8051_v4, 5  ;;  %v1875_v18 = vunpack.c.l.b16 %v1804_v41  ;;  %v2365_v61 = vshrl.u32 %v8109_v37, 16 }
  0xfc   :  { %v1938_v49 = vsel %vm150_vm0, %v1900_v13, 0  ;;  %v1860_v45 = vunpack.c.l.b16 %v1751_v31  ;;  %v2374_v22 = vshll.u32 %v8118_v63, 16  ;;  %v2378_v57 = vshrl.u32 %v8118_v63, 16  ;;  %v6151_v13 = vld [vmem:[%s10741_s1 + $0xa] sm:$0x3] }
  0xfd   :  { %1977 = vmatpush.bf16.xpose.msra.mxu3 %v1938_v49  ;;  %6133 = vmatmul.msk.bf16.vlgmr.msra.gmra.mxu0 %vm150_vm0, %v6132_v26  ;;  %v1807_v4 = vsel %vm7216_vm6, %v1805_v54, %v1806_v11  ;;  %v2384_v9 = vshll.u32 %v8128_v28, 16  ;;  %v2557_v16 = vshrl.u32 %v8140_v30, 16  ;;  %v2560_v34 = vshll.u32 %v8140_v30, 16 }
  0xfe   :  { %2168 = vmatpush.bf16.xpose.msrb.mxu0 %v2142_v6  ;;  %v2368_v6 = vshll.u32 %v8109_v37, 16  ;;  %v1891_v10 = vpack.c.b16 %v1860_v45, %v1859_v8  ;;  %v1876_v56 = vunpack.c.l.b16 %v1807_v4  ;;  %v2376_v3 = vrot.slane %v2374_v22, 5  ;;  %v8211_v22 = vld [vmem:[%s10740_s0 + $0xc4] sm:$0xf] }
  0xff   :  { %v2380_v1 = vrot.slane %v2378_v57, 4  ;;  %v2386_v55 = vrot.slane %v2384_v9, 5  ;;  %v2566_v23 = vshll.u32 %v8150_v58, 16  ;;  %v2559_v43 = vrot.slane %v2557_v16, 4  ;;  %v8219_v9 = vld [vmem:[%s10740_s0 + $0xc8] sm:$0x1] }
 0x100   :  { %v2370_v7 = vrot.slane %v2368_v6, 5  ;;  %v1911_v21 = vsel %vm150_vm0, %v1891_v10, 0  ;;  %v1899_v52 = vpack.c.b16 %v1876_v56, %v1875_v18  ;;  %v2562_v32 = vrot.slane %v2560_v34, 5  ;;  %v6737_v56 = vld [vmem:[%s10740_s0 + $0x48] sm:$0xff] }
 0x101   :  { %6134 = vmatmul.msk.bf16.vlgmr.msra.gmra.mxu1 %vm150_vm0, %v6132_v26  ;;  %v2381_v62 = vor.u32 %v2380_v1, %v2376_v3  ;;  %v2570_v35 = vshrl.u32 %v8150_v58, 16  ;;  %v2568_v12 = vrot.slane %v2566_v23, 5  ;;  %v2576_v59 = vshll.u32 %v8155_v29, 16 }
 0x102   :  { %2181 = vmatpush.bf16.xpose.msrb.mxu1 %v2166_v0  ;;  %v2367_v0 = vrot.slane %v2365_v61, 4  ;;  %1965 = vmatpush.bf16.xpose.msra.mxu2 %v1911_v21  ;;  %v1935_v44 = vsel %vm150_vm0, %v1899_v52, 0  ;;  %v2136_v17 = vsel %vm150_vm0, %v6738_v51, 0  ;;  %v2160_v42 = vsel %vm150_vm0, %v6746_v24, 0  ;;  %v6745_v52 = vld [vmem:[%s10740_s0 + $0xa8] sm:$0xff] }
 0x103   :  { %v2382_v5 = vrot.slane %v2381_v62, 4  ;;  %v2572_v36 = vrot.slane %v2570_v35, 4  ;;  %v2578_v50 = vrot.slane %v2576_v59, 5  ;;  %v2341_v40 = vshrl.u32 %v8172_v47, 16 }
 0x104   :  { %v2371_v60 = vor.u32 %v2370_v7, %v2367_v0  ;;  %v2344_v8 = vshll.u32 %v8172_v47, 16  ;;  %v2350_v41 = vshll.u32 %v8181_v46, 16  ;;  %v2354_v11 = vshrl.u32 %v8181_v46, 16 }
 0x105   :  { %1978 = vmatpush.bf16.xpose.msra.mxu3 %v1935_v44  ;;  %v2387_v19 = vsel %vm6921_vm3, %v2382_v5, %v2386_v55  ;;  %v2573_v20 = vor.u32 %v2572_v36, %v2568_v12  ;;  %v2343_v26 = vrot.slane %v2341_v40, 4  ;;  %v2533_v10 = vshrl.u32 %v8197_v38, 16  ;;  %v8246_v36 = vld [vmem:[%s10740_s0 + $0x58] sm:$0xf] }
 0x106   :  { %2169 = vmatpush.bf16.xpose.msrb.mxu0 %v2139_v27  ;;  %v2372_v14 = vrot.slane %v2371_v60, 4  ;;  %v2563_v27 = vor.u32 %v2562_v32, %v2559_v43  ;;  %v2597_v2 = vunpack.c.l.b16 %v2387_v19  ;;  %v2346_v45 = vrot.slane %v2344_v8, 5 }
 0x107   :  { %v2574_v31 = vrot.slane %v2573_v20, 4  ;;  %v2352_v6 = vrot.slane %v2350_v41, 5  ;;  %v2356_v0 = vrot.slane %v2354_v11, 4  ;;  %v2536_v55 = vshll.u32 %v8197_v38, 16 }
 0x108   :  { %v2377_v25 = vsel %vm6921_vm3, %v2372_v14, %v2376_v3  ;;  %v2564_v39 = vrot.slane %v2563_v27, 4  ;;  %v2347_v1 = vor.u32 %v2346_v45, %v2343_v26  ;;  %v2535_v34 = vrot.slane %v2533_v10, 4  ;;  %v8238_v14 = vld [vmem:[%s10740_s0 + $0x54] sm:$0xf] }
 0x109   :  { %v2596_v15 = vunpack.c.l.b16 %v2377_v25  ;;  %v2579_v4 = vsel %vm6921_vm3, %v2574_v31, %v2578_v50  ;;  %6152 = vmatmul.msk.bf16.vlgmr.msra.gmra.mxu2 %vm150_vm0, %v6151_v13  ;;  %v2357_v16 = vor.u32 %v2356_v0, %v2352_v6  ;;  %v2542_v51 = vshll.u32 %v8211_v22, 16  ;;  %v8278_v0 = vld [vmem:[%s10740_s0 + $0xbc] sm:$0x1] }
 0x10a   :  { %2182 = vmatpush.bf16.xpose.msrb.mxu1 %v8097_v53  ;;  %v8189_v53 = vld [vmem:[%s10740_s0 + $0x68] sm:$0x1]  ;;  %v2569_v54 = vsel %vm6921_vm3, %v2564_v39, %v2568_v12  ;;  %v2613_v3 = vunpack.c.l.b16 %v2579_v4  ;;  %v2546_v21 = vshrl.u32 %v8211_v22, 16  ;;  %v2348_v23 = vrot.slane %v2347_v1, 4 }
 0x10b   :  { %v2360_v18 = vshll.u32 %v8189_v53, 16  ;;  %v2621_v61 = vpack.c.b16 %v2597_v2, %v2596_v15  ;;  %v2612_v49 = vunpack.c.l.b16 %v2569_v54  ;;  %v2538_v24 = vrot.slane %v2536_v55, 5 }
 0x10c   :  { %6153 = vmatmul.msk.bf16.vlgmr.msra.gmra.mxu3 %vm150_vm0, %v6151_v13  ;;  %v2552_v62 = vshll.u32 %v8219_v9, 16  ;;  %v2358_v43 = vrot.slane %v2357_v16, 4  ;;  %v2544_v32 = vrot.slane %v2542_v51, 5  ;;  %v2548_v35 = vrot.slane %v2546_v21, 4 }
 0x10d   :  { %v2362_v57 = vrot.slane %v2360_v18, 5  ;;  %v2655_v7 = vsel %vm150_vm0, %v2621_v61, 0  ;;  %v2629_v60 = vpack.c.b16 %v2613_v3, %v2612_v49  ;;  %v2133_v44 = vsel %vm150_vm0, %v6737_v56, 0  ;;  %v8266_v18 = vld [vmem:[%s10740_s0 + $0xb4] sm:$0xf] }
 0x10e   :  { %2170 = vmatpush.bf16.xpose.msrb.mxu0 %v2136_v17  ;;  %2681 = vmatpush.bf16.xpose.msrb.mxu2 %v2655_v7  ;;  %v2353_v59 = vsel %vm6921_vm3, %v2348_v23, %v2352_v6  ;;  %v2539_v5 = vor.u32 %v2538_v24, %v2535_v34  ;;  %v2554_v27 = vrot.slane %v2552_v62, 5  ;;  %v8251_v17 = vld [vmem:[%s10740_s0 + $0x5c] sm:$0x1]  ;;  %v2157_v40 = vsel %vm150_vm0, %v6745_v52, 0  ;;  %v8271_v61 = vld [vmem:[%s10740_s0 + $0xb8] sm:$0xf] }
 0x10f   :  { %v2679_v12 = vsel %vm150_vm0, %v2629_v60, 0  ;;  %v2363_v25 = vsel %vm6921_vm3, %v2358_v43, %v2362_v57  ;;  %v2594_v50 = vunpack.c.l.b16 %v2353_v59  ;;  %v2317_v39 = vshrl.u32 %v8238_v14, 16  ;;  %v6736_v34 = vld [vmem:[%s10740_s0 + $0x3c] sm:$0xff] }
 0x110   :  { %2694 = vmatpush.bf16.xpose.msrb.mxu3 %v2679_v12  ;;  %v2595_v19 = vunpack.c.l.b16 %v2363_v25  ;;  %v2540_v15 = vrot.slane %v2539_v5, 4  ;;  %v2320_v20 = vshll.u32 %v8238_v14, 16  ;;  %v2326_v13 = vshll.u32 %v8246_v36, 16  ;;  %v6744_v23 = vld [vmem:[%s10740_s0 + $0x9c] sm:$0xff] }
 0x111   :  { %v2330_v26 = vshrl.u32 %v8246_v36, 16  ;;  %v2336_v8 = vshll.u32 %v8251_v17, 16  ;;  %v2319_v31 = vrot.slane %v2317_v39, 4  ;;  %v2509_v1 = vshrl.u32 %v8266_v18, 16 }
 0x112   :  { %2183 = vmatpush.bf16.xpose.msrb.mxu1 %v2160_v42  ;;  %v2549_v42 = vor.u32 %v2548_v35, %v2544_v32  ;;  %v2620_v41 = vpack.c.b16 %v2595_v19, %v2594_v50  ;;  %v2545_v54 = vsel %vm6921_vm3, %v2540_v15, %v2544_v32  ;;  %v2322_v11 = vrot.slane %v2320_v20, 5  ;;  %v8295_v35 = vld [vmem:[%s10740_s0 + $0x48] sm:$0xf]  ;;  %v8311_v19 = vld [vmem:[%s10740_s0 + $0x50] sm:$0x1] }
 0x113   :  { %v2610_v45 = vunpack.c.l.b16 %v2545_v54  ;;  %v2328_v6 = vrot.slane %v2326_v13, 5  ;;  %v2332_v4 = vrot.slane %v2330_v26, 4  ;;  %v2338_v7 = vrot.slane %v2336_v8, 5  ;;  %v8321_v54 = vld [vmem:[%s10740_s0 + $0xa8] sm:$0xf] }
 0x114   :  { %v2550_v2 = vrot.slane %v2549_v42, 4  ;;  %v2652_v57 = vsel %vm150_vm0, %v2620_v41, 0  ;;  %v2323_v56 = vor.u32 %v2322_v11, %v2319_v31  ;;  %v2512_v55 = vshll.u32 %v8266_v18, 16 }
 0x115   :  { %v2333_v3 = vor.u32 %v2332_v4, %v2328_v6  ;;  %v2518_v16 = vshll.u32 %v8271_v61, 16  ;;  %v2522_v52 = vshrl.u32 %v8271_v61, 16  ;;  %v2528_v60 = vshll.u32 %v8278_v0, 16 }
 0x116   :  { %2171 = vmatpush.bf16.xpose.msrb.mxu0 %v2133_v44  ;;  %v2555_v49 = vsel %vm6921_vm3, %v2550_v2, %v2554_v27  ;;  %2682 = vmatpush.bf16.xpose.msrb.mxu2 %v2652_v57  ;;  %v2324_v21 = vrot.slane %v2323_v56, 4  ;;  %v2511_v62 = vrot.slane %v2509_v1, 4  ;;  %v2514_v43 = vrot.slane %v2512_v55, 5  ;;  %v8303_v27 = vld [vmem:[%s10740_s0 + $0x4c] sm:$0xf] }
 0x117   :  { %v2611_v10 = vunpack.c.l.b16 %v2555_v49  ;;  %v2334_v24 = vrot.slane %v2333_v3, 4  ;;  %v2520_v32 = vrot.slane %v2518_v16, 5  ;;  %v2524_v59 = vrot.slane %v2522_v52, 4 }
 0x118   :  { %v2329_v12 = vsel %vm6921_vm3, %v2324_v21, %v2328_v6  ;;  %v2530_v5 = vrot.slane %v2528_v60, 5  ;;  %v2515_v42 = vor.u32 %v2514_v43, %v2511_v62  ;;  %v2154_v20 = vsel %vm150_vm0, %v6744_v23, 0  ;;  %v8327_v6 = vld [vmem:[%s10740_s0 + $0xac] sm:$0xf]  ;;  %v6735_v60 = vld [vmem:[%s10740_s0 + $0x30] sm:$0xff] }
 0x119   :  { %v2628_v51 = vpack.c.b16 %v2611_v10, %v2610_v45  ;;  %v2339_v25 = vsel %vm6921_vm3, %v2334_v24, %v2338_v7  ;;  %v2592_v50 = vunpack.c.l.b16 %v2329_v12  ;;  %v2525_v39 = vor.u32 %v2524_v59, %v2520_v32  ;;  %v8334_v7 = vld [vmem:[%s10740_s0 + $0xb0] sm:$0x1] }
 0x11a   :  { %2184 = vmatpush.bf16.xpose.msrb.mxu1 %v2157_v40  ;;  %v2130_v40 = vsel %vm150_vm0, %v6736_v34, 0  ;;  %v2593_v15 = vunpack.c.l.b16 %v2339_v25  ;;  %v2293_v2 = vshrl.u32 %v8295_v35, 16  ;;  %v2516_v13 = vrot.slane %v2515_v42, 4  ;;  %v8353_v25 = vld [vmem:[%s10740_s0 + $0x3c] sm:$0xf] }
 0x11b   :  { %v2676_v44 = vsel %vm150_vm0, %v2628_v51, 0  ;;  %v2296_v26 = vshll.u32 %v8295_v35, 16  ;;  %v2302_v8 = vshll.u32 %v8303_v27, 16  ;;  %v2306_v41 = vshrl.u32 %v8303_v27, 16 }
 0x11c   :  { %2695 = vmatpush.bf16.xpose.msrb.mxu3 %v2676_v44  ;;  %v2619_v31 = vpack.c.b16 %v2593_v15, %v2592_v50  ;;  %v2526_v11 = vrot.slane %v2525_v39, 4  ;;  %v2295_v49 = vrot.slane %v2293_v2, 4  ;;  %v2312_v45 = vshll.u32 %v8311_v19, 16  ;;  %v8358_v39 = vld [vmem:[%s10740_s0 + $0x40] sm:$0xf] }
 0x11d   :  { %v2521_v4 = vsel %vm6921_vm3, %v2516_v13, %v2520_v32  ;;  %v2298_v57 = vrot.slane %v2296_v26, 5  ;;  %v2304_v10 = vrot.slane %v2302_v8, 5  ;;  %v2308_v56 = vrot.slane %v2306_v41, 4 }
 0x11e   :  { %2172 = vmatpush.bf16.xpose.msrb.mxu0 %v2130_v40  ;;  %v2649_v3 = vsel %vm150_vm0, %v2619_v31, 0  ;;  %v2531_v1 = vsel %vm6921_vm3, %v2526_v11, %v2530_v5  ;;  %v2608_v55 = vunpack.c.l.b16 %v2521_v4  ;;  %v2314_v16 = vrot.slane %v2312_v45, 5  ;;  %v6743_v5 = vld [vmem:[%s10740_s0 + $0x90] sm:$0xff] }
 0x11f   :  { %2683 = vmatpush.bf16.xpose.msrb.mxu2 %v2649_v3  ;;  %v2609_v34 = vunpack.c.l.b16 %v2531_v1  ;;  %v2299_v51 = vor.u32 %v2298_v57, %v2295_v49  ;;  %v2309_v21 = vor.u32 %v2308_v56, %v2304_v10  ;;  %v2485_v52 = vshrl.u32 %v8321_v54, 16  ;;  %v8369_v49 = vld [vmem:[%s10740_s0 + $0x44] sm:$0x1] }
 0x120   :  { %v2488_v23 = vshll.u32 %v8321_v54, 16  ;;  %v2494_v24 = vshll.u32 %v8327_v6, 16  ;;  %v2498_v62 = vshrl.u32 %v8327_v6, 16  ;;  %v2504_v43 = vshll.u32 %v8334_v7, 16 }
 0x121   :  { %v2627_v32 = vpack.c.b16 %v2609_v34, %v2608_v55  ;;  %v2300_v44 = vrot.slane %v2299_v51, 4  ;;  %v2310_v12 = vrot.slane %v2309_v21, 4  ;;  %v2487_v59 = vrot.slane %v2485_v52, 4 }
 0x122   :  { %2185 = vmatpush.bf16.xpose.msrb.mxu1 %v2154_v20  ;;  %v2490_v50 = vrot.slane %v2488_v23, 5  ;;  %v2496_v42 = vrot.slane %v2494_v24, 5  ;;  %v2500_v40 = vrot.slane %v2498_v62, 4  ;;  %v2506_v15 = vrot.slane %v2504_v43, 5 }
 0x123   :  { %v2673_v20 = vsel %vm150_vm0, %v2627_v32, 0  ;;  %v2305_v2 = vsel %vm6921_vm3, %v2300_v44, %v2304_v10  ;;  %v2315_v13 = vsel %vm6921_vm3, %v2310_v12, %v2314_v16  ;;  %v2127_v26 = vsel %vm150_vm0, %v6735_v60, 0  ;;  %v8379_v16 = vld [vmem:[%s10740_s0 + $0x9c] sm:$0xf]  ;;  %v8385_v60 = vld [vmem:[%s10740_s0 + $0xa0] sm:$0xf] }
 0x124   :  { %2696 = vmatpush.bf16.xpose.msrb.mxu3 %v2673_v20  ;;  %v2590_v8 = vunpack.c.l.b16 %v2305_v2  ;;  %v2591_v41 = vunpack.c.l.b16 %v2315_v13  ;;  %v2491_v31 = vor.u32 %v2490_v50, %v2487_v59  ;;  %v2501_v11 = vor.u32 %v2500_v40, %v2496_v42  ;;  %v8395_v32 = vld [vmem:[%s10740_s0 + $0xa4] sm:$0x1] }
 0x125   :  { %v2151_v45 = vsel %vm150_vm0, %v6743_v5, 0  ;;  %v2269_v4 = vshrl.u32 %v8353_v25, 16  ;;  %v2272_v57 = vshll.u32 %v8353_v25, 16  ;;  %v2278_v10 = vshll.u32 %v8358_v39, 16 }
 0x126   :  { %2173 = vmatpush.bf16.xpose.msrb.mxu0 %v2127_v26  ;;  %v2618_v56 = vpack.c.b16 %v2591_v41, %v2590_v8  ;;  %v2492_v3 = vrot.slane %v2491_v31, 4  ;;  %v2502_v1 = vrot.slane %v2501_v11, 4  ;;  %v2282_v55 = vshrl.u32 %v8358_v39, 16  ;;  %v6742_v41 = vld [vmem:[%s10740_s0 + $0x84] sm:$0xff] }
 0x127   :  { %v2271_v34 = vrot.slane %v2269_v4, 4  ;;  %v2274_v51 = vrot.slane %v2272_v57, 5  ;;  %v2280_v21 = vrot.slane %v2278_v10, 5  ;;  %v2288_v52 = vshll.u32 %v8369_v49, 16  ;;  %v8411_v57 = vld [vmem:[%s10740_s0 + $0x30] sm:$0xf] }
 0x128   :  { %v2646_v23 = vsel %vm150_vm0, %v2618_v56, 0  ;;  %v2497_v24 = vsel %vm6921_vm3, %v2492_v3, %v2496_v42  ;;  %v2507_v62 = vsel %vm6921_vm3, %v2502_v1, %v2506_v15  ;;  %v2284_v43 = vrot.slane %v2282_v55, 4  ;;  %v6734_v15 = vld [vmem:[%s10740_s0 + $0x24] sm:$0xff]  ;;  %v8419_v55 = vld [vmem:[%s10740_s0 + $0x34] sm:$0xf] }
 0x129   :  { %2684 = vmatpush.bf16.xpose.msrb.mxu2 %v2646_v23  ;;  %v2606_v44 = vunpack.c.l.b16 %v2497_v24  ;;  %v2607_v12 = vunpack.c.l.b16 %v2507_v62  ;;  %v2275_v59 = vor.u32 %v2274_v51, %v2271_v34  ;;  %v2290_v5 = vrot.slane %v2288_v52, 5  ;;  %v8427_v24 = vld [vmem:[%s10740_s0 + $0x38] sm:$0x1] }
 0x12a   :  { %2186 = vmatpush.bf16.xpose.msrb.mxu1 %v2151_v45  ;;  %v2285_v50 = vor.u32 %v2284_v43, %v2280_v21  ;;  %v2461_v40 = vshrl.u32 %v8379_v16, 16  ;;  %v2464_v20 = vshll.u32 %v8379_v16, 16  ;;  %v2470_v42 = vshll.u32 %v8385_v60, 16 }
 0x12b   :  { %v2626_v2 = vpack.c.b16 %v2607_v12, %v2606_v44  ;;  %v2276_v13 = vrot.slane %v2275_v59, 4  ;;  %v2474_v26 = vshrl.u32 %v8385_v60, 16  ;;  %v2480_v8 = vshll.u32 %v8395_v32, 16 }
 0x12c   :  { %v2286_v31 = vrot.slane %v2285_v50, 4  ;;  %v2463_v11 = vrot.slane %v2461_v40, 4  ;;  %v2466_v45 = vrot.slane %v2464_v20, 5  ;;  %v2472_v4 = vrot.slane %v2470_v42, 5  ;;  %v8437_v40 = vld [vmem:[%s10740_s0 + $0x90] sm:$0xf] }
 0x12d   :  { %v2670_v10 = vsel %vm150_vm0, %v2626_v2, 0  ;;  %v2281_v56 = vsel %vm6921_vm3, %v2276_v13, %v2280_v21  ;;  %v2476_v3 = vrot.slane %v2474_v26, 4  ;;  %v2482_v1 = vrot.slane %v2480_v8, 5  ;;  %v8443_v13 = vld [vmem:[%s10740_s0 + $0x94] sm:$0xf] }
 0x12e   :  { %2697 = vmatpush.bf16.xpose.msrb.mxu3 %v2670_v10  ;;  %v2291_v34 = vsel %vm6921_vm3, %v2286_v31, %v2290_v5  ;;  %v2588_v51 = vunpack.c.l.b16 %v2281_v56  ;;  %v2467_v52 = vor.u32 %v2466_v45, %v2463_v11  ;;  %v2124_v23 = vsel %vm150_vm0, %v6734_v15, 0  ;;  %v8450_v11 = vld [vmem:[%s10740_s0 + $0x98] sm:$0x1] }
 0x12f   :  { %v2589_v21 = vunpack.c.l.b16 %v2291_v34  ;;  %v2477_v62 = vor.u32 %v2476_v3, %v2472_v4  ;;  %2174 = vmatpush.bf16.xpose.msrb.mxu0 %v2124_v23  ;;  %v2148_v43 = vsel %vm150_vm0, %v6742_v41, 0  ;;  %v2245_v44 = vshrl.u32 %v8411_v57, 16  ;;  %v6733_v23 = vld [vmem:[%s10740_s0 + $0x18] sm:$0xff] }
 0x130   :  { %v2468_v12 = vrot.slane %v2467_v52, 4  ;;  %v2248_v59 = vshll.u32 %v8411_v57, 16  ;;  %v2254_v5 = vshll.u32 %v8419_v55, 16  ;;  %v2258_v50 = vshrl.u32 %v8419_v55, 16 }
 0x131   :  { %v2617_v20 = vpack.c.b16 %v2589_v21, %v2588_v51  ;;  %v2478_v42 = vrot.slane %v2477_v62, 4  ;;  %v2247_v15 = vrot.slane %v2245_v44, 4  ;;  %v2264_v2 = vshll.u32 %v8427_v24, 16 }
 0x132   :  { %2187 = vmatpush.bf16.xpose.msrb.mxu1 %v2148_v43  ;;  %v2473_v26 = vsel %vm6921_vm3, %v2468_v12, %v2472_v4  ;;  %v2250_v8 = vrot.slane %v2248_v59, 5  ;;  %v2256_v41 = vrot.slane %v2254_v5, 5  ;;  %v2260_v31 = vrot.slane %v2258_v50, 4  ;;  %v6741_v50 = vld [vmem:[%s10740_s0 + $0x78] sm:$0xff] }
 0x133   :  { %v2643_v45 = vsel %vm150_vm0, %v2617_v20, 0  ;;  %v2483_v10 = vsel %vm6921_vm3, %v2478_v42, %v2482_v1  ;;  %v2604_v56 = vunpack.c.l.b16 %v2473_v26  ;;  %v2266_v3 = vrot.slane %v2264_v2, 5 }
 0x134   :  { %2685 = vmatpush.bf16.xpose.msrb.mxu2 %v2643_v45  ;;  %v2605_v34 = vunpack.c.l.b16 %v2483_v10  ;;  %v2251_v51 = vor.u32 %v2250_v8, %v2247_v15  ;;  %v2261_v52 = vor.u32 %v2260_v31, %v2256_v41  ;;  %v2437_v4 = vshrl.u32 %v8437_v40, 16 }
 0x135   :  { %v2440_v21 = vshll.u32 %v8437_v40, 16  ;;  %v2446_v62 = vshll.u32 %v8443_v13, 16  ;;  %v2450_v43 = vshrl.u32 %v8443_v13, 16  ;;  %v2456_v1 = vshll.u32 %v8450_v11, 16 }
 0x136   :  { %v2625_v44 = vpack.c.b16 %v2605_v34, %v2604_v56  ;;  %v2252_v12 = vrot.slane %v2251_v51, 4  ;;  %v2262_v59 = vrot.slane %v2261_v52, 4  ;;  %v2439_v5 = vrot.slane %v2437_v4, 4 }
 0x137   :  { %v2442_v20 = vrot.slane %v2440_v21, 5  ;;  %v2448_v42 = vrot.slane %v2446_v62, 5  ;;  %v2452_v15 = vrot.slane %v2450_v43, 4  ;;  %v2458_v2 = vrot.slane %v2456_v1, 5 }
 0x138   :  { %v2667_v26 = vsel %vm150_vm0, %v2625_v44, 0  ;;  %v2257_v8 = vsel %vm6921_vm3, %v2252_v12, %v2256_v41  ;;  %v2267_v31 = vsel %vm6921_vm3, %v2262_v59, %v2266_v3  ;;  %v2121_v45 = vsel %vm150_vm0, %v6733_v23, 0 }
 0x139   :  { %2698 = vmatpush.bf16.xpose.msrb.mxu3 %v2667_v26  ;;  %v2586_v10 = vunpack.c.l.b16 %v2257_v8  ;;  %v2587_v56 = vunpack.c.l.b16 %v2267_v31  ;;  %v2443_v34 = vor.u32 %v2442_v20, %v2439_v5  ;;  %v2453_v51 = vor.u32 %v2452_v15, %v2448_v42  ;;  %2175 = vmatpush.bf16.xpose.msrb.mxu0 %v2121_v45 }
 0x13a   :  { %v2145_v52 = vsel %vm150_vm0, %v6741_v50, 0  ;;  %v6279_v4 = vrot.slane %v8109_v37, 9  ;;  %v2776_v21 = vrot.slane %v8118_v63, 5  ;;  %v2779_v62 = vrot.slane %v8128_v28, 5  ;;  %v8484_v37 = vld [vmem:[%s10740_s0 + $0x24] sm:$0xf] }
 0x13b   :  { %v2616_v41 = vpack.c.b16 %v2587_v56, %v2586_v10  ;;  %v2444_v43 = vrot.slane %v2443_v34, 4  ;;  %v2454_v1 = vrot.slane %v2453_v51, 4  ;;  %2188 = vmatpush.bf16.xpose.msrb.mxu1 %v2145_v52  ;;  %v6287_v3 = vrot.slane %v8140_v30, 9  ;;  %v8515_v52 = vld [vmem:[%s10740_s0 + $0x84] sm:$0xf] }
 0x13c   :  { %v2777_v23 = vsel %vm7216_vm6, %v6279_v4, %v2776_v21  ;;  %v2778_v44 = vrot.slane %v2776_v21, 4  ;;  %v2832_v12 = vrot.slane %v8150_v58, 5  ;;  %v2835_v59 = vrot.slane %v8155_v29, 5  ;;  %v8494_v58 = vld [vmem:[%s10740_s0 + $0x28] sm:$0xf] }
 0x13d   :  { %v2640_v63 = vsel %vm150_vm0, %v2616_v41, 0  ;;  %v2449_v28 = vsel %vm6921_vm3, %v2444_v43, %v2448_v42  ;;  %v2459_v30 = vsel %vm6921_vm3, %v2454_v1, %v2458_v2  ;;  %v2853_v5 = vunpack.c.l.b16 %v2777_v23  ;;  %v6202_v29 = vld [vmem:[%s10741_s1 + $0xc] sm:$0x3]  ;;  %v8524_v43 = vld [vmem:[%s10740_s0 + $0x88] sm:$0xf] }
 0x13e   :  { %2686 = vmatpush.bf16.xpose.msrb.mxu2 %v2640_v63  ;;  %v2602_v50 = vunpack.c.l.b16 %v2449_v28  ;;  %v2603_v20 = vunpack.c.l.b16 %v2459_v30  ;;  %v2780_v15 = vsel %vm7216_vm6, %v2778_v44, %v2779_v62  ;;  %v2833_v42 = vsel %vm7216_vm6, %v6287_v3, %v2832_v12  ;;  %v8506_v2 = vld [vmem:[%s10740_s0 + $0x2c] sm:$0x1] }
 0x13f   :  { %v2854_v26 = vunpack.c.l.b16 %v2780_v15  ;;  %v2834_v8 = vrot.slane %v2832_v12, 4  ;;  %v2869_v31 = vunpack.c.l.b16 %v2833_v42  ;;  %v2221_v45 = vshrl.u32 %v8484_v37, 16  ;;  %v8530_v12 = vld [vmem:[%s10740_s0 + $0x8c] sm:$0x1] }
 0x140   :  { %v2624_v10 = vpack.c.b16 %v2603_v20, %v2602_v50  ;;  %v2224_v56 = vshll.u32 %v8484_v37, 16  ;;  %v2230_v34 = vshll.u32 %v8494_v58, 16  ;;  %v2234_v51 = vshrl.u32 %v8494_v58, 16  ;;  %6267 = vmatmul.msk.bf16.vlgmr.msrb.gmra.mxu0 %vm150_vm0, %v6202_v29  ;;  %v8537_v50 = vpop.f32.mrf.mxu1 }
 0x141   :  { %v2878_v4 = vpack.c.b16 %v2854_v26, %v2853_v5  ;;  %v2836_v21 = vsel %vm7216_vm6, %v2834_v8, %v2835_v59  ;;  %v2223_v62 = vrot.slane %v2221_v45, 4  ;;  %v2240_v41 = vshll.u32 %v8506_v2, 16  ;;  %v8535_v5 = vpop.f32.mrf.mxu0 }
 0x142   :  { %v2664_v1 = vsel %vm150_vm0, %v2624_v10, 0  ;;  %v2870_v3 = vunpack.c.l.b16 %v2836_v21  ;;  %v2226_v23 = vrot.slane %v2224_v56, 5  ;;  %v2232_v44 = vrot.slane %v2230_v34, 5  ;;  %6268 = vmatmul.msk.bf16.vlgmr.msrb.gmra.mxu1 %vm150_vm0, %v6202_v29 }
 0x143   :  { %2699 = vmatpush.bf16.xpose.msrb.mxu3 %v2664_v1  ;;  %v2912_v59 = vsel %vm150_vm0, %v2878_v4, 0  ;;  %v2236_v63 = vrot.slane %v2234_v51, 4  ;;  %v2242_v28 = vrot.slane %v2240_v41, 5  ;;  %v2413_v30 = vshrl.u32 %v8515_v52, 16 }
 0x144   :  { %2938 = vmatpush.bf16.xpose.msra.mxu0 %v2912_v59  ;;  %v2886_v20 = vpack.c.b16 %v2870_v3, %v2869_v31  ;;  %v2227_v15 = vor.u32 %v2226_v23, %v2223_v62  ;;  %v2416_v42 = vshll.u32 %v8515_v52, 16  ;;  %v2422_v26 = vshll.u32 %v8524_v43, 16 }
 0x145   :  { %v2237_v8 = vor.u32 %v2236_v63, %v2232_v44  ;;  %v2415_v29 = vrot.slane %v2413_v30, 4  ;;  %v2426_v45 = vshrl.u32 %v8524_v43, 16  ;;  %v2432_v10 = vshll.u32 %v8530_v12, 16 }
 0x146   :  { %v2936_v56 = vsel %vm150_vm0, %v2886_v20, 0  ;;  %v2228_v34 = vrot.slane %v2227_v15, 4  ;;  %v2418_v51 = vrot.slane %v2416_v42, 5  ;;  %v2424_v4 = vrot.slane %v2422_v26, 5  ;;  %v8555_v42 = vld [vmem:[%s10740_s0 + $0x18] sm:$0xf] }
 0x147   :  { %2951 = vmatpush.bf16.xpose.msra.mxu1 %v2936_v56  ;;  %v2238_v21 = vrot.slane %v2237_v8, 4  ;;  %v2428_v41 = vrot.slane %v2426_v45, 4  ;;  %v2434_v31 = vrot.slane %v2432_v10, 5  ;;  %v6278_v62 = vrot.slane %v8172_v47, 9  ;;  %v8557_v47 = vpop.f32.mrf.mxu2 }
 0x148   :  { %v2233_v1 = vsel %vm6921_vm3, %v2228_v34, %v2232_v44  ;;  %v2419_v3 = vor.u32 %v2418_v51, %v2415_v29  ;;  %v2769_v23 = vrot.slane %v8181_v46, 5  ;;  %v2772_v59 = vrot.slane %v8189_v53, 5  ;;  %v8559_v44 = vpop.f32.mrf.mxu3  ;;  %v226_v56 = vpop.f32.mrf.mxu1 }
 0x149   :  { %v2243_v63 = vsel %vm6921_vm3, %v2238_v21, %v2242_v28  ;;  %v2584_v30 = vunpack.c.l.b16 %v2233_v1  ;;  %v2429_v20 = vor.u32 %v2428_v41, %v2424_v4  ;;  %v6286_v15 = vrot.slane %v8197_v38, 9  ;;  %v213_v10 = vpop.f32.mrf.mxu0  ;;  %v8572_v41 = vld [vmem:[%s10740_s0 + $0x1c] sm:$0xf] }
 0x14a   :  { %v2585_v26 = vunpack.c.l.b16 %v2243_v63  ;;  %v2420_v46 = vrot.slane %v2419_v3, 4  ;;  %v2770_v53 = vsel %vm7216_vm6, %v6278_v62, %v2769_v23  ;;  %v2771_v8 = vrot.slane %v2769_v23, 4  ;;  %10756 = vst [vmem:[#allocation5_spill] sm:$0xff] %v8572_v41 }
 0x14b   :  { %v2430_v28 = vrot.slane %v2429_v20, 4  ;;  %v2851_v29 = vunpack.c.l.b16 %v2770_v53  ;;  %v2825_v45 = vrot.slane %v8211_v22, 5  ;;  %v2828_v38 = vrot.slane %v8219_v9, 5 }
 0x14c   :  { %v2615_v34 = vpack.c.b16 %v2585_v26, %v2584_v30  ;;  %v2425_v51 = vsel %vm6921_vm3, %v2420_v46, %v2424_v4  ;;  %v2773_v21 = vsel %vm7216_vm6, %v2771_v8, %v2772_v59  ;;  %v2197_v62 = vshrl.u32 %v8555_v42, 16  ;;  %v8582_v4 = vld [vmem:[%s10740_s0 + $0x20] sm:$0x1] }
 0x14d   :  { %v2435_v22 = vsel %vm6921_vm3, %v2430_v28, %v2434_v31  ;;  %v2600_v9 = vunpack.c.l.b16 %v2425_v51  ;;  %v2852_v1 = vunpack.c.l.b16 %v2773_v21  ;;  %v2826_v3 = vsel %vm7216_vm6, %v6286_v15, %v2825_v45  ;;  %10757 = vst [vmem:[#allocation6_spill] sm:$0xff] %v8582_v4  ;;  %v8590_v15 = vld [vmem:[%s10740_s0 + $0x78] sm:$0xf]  ;;  %v8605_v21 = vld [vmem:[%s10740_s0 + $0x80] sm:$0x1] }
 0x14e   :  { %v2637_v23 = vsel %vm150_vm0, %v2615_v34, 0  ;;  %v2601_v59 = vunpack.c.l.b16 %v2435_v22  ;;  %v2827_v63 = vrot.slane %v2825_v45, 4  ;;  %v2867_v30 = vunpack.c.l.b16 %v2826_v3  ;;  %10758 = vst [vmem:[#allocation7_spill] sm:$0xff] %v8590_v15 }
 0x14f   :  { %2687 = vmatpush.bf16.xpose.msrb.mxu2 %v2637_v23  ;;  %v2877_v20 = vpack.c.b16 %v2852_v1, %v2851_v29  ;;  %v2199_v26 = vrot.slane %v2197_v62, 4  ;;  %v2200_v31 = vshll.u32 %v8555_v42, 16  ;;  %v2206_v46 = vshll.u32 %v8572_v41, 16  ;;  %v8599_v29 = vld [vmem:[%s10740_s0 + $0x7c] sm:$0xf]  ;;  %v6756_v23 = vld [vmem:[%s10740_s0 + $0x12c] sm:$0xff] }
 0x150   :  { %v2623_v53 = vpack.c.b16 %v2601_v59, %v2600_v9  ;;  %v2829_v8 = vsel %vm7216_vm6, %v2827_v63, %v2828_v38  ;;  %v2210_v28 = vshrl.u32 %v8572_v41, 16  ;;  %v2216_v45 = vshll.u32 %v8582_v4, 16  ;;  %10759 = vst [vmem:[#allocation8_spill] sm:$0xff] %v8599_v29  ;;  %v729_v38 = vpop.f32.mrf.mxu2  ;;  %v742_v62 = vpop.f32.mrf.mxu3 }
 0x151   :  { %v2909_v10 = vsel %vm150_vm0, %v2877_v20, 0  ;;  %v2868_v56 = vunpack.c.l.b16 %v2829_v8  ;;  %v2202_v34 = vrot.slane %v2200_v31, 5  ;;  %v2208_v51 = vrot.slane %v2206_v46, 5  ;;  %v6764_v46 = vld [vmem:[%s10740_s0 + $0x18c] sm:$0xff]  ;;  %v8619_v8 = vpop.f32.mrf.mxu1 }
 0x152   :  { %v2661_v22 = vsel %vm150_vm0, %v2623_v53, 0  ;;  %2939 = vmatpush.bf16.xpose.msra.mxu0 %v2909_v10  ;;  %v2212_v9 = vrot.slane %v2210_v28, 4  ;;  %v2218_v1 = vrot.slane %v2216_v45, 5  ;;  %v2389_v3 = vshrl.u32 %v8590_v15, 16  ;;  %v8617_v53 = vpop.f32.mrf.mxu0 }
 0x153   :  { %2700 = vmatpush.bf16.xpose.msrb.mxu3 %v2661_v22  ;;  %v2885_v59 = vpack.c.b16 %v2868_v56, %v2867_v30  ;;  %v2203_v63 = vor.u32 %v2202_v34, %v2199_v26  ;;  %v2392_v20 = vshll.u32 %v8590_v15, 16  ;;  %v2398_v31 = vshll.u32 %v8599_v29, 16 }
 0x154   :  { %v2213_v28 = vor.u32 %v2212_v9, %v2208_v51  ;;  %v2391_v45 = vrot.slane %v2389_v3, 4  ;;  %v2402_v10 = vshrl.u32 %v8599_v29, 16  ;;  %v2408_v38 = vshll.u32 %v8605_v21, 16 }
 0x155   :  { %v2933_v30 = vsel %vm150_vm0, %v2885_v59, 0  ;;  %v2204_v26 = vrot.slane %v2203_v63, 4  ;;  %v2394_v56 = vrot.slane %v2392_v20, 5  ;;  %v2400_v34 = vrot.slane %v2398_v31, 5 }
 0x156   :  { %2952 = vmatpush.bf16.xpose.msra.mxu1 %v2933_v30  ;;  %v2214_v62 = vrot.slane %v2213_v28, 4  ;;  %v2404_v22 = vrot.slane %v2402_v10, 4  ;;  %v2410_v15 = vrot.slane %v2408_v38, 5  ;;  %v3128_v4 = vsel %vm150_vm0, %v6756_v23, 0 }
 0x157   :  { %v2209_v41 = vsel %vm6921_vm3, %v2204_v26, %v2208_v51  ;;  %v2395_v9 = vor.u32 %v2394_v56, %v2391_v45  ;;  %v3152_v3 = vsel %vm150_vm0, %v6764_v46, 0  ;;  %v6277_v29 = vrot.slane %v8238_v14, 9 }
 0x158   :  { %v2219_v59 = vsel %vm6921_vm3, %v2214_v62, %v2218_v1  ;;  %v2582_v63 = vunpack.c.l.b16 %v2209_v41  ;;  %v2405_v20 = vor.u32 %v2404_v22, %v2400_v34  ;;  %v2762_v31 = vrot.slane %v8246_v36, 5  ;;  %v8634_v30 = vpop.f32.mrf.mxu2  ;;  %v8636_v51 = vpop.f32.mrf.mxu3  ;;  %v6755_v36 = vld [vmem:[%s10740_s0 + $0x120] sm:$0xff] }
 0x159   :  { %v2583_v28 = vunpack.c.l.b16 %v2219_v59  ;;  %v2396_v10 = vrot.slane %v2395_v9, 4  ;;  %v2765_v38 = vrot.slane %v8251_v17, 5  ;;  %v6285_v23 = vrot.slane %v8266_v18, 9  ;;  %v6763_v17 = vld [vmem:[%s10740_s0 + $0x180] sm:$0xff] }
 0x15a   :  { %v2406_v46 = vrot.slane %v2405_v20, 4  ;;  %v2763_v14 = vsel %vm7216_vm6, %v6277_v29, %v2762_v31  ;;  %v2764_v45 = vrot.slane %v2762_v31, 4  ;;  %v2818_v41 = vrot.slane %v8271_v61, 5  ;;  %v989_v62 = vpop.f32.mrf.mxu0  ;;  %v1002_v29 = vpop.f32.mrf.mxu1 }
 0x15b   :  { %v2614_v18 = vpack.c.b16 %v2583_v28, %v2582_v63  ;;  %v2401_v1 = vsel %vm6921_vm3, %v2396_v10, %v2400_v34  ;;  %v2849_v26 = vunpack.c.l.b16 %v2763_v14  ;;  %v2821_v56 = vrot.slane %v8278_v0, 5  ;;  %v6269_v62 = vld [vmem:[%s10741_s1 + $0xe] sm:$0x3] }
 0x15c   :  { %v2411_v61 = vsel %vm6921_vm3, %v2406_v46, %v2410_v15  ;;  %v2598_v22 = vunpack.c.l.b16 %v2401_v1  ;;  %v2766_v9 = vsel %vm7216_vm6, %v2764_v45, %v2765_v38  ;;  %v2819_v59 = vsel %vm7216_vm6, %v6285_v23, %v2818_v41  ;;  %v8668_v1 = vpop.permute.xlu0 %18 }
 0x15d   :  { %v2634_v63 = vsel %vm150_vm0, %v2614_v18, 0  ;;  %v2599_v20 = vunpack.c.l.b16 %v2411_v61  ;;  %v2850_v31 = vunpack.c.l.b16 %v2766_v9  ;;  %v2820_v34 = vrot.slane %v2818_v41, 4  ;;  %10760 = vst [vmem:[#allocation9_spill] sm:$0xff] %v8668_v1 }
 0x15e   :  { %2688 = vmatpush.bf16.xpose.msrb.mxu2 %v2634_v63  ;;  %v2865_v28 = vunpack.c.l.b16 %v2819_v59  ;;  %v3125_v0 = vsel %vm150_vm0, %v6755_v36, 0  ;;  %v8659_v10 = vsel %vm150_vm0, %v6763_v17, 0  ;;  %v6276_v15 = vrot.slane %v8295_v35, 9  ;;  %v6754_v35 = vld [vmem:[%s10740_s0 + $0x114] sm:$0xff] }
 0x15f   :  { %v2622_v46 = vpack.c.b16 %v2599_v20, %v2598_v22  ;;  %v2876_v38 = vpack.c.b16 %v2850_v31, %v2849_v26  ;;  %v2822_v23 = vsel %vm7216_vm6, %v2820_v34, %v2821_v56  ;;  %v2755_v14 = vrot.slane %v8303_v27, 5 }
 0x160   :  { %v2866_v45 = vunpack.c.l.b16 %v2822_v23  ;;  %v2758_v41 = vrot.slane %v8311_v19, 5  ;;  %v6284_v18 = vrot.slane %v8321_v54, 9  ;;  %v2811_v36 = vrot.slane %v8327_v6, 5  ;;  %v6762_v19 = vld [vmem:[%s10740_s0 + $0x174] sm:$0xff]  ;;  %v1199_v54 = vpop.f32.mrf.mxu2  ;;  %v1212_v6 = vpop.f32.mrf.mxu3 }
 0x161   :  { %v2906_v17 = vsel %vm150_vm0, %v2876_v38, 0  ;;  %v2756_v27 = vsel %vm7216_vm6, %v6276_v15, %v2755_v14  ;;  %v2757_v26 = vrot.slane %v2755_v14, 4  ;;  %v2814_v59 = vrot.slane %v8334_v7, 5 }
 0x162   :  { %2940 = vmatpush.bf16.xpose.msra.mxu0 %v2906_v17  ;;  %v2884_v56 = vpack.c.b16 %v2866_v45, %v2865_v28  ;;  %v2847_v29 = vunpack.c.l.b16 %v2756_v27  ;;  %v2812_v61 = vsel %vm7216_vm6, %v6284_v18, %v2811_v36  ;;  %v2813_v22 = vrot.slane %v2811_v36, 4 }
 0x163   :  { %v2759_v9 = vsel %vm7216_vm6, %v2757_v26, %v2758_v41  ;;  %v2863_v63 = vunpack.c.l.b16 %v2812_v61  ;;  %v228_v20 = vadd.f32 %v8535_v5, %v8668_v1  ;;  %v229_v28 = vadd.f32 %v8537_v50, %v8668_v1 }
 0x164   :  { %v2930_v31 = vsel %vm150_vm0, %v2884_v56, 0  ;;  %v2848_v34 = vunpack.c.l.b16 %v2759_v9  ;;  %v3122_v15 = vsel %vm150_vm0, %v6754_v35, 0  ;;  %v8698_v7 = vsel %vm150_vm0, %v6762_v19, 0  ;;  %v6760_v9 = vld [vmem:[%s10740_s0 + $0x15c] sm:$0xff] }
 0x165   :  { %2953 = vmatpush.bf16.xpose.msra.mxu1 %v2930_v31  ;;  %6270 = vmatmul.msk.bf16.vlgmr.msrb.gmra.mxu2 %vm150_vm0, %v6269_v62  ;;  %v6275_v5 = vrot.slane %v8353_v25, 9  ;;  %v745_v14 = vadd.f32 %v8559_v44, %v229_v28  ;;  %v2748_v50 = vrot.slane %v8358_v39, 5  ;;  %v2751_v41 = vrot.slane %v8369_v49, 5  ;;  %v6761_v25 = vld [vmem:[%s10740_s0 + $0x168] sm:$0xff] }
 0x166   :  { %3154 = vmatpush.bf16.xpose.msra.mxu2 %v3128_v4  ;;  %v2658_v4 = vsel %vm150_vm0, %v2622_v46, 0  ;;  %v744_v46 = vadd.f32 %v8557_v47, %v228_v20  ;;  %v2875_v38 = vpack.c.b16 %v2848_v34, %v2847_v29  ;;  %v6283_v18 = vrot.slane %v8379_v16, 9  ;;  %v6753_v47 = vld [vmem:[%s10740_s0 + $0x108] sm:$0xff] }
 0x167   :  { %2701 = vmatpush.bf16.xpose.msrb.mxu3 %v2658_v4  ;;  %v2804_v36 = vrot.slane %v8385_v60, 5  ;;  %v2749_v49 = vsel %vm7216_vm6, %v6275_v5, %v2748_v50  ;;  %v2750_v16 = vrot.slane %v2748_v50, 4  ;;  %v2807_v17 = vrot.slane %v8395_v32, 5 }
 0x168   :  { %v1004_v45 = vadd.f32 %v8617_v53, %v744_v46  ;;  %v2903_v44 = vsel %vm150_vm0, %v2875_v38, 0  ;;  %v2845_v60 = vunpack.c.l.b16 %v2749_v49  ;;  %v3119_v54 = vsel %vm150_vm0, %v6753_v47, 0 }
 0x169   :  { %v2805_v53 = vsel %vm7216_vm6, %v6283_v18, %v2804_v36  ;;  %v2806_v35 = vrot.slane %v2804_v36, 4  ;;  %v8734_v6 = vsel %vm150_vm0, %v6761_v25, 0  ;;  %v2744_v29 = vrot.slane %v8427_v24, 5 }
 0x16a   :  { %2941 = vmatpush.bf16.xpose.msra.mxu0 %v2903_v44  ;;  %v2861_v27 = vunpack.c.l.b16 %v2805_v53  ;;  %v8724_v26 = vadd.f32 %v8634_v30, %v1004_v45  ;;  %v6274_v30 = vrot.slane %v8411_v57, 9  ;;  %v6282_v61 = vrot.slane %v8437_v40, 9 }
 0x16b   :  { %v2808_v32 = vsel %vm7216_vm6, %v2806_v35, %v2807_v17  ;;  %v8767_v38 = vsel %vm150_vm0, %v6760_v9, 0  ;;  %v2734_v50 = vrot.slane %v8494_v58, 5  ;;  %v2737_v45 = vrot.slane %v8506_v2, 5 }
 0x16c   :  { %v6281_v36 = vrot.slane %v8515_v52, 9  ;;  %v2790_v47 = vrot.slane %v8524_v43, 5  ;;  %v2793_v25 = vrot.slane %v8530_v12, 5  ;;  %v6272_v35 = vrot.slane %v8555_v42, 9 }
 0x16d   :  { %v2736_v58 = vrot.slane %v2734_v50, 4  ;;  %v2786_v42 = vrot.slane %v8605_v21, 5  ;;  %vm2969_vm7 = vcmask 1043456  }
 0x16e   :  { %3155 = vmatpush.bf16.xpose.msra.mxu2 %v3125_v0  ;;  %v1005_v0 = vadd.f32 %v8619_v8, %v745_v14  ;;  %6271 = vmatmul.msk.bf16.vlgmr.msrb.gmra.mxu3 %vm150_vm0, %v6269_v62  ;;  %v2752_v8 = vsel %vm7216_vm6, %v2750_v16, %v2751_v41  ;;  %v2741_v62 = vrot.slane %v8419_v55, 5  ;;  %v6273_v14 = vrot.slane %v8484_v37, 9  ;;  %v6759_v41 = vld [vmem:[%s10740_s0 + $0x150] sm:$0xff] }
 0x16f   :  { %3167 = vmatpush.bf16.xpose.msra.mxu3 %v3152_v3  ;;  %v2815_v3 = vsel %vm7216_vm6, %v2813_v22, %v2814_v59  ;;  %v2846_v56 = vunpack.c.l.b16 %v2752_v8  ;;  %v2797_v22 = vrot.slane %v8443_v13, 5  ;;  %v2792_v52 = vrot.slane %v2790_v47, 4  ;;  %v10762_v8 = vld [vmem:[#allocation6_spill] sm:$0xff] }
 0x170   :  { %v2864_v23 = vunpack.c.l.b16 %v2815_v3  ;;  %v8730_v19 = vadd.f32 %v8636_v51, %v1005_v0  ;;  %v2862_v51 = vunpack.c.l.b16 %v2808_v32  ;;  %v2742_v57 = vsel %vm7216_vm6, %v6274_v30, %v2741_v62  ;;  %v10763_v32 = vld [vmem:[#allocation7_spill] sm:$0xff] }
 0x171   :  { %v2874_v59 = vpack.c.b16 %v2846_v56, %v2845_v60  ;;  %v2743_v55 = vrot.slane %v2741_v62, 4  ;;  %v2843_v31 = vunpack.c.l.b16 %v2742_v57  ;;  %v2798_v24 = vsel %vm7216_vm6, %v6282_v61, %v2797_v22  ;;  %v10764_v62 = vld [vmem:[#allocation8_spill] sm:$0xff] }
 0x172   :  { %v2883_v39 = vpack.c.b16 %v2864_v23, %v2863_v63  ;;  %v2800_v63 = vrot.slane %v8450_v11, 5  ;;  %v2882_v20 = vpack.c.b16 %v2862_v51, %v2861_v27  ;;  %v2799_v40 = vrot.slane %v2797_v22, 4  ;;  %v6751_v11 = vld [vmem:[%s10740_s0 + $0xf0] sm:$0xff]  ;;  %v8803_v51 = vld [vmem:[%s10740_s0 + $0x12c] sm:$0xf] }
 0x173   :  { %v2900_v13 = vsel %vm150_vm0, %v2874_v59, 0  ;;  %v2745_v34 = vsel %vm7216_vm6, %v2743_v55, %v2744_v29  ;;  %v2859_v28 = vunpack.c.l.b16 %v2798_v24  ;;  %v2735_v37 = vsel %vm7216_vm6, %v6273_v14, %v2734_v50  ;;  %v8813_v55 = vld [vmem:[%s10740_s0 + $0x130] sm:$0xf] }
 0x174   :  { %v2927_v4 = vsel %vm150_vm0, %v2883_v39, 0  ;;  %v2844_v46 = vunpack.c.l.b16 %v2745_v34  ;;  %v2801_v5 = vsel %vm7216_vm6, %v2799_v40, %v2800_v63  ;;  %2942 = vmatpush.bf16.xpose.msra.mxu0 %v2900_v13  ;;  %v8782_v2 = vsel %vm150_vm0, %v6751_v11, 0  ;;  %v8828_v40 = vld [vmem:[%s10740_s0 + $0x18c] sm:$0xf] }
 0x175   :  { %2954 = vmatpush.bf16.xpose.msra.mxu1 %v2927_v4  ;;  %v2860_v23 = vunpack.c.l.b16 %v2801_v5  ;;  %v2841_v0 = vunpack.c.l.b16 %v2735_v37  ;;  %v2738_v12 = vsel %vm7216_vm6, %v2736_v58, %v2737_v45  ;;  %v8791_v16 = vsel %vm150_vm0, %v6759_v41, 0  ;;  %v10761_v4 = vld [vmem:[#allocation5_spill] sm:$0xff]  ;;  %v6758_v58 = vld [vmem:[%s10740_s0 + $0x144] sm:$0xff] }
 0x176   :  { %3156 = vmatpush.bf16.xpose.msra.mxu2 %v3122_v15  ;;  %v2924_v15 = vsel %vm150_vm0, %v2882_v20, 0  ;;  %v2873_v18 = vpack.c.b16 %v2844_v46, %v2843_v31  ;;  %v2842_v60 = vunpack.c.l.b16 %v2738_v12  ;;  %v2794_v53 = vsel %vm7216_vm6, %v2792_v52, %v2793_v25  ;;  %v8822_v31 = vld [vmem:[%s10740_s0 + $0x134] sm:$0x1]  ;;  %v8840_v45 = vld [vmem:[%s10740_s0 + $0x190] sm:$0xf] }
 0x177   :  { %3168 = vmatpush.bf16.xpose.msra.mxu3 %v8659_v10  ;;  %v6752_v10 = vld [vmem:[%s10740_s0 + $0xfc] sm:$0xff]  ;;  %v2881_v44 = vpack.c.b16 %v2860_v23, %v2859_v28  ;;  %v2727_v17 = vrot.slane %v10761_v4, 5  ;;  %v2858_v27 = vunpack.c.l.b16 %v2794_v53  ;;  %v2730_v56 = vrot.slane %v10762_v8, 5 }
 0x178   :  { %v8758_v3 = vsel %vm150_vm0, %v6752_v10, 0  ;;  %v2897_v39 = vsel %vm150_vm0, %v2873_v18, 0  ;;  %v6280_v30 = vrot.slane %v10763_v32, 9  ;;  %v2783_v10 = vrot.slane %v10764_v62, 5  ;;  %v6750_v18 = vld [vmem:[%s10740_s0 + $0xe4] sm:$0xff] }
 0x179   :  { %v2921_v43 = vsel %vm150_vm0, %v2881_v44, 0  ;;  %v2728_v29 = vsel %vm7216_vm6, %v6272_v35, %v2727_v17  ;;  %v2729_v61 = vrot.slane %v2727_v17, 4  ;;  %v3351_v24 = vshrl.u32 %v8803_v51, 16  ;;  %v8850_v44 = vld [vmem:[%s10740_s0 + $0x194] sm:$0x1] }
 0x17a   :  { %v2839_v9 = vunpack.c.l.b16 %v2728_v29  ;;  %v2784_v59 = vsel %vm7216_vm6, %v6280_v30, %v2783_v10  ;;  %v2785_v57 = vrot.slane %v2783_v10, 4  ;;  %v3354_v28 = vshll.u32 %v8803_v51, 16  ;;  %v8878_v30 = vld [vmem:[%s10740_s0 + $0x124] sm:$0xf] }
 0x17b   :  { %v2731_v20 = vsel %vm7216_vm6, %v2729_v61, %v2730_v56  ;;  %v2855_v21 = vunpack.c.l.b16 %v2784_v59  ;;  %v3360_v46 = vshll.u32 %v8813_v55, 16  ;;  %v3364_v5 = vshrl.u32 %v8813_v55, 16 }
 0x17c   :  { %2943 = vmatpush.bf16.xpose.msra.mxu0 %v2897_v39  ;;  %v2840_v13 = vunpack.c.l.b16 %v2731_v20  ;;  %v2787_v34 = vsel %vm7216_vm6, %v2785_v57, %v2786_v42  ;;  %v3356_v14 = vrot.slane %v3354_v28, 5  ;;  %v3370_v50 = vshll.u32 %v8822_v31, 16  ;;  %v8905_v28 = vld [vmem:[%s10740_s0 + $0x184] sm:$0xf] }
 0x17d   :  { %2955 = vmatpush.bf16.xpose.msra.mxu1 %v2924_v15  ;;  %v2856_v11 = vunpack.c.l.b16 %v2787_v34  ;;  %v3353_v15 = vrot.slane %v3351_v24, 4  ;;  %v3543_v41 = vshrl.u32 %v8828_v40, 16  ;;  %v3366_v25 = vrot.slane %v3364_v5, 4 }
 0x17e   :  { %3157 = vmatpush.bf16.xpose.msra.mxu2 %v3119_v54  ;;  %v2872_v54 = vpack.c.b16 %v2842_v60, %v2841_v0  ;;  %v2871_v23 = vpack.c.b16 %v2840_v13, %v2839_v9  ;;  %v3546_v37 = vshll.u32 %v8828_v40, 16  ;;  %v8864_v60 = vld [vmem:[%s10740_s0 + $0x120] sm:$0xf]  ;;  %v3556_v35 = vshrl.u32 %v8840_v45, 16 }
 0x17f   :  { %3169 = vmatpush.bf16.xpose.msra.mxu3 %v8698_v7  ;;  %v2791_v7 = vsel %vm7216_vm6, %v6281_v36, %v2790_v47  ;;  %v2879_v36 = vpack.c.b16 %v2856_v11, %v2855_v21  ;;  %v3362_v47 = vrot.slane %v3360_v46, 5  ;;  %v3357_v0 = vor.u32 %v3356_v14, %v3353_v15  ;;  %v8895_v21 = vld [vmem:[%s10740_s0 + $0x180] sm:$0xf] }
 0x180   :  { %v2857_v49 = vunpack.c.l.b16 %v2791_v7  ;;  %v2894_v63 = vsel %vm150_vm0, %v2872_v54, 0  ;;  %v2891_v39 = vsel %vm150_vm0, %v2871_v23, 0  ;;  %v3372_v7 = vrot.slane %v3370_v50, 5  ;;  %v8910_v50 = vld [vmem:[%s10740_s0 + $0x188] sm:$0x1] }
 0x181   :  { %v3545_v52 = vrot.slane %v3543_v41, 4  ;;  %v3548_v12 = vrot.slane %v3546_v37, 5  ;;  %v3358_v53 = vrot.slane %v3357_v0, 4  ;;  %v3562_v4 = vshll.u32 %v8850_v44, 16  ;;  %v8923_v0 = vpop.f32.mrf.mxu1 }
 0x182   :  { %v2880_v22 = vpack.c.b16 %v2858_v27, %v2857_v49  ;;  %v3552_v49 = vshll.u32 %v8840_v45, 16  ;;  %v8869_v17 = vsel %vm150_vm0, %v6750_v18, 0  ;;  %v8873_v32 = vsel %vm150_vm0, %v6758_v58, 0  ;;  %v6749_v18 = vld [vmem:[%s10740_s0 + $0xd8] sm:$0xff]  ;;  %v8921_v58 = vpop.f32.mrf.mxu0 }
 0x183   :  { %v3549_v8 = vor.u32 %v3548_v12, %v3545_v52  ;;  %v3363_v62 = vsel %vm6921_vm3, %v3358_v53, %v3362_v47  ;;  %v3558_v10 = vrot.slane %v3556_v35, 4  ;;  %v3564_v54 = vrot.slane %v3562_v4, 5  ;;  %v6757_v12 = vld [vmem:[%s10740_s0 + $0x138] sm:$0xff] }
 0x184   :  { %2944 = vmatpush.bf16.xpose.msra.mxu0 %v2894_v63  ;;  %v3554_v56 = vrot.slane %v3552_v49, 5  ;;  %v3327_v29 = vshrl.u32 %v8864_v60, 16  ;;  %v3581_v42 = vunpack.c.l.b16 %v3363_v62  ;;  %v3330_v9 = vshll.u32 %v8864_v60, 16  ;;  %v6288_v62 = vld [vmem:[%s10741_s1 + $0x10] sm:$0x3] }
 0x185   :  { %2956 = vmatpush.bf16.xpose.msra.mxu1 %v2921_v43  ;;  %v3367_v43 = vor.u32 %v3366_v25, %v3362_v47  ;;  %v3336_v20 = vshll.u32 %v8878_v30, 16  ;;  %v3340_v13 = vshrl.u32 %v8878_v30, 16  ;;  %v3519_v41 = vshrl.u32 %v8895_v21, 16 }
 0x186   :  { %3158 = vmatpush.bf16.xpose.msra.mxu2 %v8758_v3  ;;  %v8858_v3 = vsel %vm150_vm0, %v2879_v36, 0  ;;  %v3559_v57 = vor.u32 %v3558_v10, %v3554_v56  ;;  %v3329_v63 = vrot.slane %v3327_v29, 4  ;;  %v3522_v25 = vshll.u32 %v8895_v21, 16 }
 0x187   :  { %3170 = vmatpush.bf16.xpose.msra.mxu3 %v8734_v6  ;;  %v2918_v6 = vsel %vm150_vm0, %v2880_v22, 0  ;;  %v3368_v27 = vrot.slane %v3367_v43, 4  ;;  %v3550_v22 = vrot.slane %v3549_v8, 4  ;;  %v3338_v5 = vrot.slane %v3336_v20, 5 }
 0x188   :  { %v3560_v15 = vrot.slane %v3559_v57, 4  ;;  %v3342_v14 = vrot.slane %v3340_v13, 4  ;;  %v3528_v37 = vshll.u32 %v8905_v28, 16  ;;  %v3524_v49 = vrot.slane %v3522_v25, 5 }
 0x189   :  { %v3373_v61 = vsel %vm6921_vm3, %v3368_v27, %v3372_v7  ;;  %v3555_v24 = vsel %vm6921_vm3, %v3550_v22, %v3554_v56  ;;  %v3532_v35 = vshrl.u32 %v8905_v28, 16  ;;  %v3538_v4 = vshll.u32 %v8910_v50, 16 }
 0x18a   :  { %v3582_v59 = vunpack.c.l.b16 %v3373_v61  ;;  %v3597_v46 = vunpack.c.l.b16 %v3555_v24  ;;  %v3565_v47 = vsel %vm6921_vm3, %v3560_v15, %v3564_v54  ;;  %v3343_v43 = vor.u32 %v3342_v14, %v3338_v5 }
 0x18b   :  { %v3598_v7 = vunpack.c.l.b16 %v3565_v47  ;;  %v3530_v53 = vrot.slane %v3528_v37, 5  ;;  %v3107_v56 = vsel %vm150_vm0, %v6749_v18, 0  ;;  %v3534_v29 = vrot.slane %v3532_v35, 4  ;;  %v8976_v47 = vld [vmem:[%s10740_s0 + $0x11c] sm:$0x1] }
 0x18c   :  { %v3606_v11 = vpack.c.b16 %v3582_v59, %v3581_v42  ;;  %2945 = vmatpush.bf16.xpose.msra.mxu0 %v2891_v39  ;;  %v3521_v39 = vrot.slane %v3519_v41, 4  ;;  %v3344_v8 = vrot.slane %v3343_v43, 4  ;;  %v3540_v61 = vrot.slane %v3538_v4, 5 }
 0x18d   :  { %2957 = vmatpush.bf16.xpose.msra.mxu1 %v2918_v6  ;;  %v3332_v6 = vrot.slane %v3330_v9, 5  ;;  %v3614_v27 = vpack.c.b16 %v3598_v7, %v3597_v46  ;;  %v3131_v22 = vsel %vm150_vm0, %v6757_v12, 0  ;;  %v6415_v9 = vrot.slane %v8803_v51, 9  ;;  %v1725_v46 = vpop.f32.mrf.mxu1  ;;  %v8987_v12 = vld [vmem:[%s10740_s0 + $0x174] sm:$0xf] }
 0x18e   :  { %3159 = vmatpush.bf16.xpose.msra.mxu2 %v8782_v2  ;;  %v3640_v36 = vsel %vm150_vm0, %v3606_v11, 0  ;;  %v3525_v54 = vor.u32 %v3524_v49, %v3521_v39  ;;  %v3761_v20 = vrot.slane %v8813_v55, 5  ;;  %v3764_v24 = vrot.slane %v8822_v31, 5  ;;  %v8957_v55 = vld [vmem:[%s10740_s0 + $0x114] sm:$0xf]  ;;  %v1712_v31 = vpop.f32.mrf.mxu0 }
 0x18f   :  { %3171 = vmatpush.bf16.xpose.msra.mxu3 %v8767_v38  ;;  %v8885_v38 = vld [vmem:[%s10740_s0 + $0x128] sm:$0x1]  ;;  %v3333_v23 = vor.u32 %v3332_v6, %v3329_v63  ;;  %v3664_v42 = vsel %vm150_vm0, %v3614_v27, 0  ;;  %v3535_v63 = vor.u32 %v3534_v29, %v3530_v53  ;;  %v6423_v6 = vrot.slane %v8828_v40, 9 }
 0x190   :  { %v3346_v34 = vshll.u32 %v8885_v38, 16  ;;  %v3526_v57 = vrot.slane %v3525_v54, 4  ;;  %v3820_v13 = vrot.slane %v8850_v44, 5  ;;  %v3762_v15 = vsel %vm7216_vm6, %v6415_v9, %v3761_v20 }
 0x191   :  { %v3334_v52 = vrot.slane %v3333_v23, 4  ;;  %v3536_v11 = vrot.slane %v3535_v63, 4  ;;  %v3837_v44 = vunpack.c.l.b16 %v3762_v15  ;;  %v8965_v23 = vld [vmem:[%s10740_s0 + $0x118] sm:$0xf]  ;;  %v3303_v25 = vshrl.u32 %v8957_v55, 16 }
 0x192   :  { %v3348_v2 = vrot.slane %v3346_v34, 5  ;;  %v3531_v51 = vsel %vm6921_vm3, %v3526_v57, %v3530_v53  ;;  %v3306_v37 = vshll.u32 %v8957_v55, 16  ;;  %v3312_v43 = vshll.u32 %v8965_v23, 16 }
 0x193   :  { %6289 = vmatmul.msk.bf16.vlgmr.msra.gmra.mxu0 %vm150_vm0, %v6288_v62  ;;  %v3595_v40 = vunpack.c.l.b16 %v3531_v51  ;;  %v3316_v39 = vshrl.u32 %v8965_v23, 16  ;;  %v3305_v35 = vrot.slane %v3303_v25, 4  ;;  %v3498_v57 = vshll.u32 %v8987_v12, 16 }
 0x194   :  { %3666 = vmatpush.bf16.xpose.msrb.mxu0 %v3640_v36  ;;  %v3308_v4 = vrot.slane %v3306_v37, 5  ;;  %v9016_v31 = vadd.f32 %v8923_v0, %v8730_v19  ;;  %v3810_v25 = vrot.slane %v8905_v28, 5 }
 0x195   :  { %2958 = vmatpush.bf16.xpose.msra.mxu1 %v8858_v3  ;;  %v3349_v3 = vsel %vm6921_vm3, %v3344_v8, %v3348_v2  ;;  %v3541_v2 = vsel %vm6921_vm3, %v3536_v11, %v3540_v61  ;;  %v3318_v8 = vrot.slane %v3316_v39, 4 }
 0x196   :  { %3160 = vmatpush.bf16.xpose.msra.mxu2 %v8869_v17  ;;  %v3580_v59 = vunpack.c.l.b16 %v3349_v3  ;;  %v3817_v17 = vrot.slane %v8840_v45, 5  ;;  %v3763_v45 = vrot.slane %v3761_v20, 4  ;;  %v3596_v18 = vunpack.c.l.b16 %v3541_v2 }
 0x197   :  { %3172 = vmatpush.bf16.xpose.msra.mxu3 %v8791_v16  ;;  %v3339_v16 = vsel %vm6921_vm3, %v3334_v52, %v3338_v5  ;;  %v3309_v61 = vor.u32 %v3308_v4, %v3305_v35  ;;  %v6414_v2 = vrot.slane %v8864_v60, 9  ;;  %v3812_v35 = vrot.slane %v3810_v25, 4 }
 0x198   :  { %v3579_v10 = vunpack.c.l.b16 %v3339_v16  ;;  %v3818_v5 = vsel %vm7216_vm6, %v6423_v6, %v3817_v17  ;;  %v3819_v41 = vrot.slane %v3817_v17, 4  ;;  %v3765_v36 = vsel %vm7216_vm6, %v3763_v45, %v3764_v24 }
 0x199   :  { %v3838_v7 = vunpack.c.l.b16 %v3765_v36  ;;  %v3613_v49 = vpack.c.b16 %v3596_v18, %v3595_v40  ;;  %v3314_v16 = vrot.slane %v3312_v43, 5  ;;  %v3310_v20 = vrot.slane %v3309_v61, 4 }
 0x19a   :  { %v3605_v34 = vpack.c.b16 %v3580_v59, %v3579_v10  ;;  %v3821_v52 = vsel %vm7216_vm6, %v3819_v41, %v3820_v13  ;;  %v8993_v10 = vld [vmem:[%s10740_s0 + $0x178] sm:$0xf]  ;;  %v3500_v13 = vrot.slane %v3498_v57, 5  ;;  %v3754_v41 = vrot.slane %v8878_v30, 5 }
 0x19b   :  { %v3854_v53 = vunpack.c.l.b16 %v3821_v52  ;;  %v3862_v27 = vpack.c.b16 %v3838_v7, %v3837_v44  ;;  %v3661_v54 = vsel %vm150_vm0, %v3613_v49, 0  ;;  %v3319_v9 = vor.u32 %v3318_v8, %v3314_v16 }
 0x19c   :  { %6290 = vmatmul.msk.bf16.vlgmr.msra.gmra.mxu1 %vm150_vm0, %v6288_v62  ;;  %v3637_v14 = vsel %vm150_vm0, %v3605_v34, 0  ;;  %v3322_v62 = vshll.u32 %v8976_v47, 16  ;;  %v3504_v6 = vshll.u32 %v8993_v10, 16  ;;  %v3508_v34 = vshrl.u32 %v8993_v10, 16 }
 0x19d   :  { %3679 = vmatpush.bf16.xpose.msrb.mxu1 %v3664_v42  ;;  %3667 = vmatpush.bf16.xpose.msrb.mxu0 %v3637_v14  ;;  %v3495_v42 = vshrl.u32 %v8987_v12, 16  ;;  %v3896_v3 = vsel %vm150_vm0, %v3862_v27, 0  ;;  %v3320_v17 = vrot.slane %v3319_v9, 4  ;;  %v3315_v11 = vsel %vm6921_vm3, %v3310_v20, %v3314_v16  ;;  %v9067_v20 = vld [vmem:[%s10740_s0 + $0x16c] sm:$0xf] }
 0x19e   :  { %3161 = vmatpush.bf16.xpose.msra.mxu2 %v3107_v56  ;;  %v8999_v56 = vld [vmem:[%s10740_s0 + $0x17c] sm:$0x1]  ;;  %v3324_v59 = vrot.slane %v3322_v62, 5  ;;  %v3506_v15 = vrot.slane %v3504_v6, 5  ;;  %v3577_v40 = vunpack.c.l.b16 %v3315_v11  ;;  %v3510_v44 = vrot.slane %v3508_v34, 4  ;;  %v9071_v6 = vpop.f32.mrf.mxu3 }
 0x19f   :  { %3173 = vmatpush.bf16.xpose.msra.mxu3 %v8873_v32  ;;  %v3853_v32 = vunpack.c.l.b16 %v3818_v5  ;;  %v3497_v24 = vrot.slane %v3495_v42, 4  ;;  %v3514_v51 = vshll.u32 %v8999_v56, 16  ;;  %v3755_v0 = vsel %vm7216_vm6, %v6414_v2, %v3754_v41  ;;  %v9077_v11 = vld [vmem:[%s10740_s0 + $0x170] sm:$0x1] }
 0x1a0   :  { %v3325_v46 = vsel %vm6921_vm3, %v3320_v17, %v3324_v59  ;;  %v3511_v18 = vor.u32 %v3510_v44, %v3506_v15  ;;  %v3756_v36 = vrot.slane %v3754_v41, 4  ;;  %v3835_v60 = vunpack.c.l.b16 %v3755_v0 }
 0x1a1   :  { %v3870_v29 = vpack.c.b16 %v3854_v53, %v3853_v32  ;;  %v3501_v45 = vor.u32 %v3500_v13, %v3497_v24  ;;  %v3578_v5 = vunpack.c.l.b16 %v3325_v46  ;;  %v3516_v14 = vrot.slane %v3514_v51, 5  ;;  %v9069_v24 = vpop.f32.mrf.mxu2 }
 0x1a2   :  { %v3512_v7 = vrot.slane %v3511_v18, 4  ;;  %v3813_v30 = vrot.slane %v8910_v50, 5  ;;  %v9048_v50 = vld [vmem:[%s10740_s0 + $0x110] sm:$0x1]  ;;  %v3484_v2 = vshrl.u32 %v9067_v20, 16 }
 0x1a3   :  { %v3920_v63 = vsel %vm150_vm0, %v3870_v29, 0  ;;  %v3502_v32 = vrot.slane %v3501_v45, 4  ;;  %v3604_v19 = vpack.c.b16 %v3578_v5, %v3577_v40  ;;  %v3298_v42 = vshll.u32 %v9048_v50, 16 }
 0x1a4   :  { %v3517_v49 = vsel %vm6921_vm3, %v3512_v7, %v3516_v14  ;;  %v3814_v29 = vsel %vm7216_vm6, %v3812_v35, %v3813_v30  ;;  %v3480_v14 = vshll.u32 %v9067_v20, 16  ;;  %v6413_v7 = vrot.slane %v8957_v55, 9 }
 0x1a5   :  { %3680 = vmatpush.bf16.xpose.msrb.mxu1 %v3661_v54  ;;  %v3507_v37 = vsel %vm6921_vm3, %v3502_v32, %v3506_v15  ;;  %v3634_v52 = vsel %vm150_vm0, %v3604_v19, 0  ;;  %v3594_v27 = vunpack.c.l.b16 %v3517_v49  ;;  %v3852_v59 = vunpack.c.l.b16 %v3814_v29 }
 0x1a6   :  { %3922 = vmatpush.bf16.xpose.msrb.mxu2 %v3896_v3  ;;  %v3593_v28 = vunpack.c.l.b16 %v3507_v37  ;;  %3668 = vmatpush.bf16.xpose.msrb.mxu0 %v3634_v52  ;;  %v9062_v3 = vld [vmem:[%s10740_s0 + $0x168] sm:$0xf]  ;;  %v3300_v51 = vrot.slane %v3298_v42, 5  ;;  %v3482_v0 = vrot.slane %v3480_v14, 5  ;;  %v3750_v35 = vrot.slane %v8976_v47, 5 }
 0x1a7   :  { %3174 = vmatpush.bf16.xpose.msra.mxu3 %v3131_v22  ;;  %v9012_v22 = vadd.f32 %v8921_v58, %v8724_v26  ;;  %v3757_v26 = vrot.slane %v8885_v38, 5  ;;  %v6422_v58 = vrot.slane %v8895_v21, 9  ;;  %v9033_v38 = vld [vmem:[%s10740_s0 + $0x108] sm:$0xf]  ;;  %v9038_v21 = vld [vmem:[%s10740_s0 + $0x10c] sm:$0xf] }
 0x1a8   :  { %v3279_v16 = vshrl.u32 %v9033_v38, 16  ;;  %v3282_v8 = vshll.u32 %v9033_v38, 16  ;;  %v3288_v62 = vshll.u32 %v9038_v21, 16  ;;  %v3292_v61 = vshrl.u32 %v9038_v21, 16 }
 0x1a9   :  { %v3758_v43 = vsel %vm7216_vm6, %v3756_v36, %v3757_v26  ;;  %v3811_v39 = vsel %vm7216_vm6, %v6422_v58, %v3810_v25  ;;  %v3612_v9 = vpack.c.b16 %v3594_v27, %v3593_v28  ;;  %v3471_v45 = vshrl.u32 %v9062_v3, 16  ;;  %v1969_v55 = vpop.f32.mrf.mxu2 }
 0x1aa   :  { %v3836_v53 = vunpack.c.l.b16 %v3758_v43  ;;  %v3851_v4 = vunpack.c.l.b16 %v3811_v39  ;;  %v3281_v57 = vrot.slane %v3279_v16, 4  ;;  %v3290_v13 = vrot.slane %v3288_v62, 5 }
 0x1ab   :  { %v3294_v34 = vrot.slane %v3292_v61, 4  ;;  %v3658_v15 = vsel %vm150_vm0, %v3612_v9, 0  ;;  %v3474_v5 = vshll.u32 %v9062_v3, 16  ;;  %v3473_v18 = vrot.slane %v3471_v45, 4 }
 0x1ac   :  { %v3861_v54 = vpack.c.b16 %v3836_v53, %v3835_v60  ;;  %v3869_v46 = vpack.c.b16 %v3852_v59, %v3851_v4  ;;  %v3490_v26 = vshll.u32 %v9077_v11, 16  ;;  %v3486_v36 = vrot.slane %v3484_v2, 4  ;;  %v9098_v4 = vld [vmem:[%s10740_s0 + $0xfc] sm:$0xf] }
 0x1ad   :  { %3681 = vmatpush.bf16.xpose.msrb.mxu1 %v3658_v15  ;;  %v3295_v44 = vor.u32 %v3294_v34, %v3290_v13  ;;  %v3476_v19 = vrot.slane %v3474_v5, 5  ;;  %v3747_v60 = vrot.slane %v8965_v23, 5  ;;  %v1982_v23 = vpop.f32.mrf.mxu3  ;;  %v6421_v62 = vrot.slane %v8987_v12, 9  ;;  %v9126_v34 = vld [vmem:[%s10740_s0 + $0x15c] sm:$0xf] }
 0x1ae   :  { %v3893_v17 = vsel %vm150_vm0, %v3861_v54, 0  ;;  %v3917_v41 = vsel %vm150_vm0, %v3869_v46, 0  ;;  %v3492_v37 = vrot.slane %v3490_v26, 5  ;;  %v3487_v43 = vor.u32 %v3486_v36, %v3482_v0 }
 0x1af   :  { %3935 = vmatpush.bf16.xpose.msrb.mxu3 %v3920_v63  ;;  %v3284_v63 = vrot.slane %v3282_v8, 5  ;;  %3923 = vmatpush.bf16.xpose.msrb.mxu2 %v3893_v17  ;;  %v3296_v58 = vrot.slane %v3295_v44, 4  ;;  %v3477_v28 = vor.u32 %v3476_v19, %v3473_v18  ;;  %v3748_v49 = vsel %vm7216_vm6, %v6413_v7, %v3747_v60  ;;  %v9138_v18 = vld [vmem:[%s10740_s0 + $0x160] sm:$0xf] }
 0x1b0   :  { %v3749_v53 = vrot.slane %v3747_v60, 4  ;;  %v3488_v16 = vrot.slane %v3487_v43, 4  ;;  %v3833_v8 = vunpack.c.l.b16 %v3748_v49  ;;  %v3803_v61 = vrot.slane %v8993_v10, 5 }
 0x1b1   :  { %v3285_v40 = vor.u32 %v3284_v63, %v3281_v57  ;;  %v3301_v30 = vsel %vm6921_vm3, %v3296_v58, %v3300_v51  ;;  %v3478_v27 = vrot.slane %v3477_v28, 4  ;;  %v3806_v47 = vrot.slane %v8999_v56, 5  ;;  %v9112_v57 = vld [vmem:[%s10740_s0 + $0x100] sm:$0xf] }
 0x1b2   :  { %v3576_v39 = vunpack.c.l.b16 %v3301_v30  ;;  %v3751_v29 = vsel %vm7216_vm6, %v3749_v53, %v3750_v35  ;;  %v3493_v9 = vsel %vm6921_vm3, %v3488_v16, %v3492_v37  ;;  %v3255_v12 = vshrl.u32 %v9098_v4, 16 }
 0x1b3   :  { %v3286_v32 = vrot.slane %v3285_v40, 4  ;;  %v3483_v42 = vsel %vm6921_vm3, %v3478_v27, %v3482_v0  ;;  %v3834_v59 = vunpack.c.l.b16 %v3751_v29  ;;  %v3592_v10 = vunpack.c.l.b16 %v3493_v9 }
 0x1b4   :  { %v3591_v17 = vunpack.c.l.b16 %v3483_v42  ;;  %v3804_v56 = vsel %vm7216_vm6, %v6421_v62, %v3803_v61  ;;  %v3805_v15 = vrot.slane %v3803_v61, 4  ;;  %v3257_v40 = vrot.slane %v3255_v12, 4 }
 0x1b5   :  { %v3291_v25 = vsel %vm6921_vm3, %v3286_v32, %v3290_v13  ;;  %v9121_v13 = vld [vmem:[%s10740_s0 + $0x104] sm:$0x1]  ;;  %v3860_v51 = vpack.c.b16 %v3834_v59, %v3833_v8  ;;  %v3849_v46 = vunpack.c.l.b16 %v3804_v56  ;;  %v3258_v44 = vshll.u32 %v9098_v4, 16 }
 0x1b6   :  { %v3575_v52 = vunpack.c.l.b16 %v3291_v25  ;;  %v3611_v45 = vpack.c.b16 %v3592_v10, %v3591_v17  ;;  %v3264_v5 = vshll.u32 %v9112_v57, 16  ;;  %v3268_v14 = vshrl.u32 %v9112_v57, 16  ;;  %v9145_v25 = vld [vmem:[%s10740_s0 + $0x164] sm:$0x1] }
 0x1b7   :  { %3936 = vmatpush.bf16.xpose.msrb.mxu3 %v3917_v41  ;;  %v3890_v2 = vsel %vm150_vm0, %v3860_v51, 0  ;;  %v3807_v41 = vsel %vm7216_vm6, %v3805_v15, %v3806_v47  ;;  %v3274_v32 = vshll.u32 %v9121_v13, 16  ;;  %v3447_v26 = vshrl.u32 %v9126_v34, 16  ;;  %v9176_v15 = vld [vmem:[%s10740_s0 + $0xf0] sm:$0xf] }
 0x1b8   :  { %v3603_v54 = vpack.c.b16 %v3576_v39, %v3575_v52  ;;  %v3655_v58 = vsel %vm150_vm0, %v3611_v45, 0  ;;  %3924 = vmatpush.bf16.xpose.msrb.mxu2 %v3890_v2  ;;  %v3850_v19 = vunpack.c.l.b16 %v3807_v41  ;;  %v3260_v0 = vrot.slane %v3258_v44, 5  ;;  %v9185_v44 = vld [vmem:[%s10740_s0 + $0xf4] sm:$0xf]  ;;  %v9192_v2 = vld [vmem:[%s10740_s0 + $0xf8] sm:$0x1] }
 0x1b9   :  { %v3266_v36 = vrot.slane %v3264_v5, 5  ;;  %3682 = vmatpush.bf16.xpose.msrb.mxu1 %v3655_v58  ;;  %v3270_v37 = vrot.slane %v3268_v14, 4  ;;  %v3276_v7 = vrot.slane %v3274_v32, 5  ;;  %v3449_v60 = vrot.slane %v3447_v26, 4 }
 0x1ba   :  { %v3631_v63 = vsel %vm150_vm0, %v3603_v54, 0  ;;  %v3450_v30 = vshll.u32 %v9126_v34, 16  ;;  %v3868_v52 = vpack.c.b16 %v3850_v19, %v3849_v46  ;;  %v3261_v28 = vor.u32 %v3260_v0, %v3257_v40 }
 0x1bb   :  { %3669 = vmatpush.bf16.xpose.msrb.mxu0 %v3631_v63  ;;  %v3456_v43 = vshll.u32 %v9138_v18, 16  ;;  %v3460_v39 = vshrl.u32 %v9138_v18, 16  ;;  %v3271_v49 = vor.u32 %v3270_v37, %v3266_v36  ;;  %v3466_v35 = vshll.u32 %v9145_v25, 16 }
 0x1bc   :  { %v3452_v53 = vrot.slane %v3450_v30, 5  ;;  %v9153_v55 = vadd.f32 %v9069_v24, %v9012_v22  ;;  %v3914_v23 = vsel %vm150_vm0, %v3868_v52, 0  ;;  %v3262_v27 = vrot.slane %v3261_v28, 4  ;;  %v9211_v28 = vld [vmem:[%s10740_s0 + $0x154] sm:$0xf] }
 0x1bd   :  { %v3458_v16 = vrot.slane %v3456_v43, 5  ;;  %v3462_v8 = vrot.slane %v3460_v39, 4  ;;  %v3272_v62 = vrot.slane %v3271_v49, 4  ;;  %v3468_v29 = vrot.slane %v3466_v35, 5  ;;  %v9218_v35 = vld [vmem:[%s10740_s0 + $0x158] sm:$0x1] }
 0x1be   :  { %v3453_v54 = vor.u32 %v3452_v53, %v3449_v60  ;;  %v9158_v61 = vadd.f32 %v9071_v6, %v9016_v31  ;;  %v3267_v47 = vsel %vm6921_vm3, %v3262_v27, %v3266_v36  ;;  %v6412_v22 = vrot.slane %v9033_v38, 9 }
 0x1bf   :  { %3937 = vmatpush.bf16.xpose.msrb.mxu3 %v3914_v23  ;;  %v3463_v42 = vor.u32 %v3462_v8, %v3458_v16  ;;  %v3740_v24 = vrot.slane %v9038_v21, 5  ;;  %v3277_v9 = vsel %vm6921_vm3, %v3272_v62, %v3276_v7  ;;  %v3573_v59 = vunpack.c.l.b16 %v3267_v47  ;;  %v9202_v7 = vld [vmem:[%s10740_s0 + $0x150] sm:$0xf] }
 0x1c0   :  { %v3454_v12 = vrot.slane %v3453_v54, 4  ;;  %v3743_v63 = vrot.slane %v9048_v50, 5  ;;  %v3574_v17 = vunpack.c.l.b16 %v3277_v9  ;;  %v6420_v38 = vrot.slane %v9062_v3, 9 }
 0x1c1   :  { %v3464_v10 = vrot.slane %v3463_v42, 4  ;;  %v3741_v31 = vsel %vm7216_vm6, %v6412_v22, %v3740_v24  ;;  %v3742_v6 = vrot.slane %v3740_v24, 4  ;;  %v3796_v21 = vrot.slane %v9067_v20, 5 }
 0x1c2   :  { %v3459_v56 = vsel %vm6921_vm3, %v3454_v12, %v3458_v16  ;;  %v3831_v51 = vunpack.c.l.b16 %v3741_v31  ;;  %v3602_v50 = vpack.c.b16 %v3574_v17, %v3573_v59  ;;  %v3799_v32 = vrot.slane %v9077_v11, 5 }
 0x1c3   :  { %v3469_v46 = vsel %vm6921_vm3, %v3464_v10, %v3468_v29  ;;  %v3589_v40 = vunpack.c.l.b16 %v3459_v56  ;;  %v3744_v45 = vsel %vm7216_vm6, %v3742_v6, %v3743_v63  ;;  %v3797_v5 = vsel %vm7216_vm6, %v6420_v38, %v3796_v21 }
 0x1c4   :  { %v3590_v3 = vunpack.c.l.b16 %v3469_v46  ;;  %v3832_v20 = vunpack.c.l.b16 %v3744_v45  ;;  %v3798_v14 = vrot.slane %v3796_v21, 4  ;;  %v3628_v41 = vsel %vm150_vm0, %v3602_v50, 0 }
 0x1c5   :  { %v3847_v26 = vunpack.c.l.b16 %v3797_v5  ;;  %v3231_v58 = vshrl.u32 %v9176_v15, 16  ;;  %3670 = vmatpush.bf16.xpose.msrb.mxu0 %v3628_v41  ;;  %v3234_v36 = vshll.u32 %v9176_v15, 16  ;;  %v3240_v37 = vshll.u32 %v9185_v44, 16 }
 0x1c6   :  { %v3610_v19 = vpack.c.b16 %v3590_v3, %v3589_v40  ;;  %v3859_v0 = vpack.c.b16 %v3832_v20, %v3831_v51  ;;  %v3800_v60 = vsel %vm7216_vm6, %v3798_v14, %v3799_v32  ;;  %v3244_v11 = vshrl.u32 %v9185_v44, 16  ;;  %v9237_v20 = vld [vmem:[%s10740_s0 + $0xe4] sm:$0xf] }
 0x1c7   :  { %v3233_v30 = vrot.slane %v3231_v58, 4  ;;  %v3250_v52 = vshll.u32 %v9192_v2, 16  ;;  %v3848_v49 = vunpack.c.l.b16 %v3800_v60  ;;  %v3236_v53 = vrot.slane %v3234_v36, 5 }
 0x1c8   :  { %v3652_v43 = vsel %vm150_vm0, %v3610_v19, 0  ;;  %v3887_v39 = vsel %vm150_vm0, %v3859_v0, 0  ;;  %v3242_v23 = vrot.slane %v3240_v37, 5  ;;  %v3246_v27 = vrot.slane %v3244_v11, 4  ;;  %v9250_v0 = vld [vmem:[%s10740_s0 + $0xe8] sm:$0xf] }
 0x1c9   :  { %3683 = vmatpush.bf16.xpose.msrb.mxu1 %v3652_v43  ;;  %3925 = vmatpush.bf16.xpose.msrb.mxu2 %v3887_v39  ;;  %v3252_v16 = vrot.slane %v3250_v52, 5  ;;  %v3423_v8 = vshrl.u32 %v9202_v7, 16  ;;  %v3867_v62 = vpack.c.b16 %v3848_v49, %v3847_v26  ;;  %v3237_v54 = vor.u32 %v3236_v53, %v3233_v30  ;;  %v9260_v30 = vld [vmem:[%s10740_s0 + $0xec] sm:$0x1] }
 0x1ca   :  { %v3426_v29 = vshll.u32 %v9202_v7, 16  ;;  %v3432_v47 = vshll.u32 %v9211_v28, 16  ;;  %v3247_v42 = vor.u32 %v3246_v27, %v3242_v23  ;;  %v3436_v24 = vshrl.u32 %v9211_v28, 16 }
 0x1cb   :  { %v3425_v22 = vrot.slane %v3423_v8, 4  ;;  %v3442_v9 = vshll.u32 %v9218_v35, 16  ;;  %v3911_v59 = vsel %vm150_vm0, %v3867_v62, 0  ;;  %v3238_v12 = vrot.slane %v3237_v54, 4 }
 0x1cc   :  { %v3428_v63 = vrot.slane %v3426_v29, 5  ;;  %v3434_v17 = vrot.slane %v3432_v47, 5  ;;  %3938 = vmatpush.bf16.xpose.msrb.mxu3 %v3911_v59  ;;  %v3248_v10 = vrot.slane %v3247_v42, 4  ;;  %v3438_v31 = vrot.slane %v3436_v24, 4  ;;  %v9277_v47 = vld [vmem:[%s10740_s0 + $0x148] sm:$0xf] }
 0x1cd   :  { %v3444_v6 = vrot.slane %v3442_v9, 5  ;;  %v6411_v56 = vrot.slane %v9098_v4, 9  ;;  %v3243_v51 = vsel %vm6921_vm3, %v3238_v12, %v3242_v23  ;;  %v3733_v21 = vrot.slane %v9112_v57, 5  ;;  %v9283_v59 = vld [vmem:[%s10740_s0 + $0x14c] sm:$0x1] }
 0x1ce   :  { %v3429_v38 = vor.u32 %v3428_v63, %v3425_v22  ;;  %v3736_v50 = vrot.slane %v9121_v13, 5  ;;  %v3253_v46 = vsel %vm6921_vm3, %v3248_v10, %v3252_v16  ;;  %v3571_v40 = vunpack.c.l.b16 %v3243_v51  ;;  %v9268_v16 = vld [vmem:[%s10740_s0 + $0x144] sm:$0xf] }
 0x1cf   :  { %v3439_v45 = vor.u32 %v3438_v31, %v3434_v17  ;;  %v6419_v3 = vrot.slane %v9126_v34, 9  ;;  %v3572_v4 = vunpack.c.l.b16 %v3253_v46  ;;  %v3734_v14 = vsel %vm7216_vm6, %v6411_v56, %v3733_v21  ;;  %v3022_v31 = vld [vmem:[%s10741_s1] sm:$0x3] }
 0x1d0   :  { %v3430_v5 = vrot.slane %v3429_v38, 4  ;;  %v3735_v57 = vrot.slane %v3733_v21, 4  ;;  %v3829_v13 = vunpack.c.l.b16 %v3734_v14  ;;  %v3789_v32 = vrot.slane %v9138_v18, 5  ;;  %6403 = vmatmul.msk.bf16.vlgmr.msra.gmra.mxu2 %vm150_vm0, %v3022_v31  ;;  %6404 = vmatmul.msk.bf16.vlgmr.msra.gmra.mxu3 %vm150_vm0, %v3022_v31 }
 0x1d1   :  { %v3440_v41 = vrot.slane %v3439_v45, 4  ;;  %v3792_v26 = vrot.slane %v9145_v25, 5  ;;  %v3601_v58 = vpack.c.b16 %v3572_v4, %v3571_v40  ;;  %v3207_v36 = vshrl.u32 %v9237_v20, 16 }
 0x1d2   :  { %v3435_v34 = vsel %vm6921_vm3, %v3430_v5, %v3434_v17  ;;  %v3737_v19 = vsel %vm7216_vm6, %v3735_v57, %v3736_v50  ;;  %v3790_v25 = vsel %vm7216_vm6, %v6419_v3, %v3789_v32  ;;  %v3791_v43 = vrot.slane %v3789_v32, 4 }
 0x1d3   :  { %v3445_v37 = vsel %vm6921_vm3, %v3440_v41, %v3444_v6  ;;  %v3587_v18 = vunpack.c.l.b16 %v3435_v34  ;;  %v3830_v60 = vunpack.c.l.b16 %v3737_v19  ;;  %v3625_v11 = vsel %vm150_vm0, %v3601_v58, 0 }
 0x1d4   :  { %v3588_v52 = vunpack.c.l.b16 %v3445_v37  ;;  %v3845_v39 = vunpack.c.l.b16 %v3790_v25  ;;  %3671 = vmatpush.bf16.xpose.msrb.mxu0 %v3625_v11  ;;  %v3209_v53 = vrot.slane %v3207_v36, 4  ;;  %v3210_v23 = vshll.u32 %v9237_v20, 16 }
 0x1d5   :  { %v3858_v49 = vpack.c.b16 %v3830_v60, %v3829_v13  ;;  %v3216_v27 = vshll.u32 %v9250_v0, 16  ;;  %v3793_v62 = vsel %vm7216_vm6, %v3791_v43, %v3792_v26  ;;  %v3220_v54 = vshrl.u32 %v9250_v0, 16  ;;  %v9308_v60 = vld [vmem:[%s10740_s0 + $0xd8] sm:$0xf] }
 0x1d6   :  { %v3609_v8 = vpack.c.b16 %v3588_v52, %v3587_v18  ;;  %v3226_v29 = vshll.u32 %v9260_v30, 16  ;;  %v3846_v22 = vunpack.c.l.b16 %v3793_v62  ;;  %v3212_v24 = vrot.slane %v3210_v23, 5  ;;  %v9321_v23 = vld [vmem:[%s10740_s0 + $0xdc] sm:$0xf] }
 0x1d7   :  { %v3884_v42 = vsel %vm150_vm0, %v3858_v49, 0  ;;  %v3218_v9 = vrot.slane %v3216_v27, 5  ;;  %v3222_v63 = vrot.slane %v3220_v54, 4  ;;  %v3399_v10 = vshrl.u32 %v9268_v16, 16  ;;  %v9331_v54 = vld [vmem:[%s10740_s0 + $0xe0] sm:$0x1] }
 0x1d8   :  { %v3649_v12 = vsel %vm150_vm0, %v3609_v8, 0  ;;  %3926 = vmatpush.bf16.xpose.msrb.mxu2 %v3884_v42  ;;  %v3228_v17 = vrot.slane %v3226_v29, 5  ;;  %v3866_v6 = vpack.c.b16 %v3846_v22, %v3845_v39  ;;  %v3213_v56 = vor.u32 %v3212_v24, %v3209_v53 }
 0x1d9   :  { %3684 = vmatpush.bf16.xpose.msrb.mxu1 %v3649_v12  ;;  %v3402_v51 = vshll.u32 %v9268_v16, 16  ;;  %v3408_v38 = vshll.u32 %v9277_v47, 16  ;;  %v3223_v21 = vor.u32 %v3222_v63, %v3218_v9  ;;  %v3401_v50 = vrot.slane %v3399_v10, 4  ;;  %v9339_v10 = vld [vmem:[%s10740_s0 + $0x138] sm:$0xf] }
 0x1da   :  { %v3412_v46 = vshrl.u32 %v9277_v47, 16  ;;  %v3418_v40 = vshll.u32 %v9283_v59, 16  ;;  %v3908_v45 = vsel %vm150_vm0, %v3866_v6, 0  ;;  %v3214_v3 = vrot.slane %v3213_v56, 4 }
 0x1db   :  { %v3404_v4 = vrot.slane %v3402_v51, 5  ;;  %v3410_v5 = vrot.slane %v3408_v38, 5  ;;  %3939 = vmatpush.bf16.xpose.msrb.mxu3 %v3908_v45  ;;  %v3224_v14 = vrot.slane %v3223_v21, 4  ;;  %v6410_v13 = vrot.slane %v9176_v15, 9  ;;  %v9348_v38 = vld [vmem:[%s10740_s0 + $0x13c] sm:$0xf] }
 0x1dc   :  { %v3414_v57 = vrot.slane %v3412_v46, 4  ;;  %v3420_v41 = vrot.slane %v3418_v40, 5  ;;  %v3219_v32 = vsel %vm6921_vm3, %v3214_v3, %v3218_v9  ;;  %v3726_v58 = vrot.slane %v9185_v44, 5  ;;  %v9354_v45 = vld [vmem:[%s10740_s0 + $0x140] sm:$0x1] }
 0x1dd   :  { %v3405_v26 = vor.u32 %v3404_v4, %v3401_v50  ;;  %v3729_v34 = vrot.slane %v9192_v2, 5  ;;  %v3229_v19 = vsel %vm6921_vm3, %v3224_v14, %v3228_v17  ;;  %v3569_v36 = vunpack.c.l.b16 %v3219_v32 }
 0x1de   :  { %v3415_v37 = vor.u32 %v3414_v57, %v3410_v5  ;;  %v6418_v18 = vrot.slane %v9202_v7, 9  ;;  %v3570_v15 = vunpack.c.l.b16 %v3229_v19  ;;  %v3727_v11 = vsel %vm7216_vm6, %v6410_v13, %v3726_v58  ;;  %v6772_v57 = vld [vmem:[%s10740_s0 + $0x138] sm:$0xff] }
 0x1df   :  { %v3406_v25 = vrot.slane %v3405_v26, 4  ;;  %v3728_v44 = vrot.slane %v3726_v58, 4  ;;  %v3827_v2 = vunpack.c.l.b16 %v3727_v11  ;;  %v3782_v43 = vrot.slane %v9211_v28, 5  ;;  %v6780_v58 = vld [vmem:[%s10740_s0 + $0x198] sm:$0xff] }
 0x1e0   :  { %v3416_v52 = vrot.slane %v3415_v37, 4  ;;  %v3785_v39 = vrot.slane %v9218_v35, 5  ;;  %v3600_v49 = vpack.c.b16 %v3570_v15, %v3569_v36  ;;  %v3183_v27 = vshrl.u32 %v9308_v60, 16 }
 0x1e1   :  { %v3411_v7 = vsel %vm6921_vm3, %v3406_v25, %v3410_v5  ;;  %v3730_v53 = vsel %vm7216_vm6, %v3728_v44, %v3729_v34  ;;  %v3783_v35 = vsel %vm7216_vm6, %v6418_v18, %v3782_v43  ;;  %v3784_v22 = vrot.slane %v3782_v43, 4 }
 0x1e2   :  { %v3421_v8 = vsel %vm6921_vm3, %v3416_v52, %v3420_v41  ;;  %v3585_v28 = vunpack.c.l.b16 %v3411_v7  ;;  %v3828_v62 = vunpack.c.l.b16 %v3730_v53  ;;  %v3622_v29 = vsel %vm150_vm0, %v3600_v49, 0 }
 0x1e3   :  { %v3586_v42 = vunpack.c.l.b16 %v3421_v8  ;;  %v3843_v24 = vunpack.c.l.b16 %v3783_v35  ;;  %3672 = vmatpush.bf16.xpose.msrb.mxu0 %v3622_v29  ;;  %v3185_v12 = vrot.slane %v3183_v27, 4  ;;  %v3186_v63 = vshll.u32 %v9308_v60, 16  ;;  %v9374_v27 = vpop.f32.mrf.mxu0  ;;  %v9376_v8 = vpop.f32.mrf.mxu1 }
 0x1e4   :  { %v3857_v9 = vpack.c.b16 %v3828_v62, %v3827_v2  ;;  %v3192_v17 = vshll.u32 %v9321_v23, 16  ;;  %v3786_v6 = vsel %vm7216_vm6, %v3784_v22, %v3785_v39  ;;  %v3196_v56 = vshrl.u32 %v9321_v23, 16 }
 0x1e5   :  { %v3608_v31 = vpack.c.b16 %v3586_v42, %v3585_v28  ;;  %v3202_v51 = vshll.u32 %v9331_v54, 16  ;;  %v3844_v50 = vunpack.c.l.b16 %v3786_v6  ;;  %v3188_v46 = vrot.slane %v3186_v63, 5 }
 0x1e6   :  { %v3881_v21 = vsel %vm150_vm0, %v3857_v9, 0  ;;  %v3194_v40 = vrot.slane %v3192_v17, 5  ;;  %v3198_v4 = vrot.slane %v3196_v56, 4  ;;  %v3375_v14 = vshrl.u32 %v9339_v10, 16 }
 0x1e7   :  { %v3646_v3 = vsel %vm150_vm0, %v3608_v31, 0  ;;  %3927 = vmatpush.bf16.xpose.msrb.mxu2 %v3881_v21  ;;  %v3204_v5 = vrot.slane %v3202_v51, 5  ;;  %v3865_v41 = vpack.c.b16 %v3844_v50, %v3843_v24  ;;  %v3189_v13 = vor.u32 %v3188_v46, %v3185_v12  ;;  %v6771_v31 = vld [vmem:[%s10740_s0 + $0x12c] sm:$0xff] }
 0x1e8   :  { %3685 = vmatpush.bf16.xpose.msrb.mxu1 %v3646_v3  ;;  %v3378_v32 = vshll.u32 %v9339_v10, 16  ;;  %v3384_v26 = vshll.u32 %v9348_v38, 16  ;;  %v3199_v34 = vor.u32 %v3198_v4, %v3194_v40  ;;  %v3377_v19 = vrot.slane %v3375_v14, 4 }
 0x1e9   :  { %v3388_v36 = vshrl.u32 %v9348_v38, 16  ;;  %v3394_v37 = vshll.u32 %v9354_v45, 16  ;;  %v3905_v18 = vsel %vm150_vm0, %v3865_v41, 0  ;;  %v3190_v15 = vrot.slane %v3189_v13, 4 }
 0x1ea   :  { %v3380_v25 = vrot.slane %v3378_v32, 5  ;;  %v3386_v11 = vrot.slane %v3384_v26, 5  ;;  %3940 = vmatpush.bf16.xpose.msrb.mxu3 %v3905_v18  ;;  %v3200_v44 = vrot.slane %v3199_v34, 4  ;;  %v4105_v43 = vsel %vm150_vm0, %v6772_v57, 0 }
 0x1eb   :  { %v3390_v52 = vrot.slane %v3388_v36, 4  ;;  %v3396_v2 = vrot.slane %v3394_v37, 5  ;;  %v3195_v39 = vsel %vm6921_vm3, %v3190_v15, %v3194_v40  ;;  %v4129_v7 = vsel %vm150_vm0, %v6780_v58, 0  ;;  %v2179_v58 = vpop.f32.mrf.mxu0  ;;  %v2192_v34 = vpop.f32.mrf.mxu1 }
 0x1ec   :  { %v3381_v49 = vor.u32 %v3380_v25, %v3377_v19  ;;  %v6409_v53 = vrot.slane %v9237_v20, 9  ;;  %v3205_v28 = vsel %vm6921_vm3, %v3200_v44, %v3204_v5  ;;  %v3567_v62 = vunpack.c.l.b16 %v3195_v39 }
 0x1ed   :  { %v3391_v35 = vor.u32 %v3390_v52, %v3386_v11  ;;  %v3719_v29 = vrot.slane %v9250_v0, 5  ;;  %v3568_v42 = vunpack.c.l.b16 %v3205_v28  ;;  %v3722_v24 = vrot.slane %v9260_v30, 5  ;;  %v6779_v0 = vld [vmem:[%s10740_s0 + $0x18c] sm:$0xff] }
 0x1ee   :  { %v3382_v22 = vrot.slane %v3381_v49, 4  ;;  %v6417_v9 = vrot.slane %v9268_v16, 9  ;;  %v3775_v17 = vrot.slane %v9277_v47, 5  ;;  %v3778_v56 = vrot.slane %v9283_v59, 5 }
 0x1ef   :  { %v3392_v12 = vrot.slane %v3391_v35, 4  ;;  %v3720_v20 = vsel %vm7216_vm6, %v6409_v53, %v3719_v29  ;;  %v3721_v63 = vrot.slane %v3719_v29, 4  ;;  %v3599_v6 = vpack.c.b16 %v3568_v42, %v3567_v62 }
 0x1f0   :  { %v3387_v30 = vsel %vm6921_vm3, %v3382_v22, %v3386_v11  ;;  %v3825_v16 = vunpack.c.l.b16 %v3720_v20  ;;  %v3776_v50 = vsel %vm7216_vm6, %v6417_v9, %v3775_v17  ;;  %v3777_v4 = vrot.slane %v3775_v17, 4  ;;  %v9447_v22 = vld [vmem:[%s10740_s0 + $0x198] sm:$0xf] }
 0x1f1   :  { %v3397_v51 = vsel %vm6921_vm3, %v3392_v12, %v3396_v2  ;;  %v3583_v21 = vunpack.c.l.b16 %v3387_v30  ;;  %v3723_v47 = vsel %vm7216_vm6, %v3721_v63, %v3722_v24  ;;  %v3619_v46 = vsel %vm150_vm0, %v3599_v6, 0  ;;  %v9432_v2 = vld [vmem:[%s10740_s0 + $0x140] sm:$0x1]  ;;  %v9456_v12 = vld [vmem:[%s10740_s0 + $0x19c] sm:$0xf] }
 0x1f2   :  { %v3584_v40 = vunpack.c.l.b16 %v3397_v51  ;;  %v3826_v3 = vunpack.c.l.b16 %v3723_v47  ;;  %3673 = vmatpush.bf16.xpose.msrb.mxu0 %v3619_v46  ;;  %v3841_v5 = vunpack.c.l.b16 %v3776_v50  ;;  %v4102_v14 = vsel %vm150_vm0, %v6771_v31, 0  ;;  %v6770_v51 = vld [vmem:[%s10740_s0 + $0x120] sm:$0xff] }
 0x1f3   :  { %v9404_v59 = vsel %vm150_vm0, %v6779_v0, 0  ;;  %v6408_v57 = vrot.slane %v9308_v60, 9  ;;  %v3779_v32 = vsel %vm7216_vm6, %v3777_v4, %v3778_v56  ;;  %v3712_v26 = vrot.slane %v9321_v23, 5  ;;  %v9416_v60 = vld [vmem:[%s10740_s0 + $0x138] sm:$0xf] }
 0x1f4   :  { %v3607_v41 = vpack.c.b16 %v3584_v40, %v3583_v21  ;;  %v3856_v13 = vpack.c.b16 %v3826_v3, %v3825_v16  ;;  %v3842_v19 = vunpack.c.l.b16 %v3779_v32  ;;  %v3715_v36 = vrot.slane %v9331_v54, 5  ;;  %v9425_v54 = vld [vmem:[%s10740_s0 + $0x13c] sm:$0xf]  ;;  %v9462_v0 = vld [vmem:[%s10740_s0 + $0x1a0] sm:$0x1] }
 0x1f5   :  { %v6416_v37 = vrot.slane %v9339_v10, 9  ;;  %v3768_v18 = vrot.slane %v9348_v38, 5  ;;  %v3713_v23 = vsel %vm7216_vm6, %v6408_v57, %v3712_v26  ;;  %v3714_v11 = vrot.slane %v3712_v26, 4  ;;  %v6778_v40 = vld [vmem:[%s10740_s0 + $0x180] sm:$0xff] }
 0x1f6   :  { %v3643_v15 = vsel %vm150_vm0, %v3607_v41, 0  ;;  %v3878_v25 = vsel %vm150_vm0, %v3856_v13, 0  ;;  %v3864_v10 = vpack.c.b16 %v3842_v19, %v3841_v5  ;;  %v3823_v38 = vunpack.c.l.b16 %v3713_v23  ;;  %v9497_v23 = vpop.f32.mrf.mxu2 }
 0x1f7   :  { %3686 = vmatpush.bf16.xpose.msrb.mxu1 %v3643_v15  ;;  %3928 = vmatpush.bf16.xpose.msrb.mxu2 %v3878_v25  ;;  %v3769_v44 = vsel %vm7216_vm6, %v6416_v37, %v3768_v18  ;;  %v3770_v52 = vrot.slane %v3768_v18, 4  ;;  %v3716_v39 = vsel %vm7216_vm6, %v3714_v11, %v3715_v36  ;;  %v3771_v49 = vrot.slane %v9354_v45, 5  ;;  %v9483_v36 = vld [vmem:[%s10740_s0 + $0x12c] sm:$0xf]  ;;  %v9499_v11 = vpop.f32.mrf.mxu3 }
 0x1f8   :  { %v3839_v53 = vunpack.c.l.b16 %v3769_v44  ;;  %v4328_v28 = vshrl.u32 %v9416_v60, 16  ;;  %v3902_v62 = vsel %vm150_vm0, %v3864_v10, 0  ;;  %v3824_v35 = vunpack.c.l.b16 %v3716_v39  ;;  %v9513_v39 = vld [vmem:[%s10740_s0 + $0x134] sm:$0x1] }
 0x1f9   :  { %v4331_v29 = vshll.u32 %v9416_v60, 16  ;;  %v4337_v42 = vshll.u32 %v9425_v54, 16  ;;  %3941 = vmatpush.bf16.xpose.msrb.mxu3 %v3902_v62  ;;  %v4341_v24 = vshrl.u32 %v9425_v54, 16  ;;  %v4347_v9 = vshll.u32 %v9432_v2, 16 }
 0x1fa   :  { %4131 = vmatpush.bf16.xpose.msra.mxu0 %v4105_v43  ;;  %v6405_v43 = vld [vmem:[%s10741_s1 + $0x2] sm:$0x3]  ;;  %v4330_v45 = vrot.slane %v4328_v28, 4  ;;  %v3855_v20 = vpack.c.b16 %v3824_v35, %v3823_v38  ;;  %v4520_v16 = vshrl.u32 %v9447_v22, 16  ;;  %v4523_v56 = vshll.u32 %v9447_v22, 16 }
 0x1fb   :  { %6406 = vmatmul.msk.bf16.vlgmr.msrb.gmra.mxu0 %vm150_vm0, %v6405_v43  ;;  %v4333_v17 = vrot.slane %v4331_v29, 5  ;;  %v4339_v31 = vrot.slane %v4337_v42, 5  ;;  %v4343_v6 = vrot.slane %v4341_v24, 4  ;;  %v4349_v30 = vrot.slane %v4347_v9, 5  ;;  %v9524_v35 = vld [vmem:[%s10740_s0 + $0x18c] sm:$0xf] }
 0x1fc   :  { %v3875_v21 = vsel %vm150_vm0, %v3855_v20, 0  ;;  %v4529_v46 = vshll.u32 %v9456_v12, 16  ;;  %v4522_v4 = vrot.slane %v4520_v16, 4  ;;  %v4525_v5 = vrot.slane %v4523_v56, 5  ;;  %v9529_v24 = vld [vmem:[%s10740_s0 + $0x190] sm:$0xf] }
 0x1fd   :  { %v4334_v50 = vor.u32 %v4333_v17, %v4330_v45  ;;  %v4344_v3 = vor.u32 %v4343_v6, %v4339_v31  ;;  %v4539_v32 = vshll.u32 %v9462_v0, 16  ;;  %v4099_v19 = vsel %vm150_vm0, %v6770_v51, 0  ;;  %v9539_v16 = vld [vmem:[%s10740_s0 + $0x194] sm:$0x1] }
 0x1fe   :  { %6407 = vmatmul.msk.bf16.vlgmr.msrb.gmra.mxu1 %vm150_vm0, %v6405_v43  ;;  %v4531_v13 = vrot.slane %v4529_v46, 5  ;;  %v4526_v58 = vor.u32 %v4525_v5, %v4522_v4  ;;  %v4123_v15 = vsel %vm150_vm0, %v6778_v40, 0  ;;  %v9490_v25 = vadd.f32 %v9374_v27, %v9153_v55  ;;  %v6424_v27 = vld [vmem:[%s10741_s1 + $0x4] sm:$0x3]  ;;  %v6769_v51 = vld [vmem:[%s10740_s0 + $0x114] sm:$0xff] }
 0x1ff   :  { %4144 = vmatpush.bf16.xpose.msra.mxu1 %v4129_v7  ;;  %v3772_v7 = vsel %vm7216_vm6, %v3770_v52, %v3771_v49  ;;  %3929 = vmatpush.bf16.xpose.msrb.mxu2 %v3875_v21  ;;  %v4335_v41 = vrot.slane %v4334_v50, 4  ;;  %v4345_v26 = vrot.slane %v4344_v3, 4  ;;  %v4541_v18 = vrot.slane %v4539_v32, 5 }
 0x200   :  { %v3840_v63 = vunpack.c.l.b16 %v3772_v7  ;;  %v4527_v44 = vrot.slane %v4526_v58, 4  ;;  %v9505_v55 = vadd.f32 %v9376_v8, %v9158_v61  ;;  %v4304_v49 = vshrl.u32 %v9483_v36, 16 }
 0x201   :  { %v4340_v37 = vsel %vm6921_vm3, %v4335_v41, %v4339_v31  ;;  %v4350_v10 = vsel %vm6921_vm3, %v4345_v26, %v4349_v30  ;;  %v4323_v17 = vshll.u32 %v9513_v39, 16  ;;  %v4496_v56 = vshrl.u32 %v9524_v35, 16  ;;  %v2705_v41 = vpop.f32.mrf.mxu3 }
 0x202   :  { %4132 = vmatpush.bf16.xpose.msra.mxu0 %v4102_v14  ;;  %v3863_v47 = vpack.c.b16 %v3840_v63, %v3839_v53  ;;  %v4533_v14 = vshrl.u32 %v9456_v12, 16  ;;  %v4558_v38 = vunpack.c.l.b16 %v4340_v37  ;;  %v4559_v43 = vunpack.c.l.b16 %v4350_v10  ;;  %v9565_v10 = vld [vmem:[%s10740_s0 + $0x124] sm:$0xf] }
 0x203   :  { %v4307_v53 = vshll.u32 %v9483_v36, 16  ;;  %v4532_v28 = vsel %vm6921_vm3, %v4527_v44, %v4531_v13  ;;  %v4306_v7 = vrot.slane %v4304_v49, 4  ;;  %v4499_v50 = vshll.u32 %v9524_v35, 16 }
 0x204   :  { %v3899_v57 = vsel %vm150_vm0, %v3863_v47, 0  ;;  %v4535_v34 = vrot.slane %v4533_v14, 4  ;;  %v4583_v29 = vpack.c.b16 %v4559_v43, %v4558_v38  ;;  %v4574_v42 = vunpack.c.l.b16 %v4532_v28  ;;  %v6777_v14 = vld [vmem:[%s10740_s0 + $0x174] sm:$0xff] }
 0x205   :  { %3942 = vmatpush.bf16.xpose.msrb.mxu3 %v3899_v57  ;;  %v4309_v45 = vrot.slane %v4307_v53, 5  ;;  %v4325_v47 = vrot.slane %v4323_v17, 5  ;;  %v4505_v46 = vshll.u32 %v9529_v24, 16  ;;  %v4498_v4 = vrot.slane %v4496_v56, 4  ;;  %v2692_v57 = vpop.f32.mrf.mxu2  ;;  %v9588_v17 = vld [vmem:[%s10740_s0 + $0x184] sm:$0xf] }
 0x206   :  { %v4536_v52 = vor.u32 %v4535_v34, %v4531_v13  ;;  %6425 = vmatmul.msk.bf16.vlgmr.msrb.gmra.mxu2 %vm150_vm0, %v6424_v27  ;;  %v4617_v31 = vsel %vm150_vm0, %v4583_v29, 0  ;;  %v4509_v5 = vshrl.u32 %v9529_v24, 16  ;;  %v4501_v32 = vrot.slane %v4499_v50, 5  ;;  %v9556_v34 = vld [vmem:[%s10740_s0 + $0x120] sm:$0xf] }
 0x207   :  { %4145 = vmatpush.bf16.xpose.msra.mxu1 %v9404_v59  ;;  %v9495_v59 = vld [vmem:[%s10740_s0 + $0x130] sm:$0xf]  ;;  %v4310_v30 = vor.u32 %v4309_v45, %v4306_v7  ;;  %4643 = vmatpush.bf16.xpose.msra.mxu2 %v4617_v31  ;;  %v4507_v26 = vrot.slane %v4505_v46, 5  ;;  %v4515_v58 = vshll.u32 %v9539_v16, 16  ;;  %v4120_v28 = vsel %vm150_vm0, %v6777_v14, 0  ;;  %v6768_v14 = vld [vmem:[%s10740_s0 + $0x108] sm:$0xff] }
 0x208   :  { %v4537_v62 = vrot.slane %v4536_v52, 4  ;;  %v4313_v61 = vshll.u32 %v9495_v59, 16  ;;  %v4317_v8 = vshrl.u32 %v9495_v59, 16  ;;  %v4502_v52 = vor.u32 %v4501_v32, %v4498_v4  ;;  %v9582_v7 = vld [vmem:[%s10740_s0 + $0x180] sm:$0xf] }
 0x209   :  { %v4311_v3 = vrot.slane %v4310_v30, 4  ;;  %v4517_v43 = vrot.slane %v4515_v58, 5  ;;  %v4289_v29 = vshll.u32 %v9565_v10, 16  ;;  %v4475_v57 = vshll.u32 %v9582_v7, 16 }
 0x20a   :  { %4133 = vmatpush.bf16.xpose.msra.mxu0 %v4099_v19  ;;  %v4542_v9 = vsel %vm6921_vm3, %v4537_v62, %v4541_v18  ;;  %v4315_v20 = vrot.slane %v4313_v61, 5  ;;  %v4319_v63 = vrot.slane %v4317_v8, 4  ;;  %v4511_v18 = vrot.slane %v4509_v5, 4 }
 0x20b   :  { %v4575_v6 = vunpack.c.l.b16 %v4542_v9  ;;  %v4280_v62 = vshrl.u32 %v9556_v34, 16  ;;  %v4503_v61 = vrot.slane %v4502_v52, 4  ;;  %v4283_v8 = vshll.u32 %v9556_v34, 16 }
 0x20c   :  { %v4320_v21 = vor.u32 %v4319_v63, %v4315_v20  ;;  %6426 = vmatmul.msk.bf16.vlgmr.msrb.gmra.mxu3 %vm150_vm0, %v6424_v27  ;;  %v4316_v37 = vsel %vm6921_vm3, %v4311_v3, %v4315_v20  ;;  %v9572_v27 = vld [vmem:[%s10740_s0 + $0x128] sm:$0x1]  ;;  %v4512_v53 = vor.u32 %v4511_v18, %v4507_v26  ;;  %v4291_v30 = vrot.slane %v4289_v29, 5 }
 0x20d   :  { %v4591_v40 = vpack.c.b16 %v4575_v6, %v4574_v42  ;;  %v4556_v44 = vunpack.c.l.b16 %v4316_v37  ;;  %v4293_v42 = vshrl.u32 %v9565_v10, 16  ;;  %v4282_v20 = vrot.slane %v4280_v62, 4  ;;  %v6776_v18 = vld [vmem:[%s10740_s0 + $0x168] sm:$0xff] }
 0x20e   :  { %v4321_v13 = vrot.slane %v4320_v21, 4  ;;  %v4513_v9 = vrot.slane %v4512_v53, 4  ;;  %v4299_v63 = vshll.u32 %v9572_v27, 16  ;;  %v4508_v31 = vsel %vm6921_vm3, %v4503_v61, %v4507_v26 }
 0x20f   :  { %4146 = vmatpush.bf16.xpose.msra.mxu1 %v4123_v15  ;;  %v4641_v19 = vsel %vm150_vm0, %v4591_v40, 0  ;;  %v4096_v15 = vsel %vm150_vm0, %v6769_v51, 0  ;;  %v4285_v6 = vrot.slane %v4283_v8, 5  ;;  %v4295_v56 = vrot.slane %v4293_v42, 4  ;;  %v9595_v51 = vld [vmem:[%s10740_s0 + $0x188] sm:$0x1] }
 0x210   :  { %4656 = vmatpush.bf16.xpose.msra.mxu3 %v4641_v19  ;;  %v4326_v38 = vsel %vm6921_vm3, %v4321_v13, %v4325_v47  ;;  %v4518_v47 = vsel %vm6921_vm3, %v4513_v9, %v4517_v43  ;;  %v4572_v50 = vunpack.c.l.b16 %v4508_v31  ;;  %v4301_v46 = vrot.slane %v4299_v63, 5  ;;  %v9614_v43 = vld [vmem:[%s10740_s0 + $0x114] sm:$0xf]  ;;  %v9630_v9 = vld [vmem:[%s10740_s0 + $0x11c] sm:$0x1] }
 0x211   :  { %v4557_v49 = vunpack.c.l.b16 %v4326_v38  ;;  %v4573_v40 = vunpack.c.l.b16 %v4518_v47  ;;  %v4286_v3 = vor.u32 %v4285_v6, %v4282_v20  ;;  %v4296_v4 = vor.u32 %v4295_v56, %v4291_v30 }
 0x212   :  { %4134 = vmatpush.bf16.xpose.msra.mxu0 %v4096_v15  ;;  %v4472_v5 = vshrl.u32 %v9582_v7, 16  ;;  %v4481_v41 = vshll.u32 %v9588_v17, 16  ;;  %v4485_v13 = vshrl.u32 %v9588_v17, 16  ;;  %v4491_v32 = vshll.u32 %v9595_v51, 16 }
 0x213   :  { %v4582_v45 = vpack.c.b16 %v4557_v49, %v4556_v44  ;;  %v4590_v26 = vpack.c.b16 %v4573_v40, %v4572_v50  ;;  %v4287_v58 = vrot.slane %v4286_v3, 4  ;;  %v4297_v19 = vrot.slane %v4296_v4, 4 }
 0x214   :  { %v4474_v37 = vrot.slane %v4472_v5, 4  ;;  %v4477_v15 = vrot.slane %v4475_v57, 5  ;;  %v4483_v38 = vrot.slane %v4481_v41, 5  ;;  %v4487_v44 = vrot.slane %v4485_v13, 4  ;;  %v9659_v5 = vld [vmem:[%s10740_s0 + $0x178] sm:$0xf] }
 0x215   :  { %v4614_v21 = vsel %vm150_vm0, %v4582_v45, 0  ;;  %v4493_v52 = vrot.slane %v4491_v32, 5  ;;  %v4638_v49 = vsel %vm150_vm0, %v4590_v26, 0  ;;  %v4292_v53 = vsel %vm6921_vm3, %v4287_v58, %v4291_v30  ;;  %v9625_v45 = vld [vmem:[%s10740_s0 + $0x118] sm:$0xf] }
 0x216   :  { %4644 = vmatpush.bf16.xpose.msra.mxu2 %v4614_v21  ;;  %v4093_v62 = vsel %vm150_vm0, %v6768_v14, 0  ;;  %v4554_v61 = vunpack.c.l.b16 %v4292_v53  ;;  %v4478_v29 = vor.u32 %v4477_v15, %v4474_v37  ;;  %v4488_v42 = vor.u32 %v4487_v44, %v4483_v38  ;;  %v9664_v32 = vld [vmem:[%s10740_s0 + $0x17c] sm:$0x1] }
 0x217   :  { %4147 = vmatpush.bf16.xpose.msra.mxu1 %v4120_v28  ;;  %v4302_v28 = vsel %vm6921_vm3, %v4297_v19, %v4301_v46  ;;  %v4117_v20 = vsel %vm150_vm0, %v6776_v18, 0  ;;  %v9635_v63 = vadd.f32 %v9497_v23, %v9490_v25  ;;  %v9639_v31 = vadd.f32 %v9499_v11, %v9505_v55  ;;  %v9649_v23 = vld [vmem:[%s10740_s0 + $0x174] sm:$0xf]  ;;  %v6767_v18 = vld [vmem:[%s10740_s0 + $0xfc] sm:$0xff] }
 0x218   :  { %4657 = vmatpush.bf16.xpose.msra.mxu3 %v4638_v49  ;;  %v4555_v8 = vunpack.c.l.b16 %v4302_v28  ;;  %v4256_v6 = vshrl.u32 %v9614_v43, 16  ;;  %v4479_v56 = vrot.slane %v4478_v29, 4  ;;  %v4489_v21 = vrot.slane %v4488_v42, 4  ;;  %v6775_v49 = vld [vmem:[%s10740_s0 + $0x15c] sm:$0xff] }
 0x219   :  { %v4259_v47 = vshll.u32 %v9614_v43, 16  ;;  %v4265_v46 = vshll.u32 %v9625_v45, 16  ;;  %v4269_v40 = vshrl.u32 %v9625_v45, 16  ;;  %v4275_v25 = vshll.u32 %v9630_v9, 16 }
 0x21a   :  { %4135 = vmatpush.bf16.xpose.msra.mxu0 %v4093_v62  ;;  %v4581_v30 = vpack.c.b16 %v4555_v8, %v4554_v61  ;;  %v4258_v50 = vrot.slane %v4256_v6, 4  ;;  %v4484_v55 = vsel %vm6921_vm3, %v4479_v56, %v4483_v38  ;;  %v4494_v3 = vsel %vm6921_vm3, %v4489_v21, %v4493_v52  ;;  %v9681_v6 = vld [vmem:[%s10740_s0 + $0x108] sm:$0xf] }
 0x21b   :  { %v4261_v4 = vrot.slane %v4259_v47, 5  ;;  %v4570_v14 = vunpack.c.l.b16 %v4484_v55  ;;  %v4571_v57 = vunpack.c.l.b16 %v4494_v3  ;;  %v4267_v41 = vrot.slane %v4265_v46, 5  ;;  %v9694_v46 = vld [vmem:[%s10740_s0 + $0x110] sm:$0x1] }
 0x21c   :  { %v4611_v11 = vsel %vm150_vm0, %v4581_v30, 0  ;;  %v4271_v13 = vrot.slane %v4269_v40, 4  ;;  %v4277_v58 = vrot.slane %v4275_v25, 5  ;;  %v4448_v19 = vshrl.u32 %v9649_v23, 16 }
 0x21d   :  { %v4262_v26 = vor.u32 %v4261_v4, %v4258_v50  ;;  %v4451_v37 = vshll.u32 %v9649_v23, 16  ;;  %v4589_v15 = vpack.c.b16 %v4571_v57, %v4570_v14  ;;  %v4457_v44 = vshll.u32 %v9659_v5, 16  ;;  %v9689_v50 = vld [vmem:[%s10740_s0 + $0x10c] sm:$0xf] }
 0x21e   :  { %4645 = vmatpush.bf16.xpose.msra.mxu2 %v4611_v11  ;;  %v4272_v38 = vor.u32 %v4271_v13, %v4267_v41  ;;  %v4461_v52 = vshrl.u32 %v9659_v5, 16  ;;  %v4450_v28 = vrot.slane %v4448_v19, 4  ;;  %v4467_v61 = vshll.u32 %v9664_v32, 16 }
 0x21f   :  { %4148 = vmatpush.bf16.xpose.msra.mxu1 %v4117_v20  ;;  %v4263_v53 = vrot.slane %v4262_v26, 4  ;;  %v4453_v62 = vrot.slane %v4451_v37, 5  ;;  %v4635_v8 = vsel %vm150_vm0, %v4589_v15, 0  ;;  %v4459_v42 = vrot.slane %v4457_v44, 5  ;;  %v9714_v44 = vld [vmem:[%s10740_s0 + $0x16c] sm:$0xf] }
 0x220   :  { %v4273_v29 = vrot.slane %v4272_v38, 4  ;;  %v4463_v20 = vrot.slane %v4461_v52, 4  ;;  %4658 = vmatpush.bf16.xpose.msra.mxu3 %v4635_v8  ;;  %v4469_v21 = vrot.slane %v4467_v61, 5  ;;  %v4090_v47 = vsel %vm150_vm0, %v6767_v18, 0  ;;  %v9709_v38 = vld [vmem:[%s10740_s0 + $0x168] sm:$0xf] }
 0x221   :  { %v4268_v30 = vsel %vm6921_vm3, %v4263_v53, %v4267_v41  ;;  %v4454_v56 = vor.u32 %v4453_v62, %v4450_v28  ;;  %v4114_v55 = vsel %vm150_vm0, %v6775_v49, 0  ;;  %v4232_v14 = vshrl.u32 %v9681_v6, 16  ;;  %v9721_v62 = vld [vmem:[%s10740_s0 + $0x170] sm:$0x1] }
 0x222   :  { %v4278_v40 = vsel %vm6921_vm3, %v4273_v29, %v4277_v58  ;;  %v4552_v25 = vunpack.c.l.b16 %v4268_v30  ;;  %v4464_v11 = vor.u32 %v4463_v20, %v4459_v42  ;;  %4136 = vmatpush.bf16.xpose.msra.mxu0 %v4090_v47  ;;  %v4235_v57 = vshll.u32 %v9681_v6, 16  ;;  %v6766_v47 = vld [vmem:[%s10740_s0 + $0xf0] sm:$0xff] }
 0x223   :  { %v4553_v3 = vunpack.c.l.b16 %v4278_v40  ;;  %v4455_v4 = vrot.slane %v4454_v56, 4  ;;  %v4241_v13 = vshll.u32 %v9689_v50, 16  ;;  %v4245_v26 = vshrl.u32 %v9689_v50, 16 }
 0x224   :  { %v4465_v41 = vrot.slane %v4464_v11, 4  ;;  %v4251_v19 = vshll.u32 %v9694_v46, 16  ;;  %v4234_v18 = vrot.slane %v4232_v14, 4  ;;  %v4237_v15 = vrot.slane %v4235_v57, 5 }
 0x225   :  { %v4580_v58 = vpack.c.b16 %v4553_v3, %v4552_v25  ;;  %v4460_v37 = vsel %vm6921_vm3, %v4455_v4, %v4459_v42  ;;  %v4243_v53 = vrot.slane %v4241_v13, 5  ;;  %v4247_v28 = vrot.slane %v4245_v26, 4  ;;  %v6774_v3 = vld [vmem:[%s10740_s0 + $0x150] sm:$0xff]  ;;  %v9738_v13 = vld [vmem:[%s10740_s0 + $0xfc] sm:$0xf] }
 0x226   :  { %v4470_v52 = vsel %vm6921_vm3, %v4465_v41, %v4469_v21  ;;  %v4568_v49 = vunpack.c.l.b16 %v4460_v37  ;;  %v4238_v29 = vor.u32 %v4237_v15, %v4234_v18  ;;  %v4253_v42 = vrot.slane %v4251_v19, 5  ;;  %v9746_v18 = vld [vmem:[%s10740_s0 + $0x100] sm:$0xf] }
 0x227   :  { %4149 = vmatpush.bf16.xpose.msra.mxu1 %v4114_v55  ;;  %v4608_v61 = vsel %vm150_vm0, %v4580_v58, 0  ;;  %v4569_v8 = vunpack.c.l.b16 %v4470_v52  ;;  %v4248_v20 = vor.u32 %v4247_v28, %v4243_v53  ;;  %v4424_v30 = vshrl.u32 %v9709_v38, 16 }
 0x228   :  { %4646 = vmatpush.bf16.xpose.msra.mxu2 %v4608_v61  ;;  %v4427_v56 = vshll.u32 %v9709_v38, 16  ;;  %v4433_v21 = vshll.u32 %v9714_v44, 16  ;;  %v4239_v25 = vrot.slane %v4238_v29, 4  ;;  %v4437_v11 = vshrl.u32 %v9714_v44, 16  ;;  %v9754_v61 = vld [vmem:[%s10740_s0 + $0x104] sm:$0x1] }
 0x229   :  { %v4588_v40 = vpack.c.b16 %v4569_v8, %v4568_v49  ;;  %v4443_v55 = vshll.u32 %v9721_v62, 16  ;;  %v4249_v4 = vrot.slane %v4248_v20, 4  ;;  %v4426_v14 = vrot.slane %v4424_v30, 4 }
 0x22a   :  { %v4429_v57 = vrot.slane %v4427_v56, 5  ;;  %v4435_v41 = vrot.slane %v4433_v21, 5  ;;  %v4244_v19 = vsel %vm6921_vm3, %v4239_v25, %v4243_v53  ;;  %v4439_v58 = vrot.slane %v4437_v11, 4 }
 0x22b   :  { %v4632_v26 = vsel %vm150_vm0, %v4588_v40, 0  ;;  %v4445_v37 = vrot.slane %v4443_v55, 5  ;;  %v4254_v15 = vsel %vm6921_vm3, %v4249_v4, %v4253_v42  ;;  %v4550_v52 = vunpack.c.l.b16 %v4244_v19  ;;  %v9777_v19 = vld [vmem:[%s10740_s0 + $0x164] sm:$0x1] }
 0x22c   :  { %4659 = vmatpush.bf16.xpose.msra.mxu3 %v4632_v26  ;;  %v4430_v49 = vor.u32 %v4429_v57, %v4426_v14  ;;  %v4087_v28 = vsel %vm150_vm0, %v6766_v47, 0  ;;  %v4551_v53 = vunpack.c.l.b16 %v4254_v15  ;;  %v4440_v8 = vor.u32 %v4439_v58, %v4435_v41  ;;  %v9764_v47 = vld [vmem:[%s10740_s0 + $0x15c] sm:$0xf] }
 0x22d   :  { %4137 = vmatpush.bf16.xpose.msra.mxu0 %v4087_v28  ;;  %v4111_v29 = vsel %vm150_vm0, %v6774_v3, 0  ;;  %v4208_v20 = vshrl.u32 %v9738_v13, 16  ;;  %v4211_v42 = vshll.u32 %v9738_v13, 16  ;;  %v4217_v56 = vshll.u32 %v9746_v18, 16  ;;  %v9770_v3 = vld [vmem:[%s10740_s0 + $0x160] sm:$0xf] }
 0x22e   :  { %v4431_v30 = vrot.slane %v4430_v49, 4  ;;  %v4221_v21 = vshrl.u32 %v9746_v18, 16  ;;  %v4579_v40 = vpack.c.b16 %v4551_v53, %v4550_v52  ;;  %v4441_v25 = vrot.slane %v4440_v8, 4 }
 0x22f   :  { %4150 = vmatpush.bf16.xpose.msra.mxu1 %v4111_v29  ;;  %v4210_v11 = vrot.slane %v4208_v20, 4  ;;  %v4227_v55 = vshll.u32 %v9754_v61, 16  ;;  %v4213_v14 = vrot.slane %v4211_v42, 5  ;;  %v4219_v57 = vrot.slane %v4217_v56, 5  ;;  %v6765_v29 = vld [vmem:[%s10740_s0 + $0xe4] sm:$0xff] }
 0x230   :  { %v4436_v4 = vsel %vm6921_vm3, %v4431_v30, %v4435_v41  ;;  %v4223_v26 = vrot.slane %v4221_v21, 4  ;;  %v4605_v58 = vsel %vm150_vm0, %v4579_v40, 0  ;;  %v4446_v15 = vsel %vm6921_vm3, %v4441_v25, %v4445_v37 }
 0x231   :  { %v4566_v52 = vunpack.c.l.b16 %v4436_v4  ;;  %v4229_v49 = vrot.slane %v4227_v55, 5  ;;  %4647 = vmatpush.bf16.xpose.msra.mxu2 %v4605_v58  ;;  %v4567_v28 = vunpack.c.l.b16 %v4446_v15  ;;  %v4214_v53 = vor.u32 %v4213_v14, %v4210_v11  ;;  %v6773_v11 = vld [vmem:[%s10740_s0 + $0x144] sm:$0xff] }
 0x232   :  { %v4224_v8 = vor.u32 %v4223_v26, %v4219_v57  ;;  %v4400_v41 = vshrl.u32 %v9764_v47, 16  ;;  %v4403_v20 = vshll.u32 %v9764_v47, 16  ;;  %v4409_v30 = vshll.u32 %v9770_v3, 16 }
 0x233   :  { %v4413_v42 = vshrl.u32 %v9770_v3, 16  ;;  %v4419_v37 = vshll.u32 %v9777_v19, 16  ;;  %v4587_v56 = vpack.c.b16 %v4567_v28, %v4566_v52  ;;  %v4215_v21 = vrot.slane %v4214_v53, 4 }
 0x234   :  { %v4225_v40 = vrot.slane %v4224_v8, 4  ;;  %v4402_v25 = vrot.slane %v4400_v41, 4  ;;  %v4405_v55 = vrot.slane %v4403_v20, 5  ;;  %v4411_v4 = vrot.slane %v4409_v30, 5 }
 0x235   :  { %v4415_v14 = vrot.slane %v4413_v42, 4  ;;  %v4421_v26 = vrot.slane %v4419_v37, 5  ;;  %v4629_v58 = vsel %vm150_vm0, %v4587_v56, 0  ;;  %v4220_v15 = vsel %vm6921_vm3, %v4215_v21, %v4219_v57 }
 0x236   :  { %v4230_v1 = vsel %vm6921_vm3, %v4225_v40, %v4229_v49  ;;  %v4084_v52 = vsel %vm150_vm0, %v6765_v29, 0  ;;  %4660 = vmatpush.bf16.xpose.msra.mxu3 %v4629_v58  ;;  %v4548_v28 = vunpack.c.l.b16 %v4220_v15  ;;  %v4406_v8 = vor.u32 %v4405_v55, %v4402_v25 }
 0x237   :  { %v4549_v53 = vunpack.c.l.b16 %v4230_v1  ;;  %v4416_v41 = vor.u32 %v4415_v14, %v4411_v4  ;;  %4138 = vmatpush.bf16.xpose.msra.mxu0 %v4084_v52  ;;  %v4108_v20 = vsel %vm150_vm0, %v6773_v11, 0  ;;  %v6552_v30 = vrot.slane %v9416_v60, 9  ;;  %v9811_v60 = vld [vmem:[%s10740_s0 + $0xf0] sm:$0xf] }
 0x238   :  { %v4738_v42 = vrot.slane %v9425_v54, 5  ;;  %v4741_v37 = vrot.slane %v9432_v2, 5  ;;  %v4407_v56 = vrot.slane %v4406_v8, 4  ;;  %4151 = vmatpush.bf16.xpose.msra.mxu1 %v4108_v20  ;;  %v6560_v49 = vrot.slane %v9447_v22, 9 }
 0x239   :  { %v4578_v57 = vpack.c.b16 %v4549_v53, %v4548_v28  ;;  %v4417_v21 = vrot.slane %v4416_v41, 4  ;;  %v4794_v40 = vrot.slane %v9456_v12, 5  ;;  %v4797_v25 = vrot.slane %v9462_v0, 5  ;;  %v9821_v12 = vld [vmem:[%s10740_s0 + $0xf4] sm:$0xf] }
 0x23a   :  { %v4739_v1 = vsel %vm7216_vm6, %v6552_v30, %v4738_v42  ;;  %v4740_v29 = vrot.slane %v4738_v42, 4  ;;  %v4412_v2 = vsel %vm6921_vm3, %v4407_v56, %v4411_v4  ;;  %v6475_v0 = vld [vmem:[%s10741_s1 + $0x6] sm:$0x3]  ;;  %v4184_v53 = vshrl.u32 %v9811_v60, 16  ;;  %v9842_v42 = vld [vmem:[%s10740_s0 + $0x150] sm:$0xf] }
 0x23b   :  { %v4602_v54 = vsel %vm150_vm0, %v4578_v57, 0  ;;  %v4422_v22 = vsel %vm6921_vm3, %v4417_v21, %v4421_v26  ;;  %v4814_v11 = vunpack.c.l.b16 %v4739_v1  ;;  %v4564_v55 = vunpack.c.l.b16 %v4412_v2  ;;  %v9833_v26 = vld [vmem:[%s10740_s0 + $0xf8] sm:$0x1] }
 0x23c   :  { %4648 = vmatpush.bf16.xpose.msra.mxu2 %v4602_v54  ;;  %v4565_v14 = vunpack.c.l.b16 %v4422_v22  ;;  %v4742_v58 = vsel %vm7216_vm6, %v4740_v29, %v4741_v37  ;;  %v4795_v4 = vsel %vm7216_vm6, %v6560_v49, %v4794_v40  ;;  %v4796_v52 = vrot.slane %v4794_v40, 4  ;;  %v9851_v49 = vld [vmem:[%s10740_s0 + $0x154] sm:$0xf]  ;;  %v9857_v2 = vld [vmem:[%s10740_s0 + $0x158] sm:$0x1] }
 0x23d   :  { %v4815_v15 = vunpack.c.l.b16 %v4742_v58  ;;  %v4830_v28 = vunpack.c.l.b16 %v4795_v4  ;;  %v4187_v41 = vshll.u32 %v9811_v60, 16  ;;  %v4193_v20 = vshll.u32 %v9821_v12, 16 }
 0x23e   :  { %v4586_v8 = vpack.c.b16 %v4565_v14, %v4564_v55  ;;  %v4197_v30 = vshrl.u32 %v9821_v12, 16  ;;  %6540 = vmatmul.msk.bf16.vlgmr.msra.gmra.mxu0 %vm150_vm0, %v6475_v0  ;;  %v4798_v57 = vsel %vm7216_vm6, %v4796_v52, %v4797_v25  ;;  %v4186_v56 = vrot.slane %v4184_v53, 4 }
 0x23f   :  { %v4839_v37 = vpack.c.b16 %v4815_v15, %v4814_v11  ;;  %v4203_v21 = vshll.u32 %v9833_v26, 16  ;;  %v4831_v29 = vunpack.c.l.b16 %v4798_v57  ;;  %v4189_v40 = vrot.slane %v4187_v41, 5  ;;  %6541 = vmatmul.msk.bf16.vlgmr.msra.gmra.mxu1 %vm150_vm0, %v6475_v0  ;;  %v9866_v41 = vpop.f32.mrf.mxu0 }
 0x240   :  { %v4626_v1 = vsel %vm150_vm0, %v4586_v8, 0  ;;  %v4195_v54 = vrot.slane %v4193_v20, 5  ;;  %v4199_v22 = vrot.slane %v4197_v30, 4  ;;  %v4376_v55 = vshrl.u32 %v9842_v42, 16  ;;  %v9868_v20 = vpop.f32.mrf.mxu1 }
 0x241   :  { %4661 = vmatpush.bf16.xpose.msra.mxu3 %v4626_v1  ;;  %v4873_v25 = vsel %vm150_vm0, %v4839_v37, 0  ;;  %v4205_v11 = vrot.slane %v4203_v21, 5  ;;  %v4847_v14 = vpack.c.b16 %v4831_v29, %v4830_v28  ;;  %v4190_v58 = vor.u32 %v4189_v40, %v4186_v56 }
 0x242   :  { %4899 = vmatpush.bf16.xpose.msrb.mxu0 %v4873_v25  ;;  %v4379_v4 = vshll.u32 %v9842_v42, 16  ;;  %v4385_v15 = vshll.u32 %v9851_v49, 16  ;;  %v4200_v52 = vor.u32 %v4199_v22, %v4195_v54  ;;  %v4378_v53 = vrot.slane %v4376_v55, 4 }
 0x243   :  { %v4389_v8 = vshrl.u32 %v9851_v49, 16  ;;  %v4395_v0 = vshll.u32 %v9857_v2, 16  ;;  %v4897_v30 = vsel %vm150_vm0, %v4847_v14, 0  ;;  %v4191_v37 = vrot.slane %v4190_v58, 4 }
 0x244   :  { %v4381_v57 = vrot.slane %v4379_v4, 5  ;;  %v4387_v28 = vrot.slane %v4385_v15, 5  ;;  %4912 = vmatpush.bf16.xpose.msrb.mxu1 %v4897_v30  ;;  %v4201_v56 = vrot.slane %v4200_v52, 4  ;;  %v6551_v29 = vrot.slane %v9483_v36, 9  ;;  %v9882_v52 = vld [vmem:[%s10740_s0 + $0xe4] sm:$0xf] }
 0x245   :  { %v4391_v21 = vrot.slane %v4389_v8, 4  ;;  %v4397_v1 = vrot.slane %v4395_v0, 5  ;;  %v4196_v40 = vsel %vm6921_vm3, %v4191_v37, %v4195_v54  ;;  %v4731_v22 = vrot.slane %v9495_v59, 5 }
 0x246   :  { %v4382_v25 = vor.u32 %v4381_v57, %v4378_v53  ;;  %v4734_v55 = vrot.slane %v9513_v39, 5  ;;  %v4206_v14 = vsel %vm6921_vm3, %v4201_v56, %v4205_v11  ;;  %v4546_v58 = vunpack.c.l.b16 %v4196_v40  ;;  %v9895_v57 = vld [vmem:[%s10740_s0 + $0xe8] sm:$0xf] }
 0x247   :  { %v4392_v4 = vor.u32 %v4391_v21, %v4387_v28  ;;  %v6559_v15 = vrot.slane %v9524_v35, 9  ;;  %v4547_v36 = vunpack.c.l.b16 %v4206_v14  ;;  %v4732_v54 = vsel %vm7216_vm6, %v6551_v29, %v4731_v22  ;;  %v2949_v40 = vpop.f32.mrf.mxu0 }
 0x248   :  { %v4383_v8 = vrot.slane %v4382_v25, 4  ;;  %v4733_v59 = vrot.slane %v4731_v22, 4  ;;  %v4812_v39 = vunpack.c.l.b16 %v4732_v54  ;;  %v4787_v0 = vrot.slane %v9529_v24, 5  ;;  %v2962_v25 = vpop.f32.mrf.mxu1  ;;  %v6788_v40 = vld [vmem:[%s10740_s0 + $0x144] sm:$0xff] }
 0x249   :  { %v4393_v53 = vrot.slane %v4392_v4, 4  ;;  %v4790_v11 = vrot.slane %v9539_v16, 5  ;;  %v4577_v30 = vpack.c.b16 %v4547_v36, %v4546_v58  ;;  %v4160_v56 = vshrl.u32 %v9882_v52, 16 }
 0x24a   :  { %v4388_v35 = vsel %vm6921_vm3, %v4383_v8, %v4387_v28  ;;  %v4735_v37 = vsel %vm7216_vm6, %v4733_v59, %v4734_v55  ;;  %v4788_v16 = vsel %vm7216_vm6, %v6559_v15, %v4787_v0  ;;  %v9905_v28 = vld [vmem:[%s10740_s0 + $0xec] sm:$0x1]  ;;  %v4789_v14 = vrot.slane %v4787_v0, 4  ;;  %v9913_v15 = vld [vmem:[%s10740_s0 + $0x144] sm:$0xf] }
 0x24b   :  { %v4398_v21 = vsel %vm6921_vm3, %v4393_v53, %v4397_v1  ;;  %v4562_v24 = vunpack.c.l.b16 %v4388_v35  ;;  %v4813_v29 = vunpack.c.l.b16 %v4735_v37  ;;  %v4599_v22 = vsel %vm150_vm0, %v4577_v30, 0  ;;  %10765 = vst [vmem:[#allocation5_spill] sm:$0xff] %v9913_v15 }
 0x24c   :  { %v4563_v55 = vunpack.c.l.b16 %v4398_v21  ;;  %v4828_v58 = vunpack.c.l.b16 %v4788_v16  ;;  %4649 = vmatpush.bf16.xpose.msra.mxu2 %v4599_v22  ;;  %v4162_v1 = vrot.slane %v4160_v56, 4  ;;  %v4163_v36 = vshll.u32 %v9882_v52, 16  ;;  %v9928_v21 = vld [vmem:[%s10740_s0 + $0x14c] sm:$0x1] }
 0x24d   :  { %v4838_v4 = vpack.c.b16 %v4813_v29, %v4812_v39  ;;  %v4169_v8 = vshll.u32 %v9895_v57, 16  ;;  %v4791_v59 = vsel %vm7216_vm6, %v4789_v14, %v4790_v11  ;;  %v4173_v53 = vshrl.u32 %v9895_v57, 16  ;;  %v9922_v39 = vld [vmem:[%s10740_s0 + $0x148] sm:$0xf] }
 0x24e   :  { %v4585_v54 = vpack.c.b16 %v4563_v55, %v4562_v24  ;;  %v4179_v0 = vshll.u32 %v9905_v28, 16  ;;  %10766 = vst [vmem:[#allocation6_spill] sm:$0xff] %v9922_v39  ;;  %v4829_v35 = vunpack.c.l.b16 %v4791_v59  ;;  %v4165_v37 = vrot.slane %v4163_v36, 5 }
 0x24f   :  { %v4870_v30 = vsel %vm150_vm0, %v4838_v4, 0  ;;  %v4171_v56 = vrot.slane %v4169_v8, 5  ;;  %v4175_v24 = vrot.slane %v4173_v53, 4  ;;  %v4352_v16 = vshrl.u32 %v9913_v15, 16  ;;  %v6796_v4 = vld [vmem:[%s10740_s0 + $0x1a4] sm:$0xff] }
 0x250   :  { %v4623_v11 = vsel %vm150_vm0, %v4585_v54, 0  ;;  %4900 = vmatpush.bf16.xpose.msrb.mxu0 %v4870_v30  ;;  %v4181_v29 = vrot.slane %v4179_v0, 5  ;;  %v4846_v25 = vpack.c.b16 %v4829_v35, %v4828_v58  ;;  %v4166_v22 = vor.u32 %v4165_v37, %v4162_v1 }
 0x251   :  { %4662 = vmatpush.bf16.xpose.msra.mxu3 %v4623_v11  ;;  %v4355_v55 = vshll.u32 %v9913_v15, 16  ;;  %v4361_v14 = vshll.u32 %v9922_v39, 16  ;;  %v4176_v36 = vor.u32 %v4175_v24, %v4171_v56  ;;  %v4354_v8 = vrot.slane %v4352_v16, 4 }
 0x252   :  { %v4365_v54 = vshrl.u32 %v9922_v39, 16  ;;  %v4371_v59 = vshll.u32 %v9928_v21, 16  ;;  %v4894_v53 = vsel %vm150_vm0, %v4846_v25, 0  ;;  %v4167_v0 = vrot.slane %v4166_v22, 4 }
 0x253   :  { %v4357_v30 = vrot.slane %v4355_v55, 5  ;;  %v4363_v58 = vrot.slane %v4361_v14, 5  ;;  %4913 = vmatpush.bf16.xpose.msrb.mxu1 %v4894_v53  ;;  %v4177_v1 = vrot.slane %v4176_v36, 4  ;;  %v5082_v11 = vsel %vm150_vm0, %v6788_v40, 0 }
 0x254   :  { %v4367_v35 = vrot.slane %v4365_v54, 4  ;;  %v4373_v37 = vrot.slane %v4371_v59, 5  ;;  %v4172_v15 = vsel %vm6921_vm3, %v4167_v0, %v4171_v56  ;;  %v5106_v16 = vsel %vm150_vm0, %v6796_v4, 0 }
 0x255   :  { %v4358_v24 = vor.u32 %v4357_v30, %v4354_v8  ;;  %v6550_v39 = vrot.slane %v9556_v34, 9  ;;  %v4182_v25 = vsel %vm6921_vm3, %v4177_v1, %v4181_v29  ;;  %v4544_v22 = vunpack.c.l.b16 %v4172_v15  ;;  %v6795_v30 = vld [vmem:[%s10740_s0 + $0x198] sm:$0xff] }
 0x256   :  { %v4368_v55 = vor.u32 %v4367_v35, %v4363_v58  ;;  %v4724_v14 = vrot.slane %v9565_v10, 5  ;;  %v4545_v36 = vunpack.c.l.b16 %v4182_v25  ;;  %v4727_v59 = vrot.slane %v9572_v27, 5  ;;  %v6787_v27 = vld [vmem:[%s10740_s0 + $0x138] sm:$0xff] }
 0x257   :  { %v4359_v54 = vrot.slane %v4358_v24, 4  ;;  %v6558_v40 = vrot.slane %v9582_v7, 9  ;;  %v4780_v34 = vrot.slane %v9588_v17, 5  ;;  %v4783_v10 = vrot.slane %v9595_v51, 5 }
 0x258   :  { %v4369_v53 = vrot.slane %v4368_v55, 4  ;;  %v4725_v56 = vsel %vm7216_vm6, %v6550_v39, %v4724_v14  ;;  %v4726_v4 = vrot.slane %v4724_v14, 4  ;;  %v4576_v8 = vpack.c.b16 %v4545_v36, %v4544_v22 }
 0x259   :  { %v4364_v15 = vsel %vm6921_vm3, %v4359_v54, %v4363_v58  ;;  %v4810_v29 = vunpack.c.l.b16 %v4725_v56  ;;  %v4781_v17 = vsel %vm7216_vm6, %v6558_v40, %v4780_v34  ;;  %v4782_v35 = vrot.slane %v4780_v34, 4  ;;  %v6786_v54 = vld [vmem:[%s10740_s0 + $0x12c] sm:$0xff] }
 0x25a   :  { %v4374_v7 = vsel %vm6921_vm3, %v4369_v53, %v4373_v37  ;;  %v4560_v0 = vunpack.c.l.b16 %v4364_v15  ;;  %v4728_v39 = vsel %vm7216_vm6, %v4726_v4, %v4727_v59  ;;  %v4596_v51 = vsel %vm150_vm0, %v4576_v8, 0  ;;  %v6794_v56 = vld [vmem:[%s10740_s0 + $0x18c] sm:$0xff] }
 0x25b   :  { %v4561_v58 = vunpack.c.l.b16 %v4374_v7  ;;  %v4811_v1 = vunpack.c.l.b16 %v4728_v39  ;;  %4650 = vmatpush.bf16.xpose.msra.mxu2 %v4596_v51  ;;  %v4826_v24 = vunpack.c.l.b16 %v4781_v17  ;;  %v2964_v37 = vadd.f32 %v9866_v41, %v9635_v63 }
 0x25c   :  { %v2965_v25 = vadd.f32 %v9868_v20, %v9639_v31  ;;  %v4784_v14 = vsel %vm7216_vm6, %v4782_v35, %v4783_v10  ;;  %v5079_v36 = vsel %vm150_vm0, %v6787_v27, 0  ;;  %v5103_v63 = vsel %vm150_vm0, %v6795_v30, 0  ;;  %v6793_v35 = vld [vmem:[%s10740_s0 + $0x180] sm:$0xff] }
 0x25d   :  { %v4584_v22 = vpack.c.b16 %v4561_v58, %v4560_v0  ;;  %v4837_v55 = vpack.c.b16 %v4811_v1, %v4810_v29  ;;  %v4827_v59 = vunpack.c.l.b16 %v4784_v14  ;;  %v6549_v41 = vrot.slane %v9614_v43, 9  ;;  %v6542_v43 = vld [vmem:[%s10741_s1 + $0x8] sm:$0x3] }
 0x25e   :  { %v2968_v40 = vrot.slane %v2965_v25, 4  ;;  %v4720_v53 = vrot.slane %v9630_v9, 5  ;;  %v6557_v8 = vrot.slane %v9649_v23, 9  ;;  %v4773_v15 = vrot.slane %v9659_v5, 5  ;;  %v6785_v23 = vld [vmem:[%s10740_s0 + $0x120] sm:$0xff] }
 0x25f   :  { %v4620_v31 = vsel %vm150_vm0, %v4584_v22, 0  ;;  %v4867_v20 = vsel %vm150_vm0, %v4837_v55, 0  ;;  %v4845_v4 = vpack.c.b16 %v4827_v59, %v4826_v24  ;;  %v4776_v29 = vrot.slane %v9664_v32, 5 }
 0x260   :  { %4663 = vmatpush.bf16.xpose.msra.mxu3 %v4620_v31  ;;  %4901 = vmatpush.bf16.xpose.msrb.mxu0 %v4867_v20  ;;  %v2970_v34 = vsel %vm2969_vm7, %v2964_v37, %v2968_v40  ;;  %v5076_v10 = vsel %vm150_vm0, %v6786_v54, 0  ;;  %v4774_v0 = vsel %vm7216_vm6, %v6557_v8, %v4773_v15  ;;  %v4775_v39 = vrot.slane %v4773_v15, 4  ;;  %v6792_v31 = vld [vmem:[%s10740_s0 + $0x174] sm:$0xff] }
 0x261   :  { %2972 = vst [vmem:[#allocation2] sm:$0xff] %v2970_v34  ;;  %v4891_v27 = vsel %vm150_vm0, %v4845_v4, 0  ;;  %v4824_v32 = vunpack.c.l.b16 %v4774_v0  ;;  %v6548_v17 = vrot.slane %v9681_v6, 9  ;;  %v4710_v58 = vrot.slane %v9689_v50, 5 }
 0x262   :  { %4914 = vmatpush.bf16.xpose.msrb.mxu1 %v4891_v27  ;;  %6543 = vmatmul.msk.bf16.vlgmr.msra.gmra.mxu2 %vm150_vm0, %v6542_v43  ;;  %v4777_v51 = vsel %vm7216_vm6, %v4775_v39, %v4776_v29  ;;  %v4713_v1 = vrot.slane %v9694_v46, 5  ;;  %v6556_v37 = vrot.slane %v9709_v38, 9  ;;  %v4766_v25 = vrot.slane %v9714_v44, 5  ;;  %v6784_v44 = vld [vmem:[%s10740_s0 + $0x114] sm:$0xff] }
 0x263   :  { %5108 = vmatpush.bf16.xpose.msrb.mxu2 %v5082_v11  ;;  %v4717_v11 = vrot.slane %v9625_v45, 5  ;;  %v4825_v24 = vunpack.c.l.b16 %v4777_v51  ;;  %v4769_v6 = vrot.slane %v9721_v62, 5  ;;  %v4711_v55 = vsel %vm7216_vm6, %v6548_v17, %v4710_v58  ;;  %v6791_v51 = vld [vmem:[%s10740_s0 + $0x168] sm:$0xff] }
 0x264   :  { %v4712_v14 = vrot.slane %v4710_v58, 4  ;;  %v10027_v50 = vsel %vm150_vm0, %v6785_v23, 0  ;;  %v4806_v54 = vunpack.c.l.b16 %v4711_v55  ;;  %v4768_v38 = vrot.slane %v4766_v25, 4 }
 0x265   :  { %v4718_v45 = vsel %vm7216_vm6, %v6549_v41, %v4717_v11  ;;  %v4719_v9 = vrot.slane %v4717_v11, 4  ;;  %v4844_v46 = vpack.c.b16 %v4825_v24, %v4824_v32  ;;  %v10039_v41 = vsel %vm150_vm0, %v6793_v35, 0 }
 0x266   :  { %v4808_v7 = vunpack.c.l.b16 %v4718_v45  ;;  %v4714_v59 = vsel %vm7216_vm6, %v4712_v14, %v4713_v1  ;;  %v4703_v34 = vrot.slane %v9746_v18, 5  ;;  %v6555_v8 = vrot.slane %v9764_v47, 9  ;;  %v10098_v14 = vld [vmem:[%s10740_s0 + $0x144] sm:$0xf] }
 0x267   :  { %v4721_v5 = vsel %vm7216_vm6, %v4719_v9, %v4720_v53  ;;  %6544 = vmatmul.msk.bf16.vlgmr.msra.gmra.mxu3 %vm150_vm0, %v6542_v43  ;;  %v4888_v20 = vsel %vm150_vm0, %v4844_v46, 0  ;;  %v4807_v11 = vunpack.c.l.b16 %v4714_v59  ;;  %v4770_v53 = vsel %vm7216_vm6, %v4768_v38, %v4769_v6 }
 0x268   :  { %5121 = vmatpush.bf16.xpose.msrb.mxu3 %v5106_v16  ;;  %v10011_v16 = vsel %vm150_vm0, %v6794_v56, 0  ;;  %v4809_v30 = vunpack.c.l.b16 %v4721_v5  ;;  %v6547_v56 = vrot.slane %v9738_v13, 9  ;;  %v4823_v4 = vunpack.c.l.b16 %v4770_v53 }
 0x269   :  { %v4706_v43 = vrot.slane %v9754_v61, 5  ;;  %v4835_v15 = vpack.c.b16 %v4807_v11, %v4806_v54  ;;  %v4762_v45 = vrot.slane %v9777_v19, 5  ;;  %v10054_v9 = vsel %vm150_vm0, %v6784_v44, 0  ;;  %v6783_v19 = vld [vmem:[%s10740_s0 + $0x108] sm:$0xff]  ;;  %v10768_v11 = vld [vmem:[#allocation6_spill] sm:$0xff] }
 0x26a   :  { %v4836_v22 = vpack.c.b16 %v4809_v30, %v4808_v7  ;;  %4915 = vmatpush.bf16.xpose.msrb.mxu1 %v4888_v20  ;;  %v4704_v13 = vsel %vm7216_vm6, %v6547_v56, %v4703_v34  ;;  %v4705_v27 = vrot.slane %v4703_v34, 4  ;;  %v10059_v18 = vsel %vm150_vm0, %v6792_v31, 0 }
 0x26b   :  { %5109 = vmatpush.bf16.xpose.msrb.mxu2 %v5079_v36  ;;  %v4767_v36 = vsel %vm7216_vm6, %v6556_v37, %v4766_v25  ;;  %v4861_v61 = vsel %vm150_vm0, %v4835_v15, 0  ;;  %v4804_v47 = vunpack.c.l.b16 %v4704_v13  ;;  %v6546_v5 = vrot.slane %v9811_v60, 9 }
 0x26c   :  { %v4864_v62 = vsel %vm150_vm0, %v4836_v22, 0  ;;  %v4822_v40 = vunpack.c.l.b16 %v4767_v36  ;;  %v4707_v39 = vsel %vm7216_vm6, %v4705_v27, %v4706_v43  ;;  %v4696_v17 = vrot.slane %v9821_v12, 5 }
 0x26d   :  { %4902 = vmatpush.bf16.xpose.msrb.mxu0 %v4864_v62  ;;  %v4699_v30 = vrot.slane %v9833_v26, 5  ;;  %v6554_v1 = vrot.slane %v9842_v42, 9  ;;  %v4752_v35 = vrot.slane %v9851_v49, 5  ;;  %v4755_v24 = vrot.slane %v9857_v2, 5 }
 0x26e   :  { %v4843_v29 = vpack.c.b16 %v4823_v4, %v4822_v40  ;;  %v4697_v12 = vsel %vm7216_vm6, %v6546_v5, %v4696_v17  ;;  %v4698_v37 = vrot.slane %v4696_v17, 4  ;;  %v10085_v26 = vsel %vm150_vm0, %v6783_v19, 0  ;;  %v10767_v40 = vld [vmem:[#allocation5_spill] sm:$0xff] }
 0x26f   :  { %v4802_v6 = vunpack.c.l.b16 %v4697_v12  ;;  %v4753_v42 = vsel %vm7216_vm6, %v6554_v1, %v4752_v35  ;;  %v4754_v22 = vrot.slane %v4752_v35, 4  ;;  %v10093_v55 = vsel %vm150_vm0, %v6791_v51, 0 }
 0x270   :  { %5122 = vmatpush.bf16.xpose.msrb.mxu3 %v5103_v63  ;;  %v4759_v63 = vrot.slane %v9770_v3, 5  ;;  %v4885_v0 = vsel %vm150_vm0, %v4843_v29, 0  ;;  %v4700_v2 = vsel %vm7216_vm6, %v4698_v37, %v4699_v30  ;;  %v6545_v38 = vrot.slane %v9882_v52, 9  ;;  %v10150_v30 = vld [vmem:[%s10740_s0 + $0x1ac] sm:$0x1] }
 0x271   :  { %v4803_v54 = vunpack.c.l.b16 %v4700_v2  ;;  %v4756_v36 = vsel %vm7216_vm6, %v4754_v22, %v4755_v24  ;;  %v4689_v62 = vrot.slane %v9895_v57, 5  ;;  %v4692_v59 = vrot.slane %v9905_v28, 5  ;;  %v10116_v57 = vld [vmem:[%s10740_s0 + $0x148] sm:$0xf] }
 0x272   :  { %v4760_v3 = vsel %vm7216_vm6, %v6555_v8, %v4759_v63  ;;  %v4761_v7 = vrot.slane %v4759_v63, 4  ;;  %4916 = vmatpush.bf16.xpose.msrb.mxu1 %v4885_v0  ;;  %v4819_v44 = vunpack.c.l.b16 %v4756_v36  ;;  %v6553_v31 = vrot.slane %v10767_v40, 9  ;;  %v10125_v63 = vld [vmem:[%s10740_s0 + $0x14c] sm:$0x1] }
 0x273   :  { %5110 = vmatpush.bf16.xpose.msrb.mxu2 %v5076_v10  ;;  %v4820_v23 = vunpack.c.l.b16 %v4760_v3  ;;  %v4805_v10 = vunpack.c.l.b16 %v4707_v39  ;;  %v4833_v20 = vpack.c.b16 %v4803_v54, %v4802_v6  ;;  %v4745_v53 = vrot.slane %v10768_v11, 5 }
 0x274   :  { %v4763_v32 = vsel %vm7216_vm6, %v4761_v7, %v4762_v45  ;;  %v4748_v56 = vrot.slane %v9928_v21, 5  ;;  %v5305_v4 = vshrl.u32 %v10098_v14, 16  ;;  %v4690_v52 = vsel %vm7216_vm6, %v6545_v38, %v4689_v62  ;;  %v10130_v45 = vld [vmem:[%s10740_s0 + $0x1a4] sm:$0xf] }
 0x275   :  { %v4821_v58 = vunpack.c.l.b16 %v4763_v32  ;;  %4903 = vmatpush.bf16.xpose.msrb.mxu0 %v4861_v61  ;;  %v4834_v60 = vpack.c.b16 %v4805_v10, %v4804_v47  ;;  %v4691_v43 = vrot.slane %v4689_v62, 4  ;;  %v5308_v28 = vshll.u32 %v10098_v14, 16 }
 0x276   :  { %v4800_v8 = vunpack.c.l.b16 %v4690_v52  ;;  %v4746_v21 = vsel %vm7216_vm6, %v6553_v31, %v4745_v53  ;;  %v4747_v15 = vrot.slane %v4745_v53, 4  ;;  %v5307_v61 = vrot.slane %v5305_v4, 4 }
 0x277   :  { %v4842_v25 = vpack.c.b16 %v4821_v58, %v4820_v23  ;;  %v4858_v49 = vsel %vm150_vm0, %v4834_v60, 0  ;;  %v4693_v13 = vsel %vm7216_vm6, %v4691_v43, %v4692_v59  ;;  %v4816_v27 = vunpack.c.l.b16 %v4746_v21  ;;  %v10144_v23 = vld [vmem:[%s10740_s0 + $0x1a8] sm:$0xf]  ;;  %v6782_v58 = vld [vmem:[%s10740_s0 + $0xfc] sm:$0xff] }
 0x278   :  { %5123 = vmatpush.bf16.xpose.msrb.mxu3 %v10011_v16  ;;  %v4818_v16 = vunpack.c.l.b16 %v4753_v42  ;;  %v4801_v47 = vunpack.c.l.b16 %v4693_v13  ;;  %v4749_v3 = vsel %vm7216_vm6, %v4747_v15, %v4748_v56  ;;  %v5310_v7 = vrot.slane %v5308_v28, 5  ;;  %v6790_v42 = vld [vmem:[%s10740_s0 + $0x15c] sm:$0xff]  ;;  %v10200_v28 = vld [vmem:[%s10740_s0 + $0x198] sm:$0xf] }
 0x279   :  { %v4882_v46 = vsel %vm150_vm0, %v4842_v25, 0  ;;  %v5314_v19 = vshll.u32 %v10116_v57, 16  ;;  %v4817_v0 = vunpack.c.l.b16 %v4749_v3  ;;  %v5318_v39 = vshrl.u32 %v10116_v57, 16 }
 0x27a   :  { %v4841_v34 = vpack.c.b16 %v4819_v44, %v4818_v16  ;;  %4917 = vmatpush.bf16.xpose.msrb.mxu1 %v4882_v46  ;;  %v5497_v5 = vshrl.u32 %v10130_v45, 16  ;;  %v4832_v10 = vpack.c.b16 %v4801_v47, %v4800_v8  ;;  %v5311_v32 = vor.u32 %v5310_v7, %v5307_v61  ;;  %v10170_v16 = vld [vmem:[%s10740_s0 + $0x138] sm:$0xf]  ;;  %v10180_v44 = vld [vmem:[%s10740_s0 + $0x13c] sm:$0xf] }
 0x27b   :  { %5111 = vmatpush.bf16.xpose.msrb.mxu2 %v10027_v50  ;;  %v4855_v50 = vsel %vm150_vm0, %v4833_v20, 0  ;;  %v5316_v17 = vrot.slane %v5314_v19, 5  ;;  %v5500_v51 = vshll.u32 %v10130_v45, 16  ;;  %v4840_v1 = vpack.c.b16 %v4817_v0, %v4816_v27 }
 0x27c   :  { %v4879_v29 = vsel %vm150_vm0, %v4841_v34, 0  ;;  %v5320_v35 = vrot.slane %v5318_v39, 4  ;;  %v5499_v60 = vrot.slane %v5497_v5, 4  ;;  %v4852_v12 = vsel %vm150_vm0, %v4832_v10, 0  ;;  %v10217_v5 = vld [vmem:[%s10740_s0 + $0x1a0] sm:$0x1] }
 0x27d   :  { %4904 = vmatpush.bf16.xpose.msrb.mxu0 %v4858_v49  ;;  %v5312_v37 = vrot.slane %v5311_v32, 4  ;;  %v5502_v25 = vrot.slane %v5500_v51, 5  ;;  %v5506_v6 = vshll.u32 %v10144_v23, 16  ;;  %v10163_v22 = vsel %vm150_vm0, %v4840_v1, 0  ;;  %v6781_v32 = vld [vmem:[%s10740_s0 + $0xf0] sm:$0xff]  ;;  %v10226_v51 = vpop.f32.mrf.mxu3 }
 0x27e   :  { %v5321_v49 = vor.u32 %v5320_v35, %v5316_v17  ;;  %v5516_v2 = vshll.u32 %v10150_v30, 16  ;;  %v10175_v38 = vsel %vm150_vm0, %v6782_v58, 0  ;;  %v10184_v11 = vsel %vm150_vm0, %v6790_v42, 0  ;;  %v6789_v42 = vld [vmem:[%s10740_s0 + $0x150] sm:$0xff] }
 0x27f   :  { %v5317_v46 = vsel %vm6921_vm3, %v5312_v37, %v5316_v17  ;;  %v5503_v54 = vor.u32 %v5502_v25, %v5499_v60  ;;  %v5508_v36 = vrot.slane %v5506_v6, 5  ;;  %v5281_v53 = vshrl.u32 %v10170_v16, 16  ;;  %v10224_v17 = vpop.f32.mrf.mxu2 }
 0x280   :  { %5124 = vmatpush.bf16.xpose.msrb.mxu3 %v10039_v41  ;;  %v5324_v41 = vshll.u32 %v10125_v63, 16  ;;  %v5322_v62 = vrot.slane %v5321_v49, 4  ;;  %v5535_v59 = vunpack.c.l.b16 %v5317_v46  ;;  %v5518_v31 = vrot.slane %v5516_v2, 5 }
 0x281   :  { %v5504_v20 = vrot.slane %v5503_v54, 4  ;;  %v5284_v56 = vshll.u32 %v10170_v16, 16  ;;  %v5290_v52 = vshll.u32 %v10180_v44, 16  ;;  %v5294_v43 = vshrl.u32 %v10180_v44, 16 }
 0x282   :  { %v5326_v24 = vrot.slane %v5324_v41, 5  ;;  %4918 = vmatpush.bf16.xpose.msrb.mxu1 %v4879_v29  ;;  %v5283_v21 = vrot.slane %v5281_v53, 4  ;;  %v10207_v29 = vld [vmem:[%s10740_s0 + $0x19c] sm:$0xf]  ;;  %v5473_v0 = vshrl.u32 %v10200_v28, 16  ;;  %v5492_v46 = vshll.u32 %v10217_v5, 16 }
 0x283   :  { %5112 = vmatpush.bf16.xpose.msrb.mxu2 %v10054_v9  ;;  %v5510_v9 = vshrl.u32 %v10144_v23, 16  ;;  %v5509_v8 = vsel %vm6921_vm3, %v5504_v20, %v5508_v36  ;;  %v5286_v15 = vrot.slane %v5284_v56, 5  ;;  %v5292_v61 = vrot.slane %v5290_v52, 5  ;;  %v6561_v20 = vld [vmem:[%s10741_s1 + $0xa] sm:$0x3] }
 0x284   :  { %v5327_v4 = vsel %vm6921_vm3, %v5322_v62, %v5326_v24  ;;  %v5551_v27 = vunpack.c.l.b16 %v5509_v8  ;;  %v5296_v47 = vrot.slane %v5294_v43, 4  ;;  %v5482_v10 = vshll.u32 %v10207_v29, 16 }
 0x285   :  { %4905 = vmatpush.bf16.xpose.msrb.mxu0 %v4855_v50  ;;  %v5512_v40 = vrot.slane %v5510_v9, 4  ;;  %v5536_v50 = vunpack.c.l.b16 %v5327_v4  ;;  %v5287_v7 = vor.u32 %v5286_v15, %v5283_v21  ;;  %v5475_v37 = vrot.slane %v5473_v0, 4 }
 0x286   :  { %v5297_v41 = vor.u32 %v5296_v47, %v5292_v61  ;;  %v5484_v6 = vrot.slane %v5482_v10, 5  ;;  %v5486_v2 = vshrl.u32 %v10207_v29, 16  ;;  %v5085_v53 = vsel %vm150_vm0, %v6789_v42, 0  ;;  %v10266_v47 = vld [vmem:[%s10740_s0 + $0x130] sm:$0xf] }
 0x287   :  { %v5513_v34 = vor.u32 %v5512_v40, %v5508_v36  ;;  %v5560_v3 = vpack.c.b16 %v5536_v50, %v5535_v59  ;;  %v5288_v35 = vrot.slane %v5287_v7, 4  ;;  %v5061_v36 = vsel %vm150_vm0, %v6781_v32, 0 }
 0x288   :  { %5125 = vmatpush.bf16.xpose.msrb.mxu3 %v10059_v18  ;;  %v10193_v18 = vld [vmem:[%s10740_s0 + $0x140] sm:$0x1]  ;;  %v5298_v60 = vrot.slane %v5297_v41, 4  ;;  %v5488_v40 = vrot.slane %v5486_v2, 4  ;;  %v6689_v56 = vrot.slane %v10098_v14, 9  ;;  %v5715_v4 = vrot.slane %v10116_v57, 5  ;;  %v3165_v57 = vpop.f32.mrf.mxu2 }
 0x289   :  { %v5514_v13 = vrot.slane %v5513_v34, 4  ;;  %v5300_v19 = vshll.u32 %v10193_v18, 16  ;;  %v5594_v58 = vsel %vm150_vm0, %v5560_v3, 0  ;;  %v5293_v9 = vsel %vm6921_vm3, %v5288_v35, %v5292_v61  ;;  %v10259_v14 = vld [vmem:[%s10740_s0 + $0x12c] sm:$0xf]  ;;  %v10769_v57 = vld [vmem:[#allocation9_spill] sm:$0xff] }
 0x28a   :  { %4919 = vmatpush.bf16.xpose.msrb.mxu1 %v10163_v22  ;;  %v5489_v52 = vor.u32 %v5488_v40, %v5484_v6  ;;  %v5718_v43 = vrot.slane %v10125_v63, 5  ;;  %v6697_v50 = vrot.slane %v10130_v45, 9  ;;  %v5716_v8 = vsel %vm7216_vm6, %v6689_v56, %v5715_v4 }
 0x28b   :  { %5113 = vmatpush.bf16.xpose.msrb.mxu2 %v10085_v26  ;;  %v5519_v39 = vsel %vm6921_vm3, %v5514_v13, %v5518_v31  ;;  %v5476_v26 = vshll.u32 %v10200_v28, 16  ;;  %v5302_v24 = vrot.slane %v5300_v19, 5  ;;  %v5494_v31 = vrot.slane %v5492_v46, 5  ;;  %v3178_v13 = vpop.f32.mrf.mxu3 }
 0x28c   :  { %v5552_v1 = vunpack.c.l.b16 %v5519_v39  ;;  %v5717_v21 = vrot.slane %v5715_v4, 4  ;;  %v5771_v15 = vrot.slane %v10144_v23, 5  ;;  %v5490_v45 = vrot.slane %v5489_v52, 4 }
 0x28d   :  { %4906 = vmatpush.bf16.xpose.msrb.mxu0 %v4852_v12  ;;  %v5478_v25 = vrot.slane %v5476_v26, 5  ;;  %v5533_v12 = vunpack.c.l.b16 %v5293_v9  ;;  %v5791_v61 = vunpack.c.l.b16 %v5716_v8  ;;  %v5774_v19 = vrot.slane %v10150_v30, 5  ;;  %v10297_v9 = vld [vmem:[%s10740_s0 + $0x190] sm:$0xf]  ;;  %v10317_v8 = vpop.f32.mrf.mxu1 }
 0x28e   :  { %v5568_v49 = vpack.c.b16 %v5552_v1, %v5551_v27  ;;  %v5719_v23 = vsel %vm7216_vm6, %v5717_v21, %v5718_v43  ;;  %v5772_v3 = vsel %vm7216_vm6, %v6697_v50, %v5771_v15  ;;  %v5773_v7 = vrot.slane %v5771_v15, 4  ;;  %v10290_v1 = vld [vmem:[%s10740_s0 + $0x18c] sm:$0xf] }
 0x28f   :  { %v5479_v54 = vor.u32 %v5478_v25, %v5475_v37  ;;  %v5495_v0 = vsel %vm6921_vm3, %v5490_v45, %v5494_v31  ;;  %v5792_v39 = vunpack.c.l.b16 %v5719_v23  ;;  %v5807_v41 = vunpack.c.l.b16 %v5772_v3  ;;  %v6612_v50 = vld [vmem:[%s10741_s1 + $0xc] sm:$0x3] }
 0x290   :  { %5126 = vmatpush.bf16.xpose.msrb.mxu3 %v10093_v55  ;;  %v5303_v55 = vsel %vm6921_vm3, %v5298_v60, %v5302_v24  ;;  %v5618_v62 = vsel %vm150_vm0, %v5568_v49, 0  ;;  %v5257_v26 = vshrl.u32 %v10259_v14, 16  ;;  %v5550_v10 = vunpack.c.l.b16 %v5495_v0 }
 0x291   :  { %v5534_v59 = vunpack.c.l.b16 %v5303_v55  ;;  %v5480_v22 = vrot.slane %v5479_v54, 4  ;;  %6563 = vmatmul.msk.bf16.vlgmr.msrb.gmra.mxu1 %vm150_vm0, %v6561_v20  ;;  %v5775_v32 = vsel %vm7216_vm6, %v5773_v7, %v5774_v19  ;;  %v5260_v30 = vshll.u32 %v10259_v14, 16 }
 0x292   :  { %5633 = vmatpush.bf16.xpose.msra.mxu1 %v5618_v62  ;;  %v5816_v35 = vpack.c.b16 %v5792_v39, %v5791_v61  ;;  %v5808_v24 = vunpack.c.l.b16 %v5775_v32  ;;  %v5259_v60 = vrot.slane %v5257_v26, 4  ;;  %v5270_v37 = vshrl.u32 %v10266_v47, 16 }
 0x293   :  { %5114 = vmatpush.bf16.xpose.msrb.mxu2 %v10175_v38  ;;  %v5559_v34 = vpack.c.b16 %v5534_v59, %v5533_v12  ;;  %v5485_v38 = vsel %vm6921_vm3, %v5480_v22, %v5484_v6  ;;  %v5262_v6 = vrot.slane %v5260_v30, 5  ;;  %v10303_v12 = vld [vmem:[%s10740_s0 + $0x194] sm:$0x1]  ;;  %v5449_v54 = vshrl.u32 %v10290_v1, 16 }
 0x294   :  { %6562 = vmatmul.msk.bf16.vlgmr.msrb.gmra.mxu0 %vm150_vm0, %v6561_v20  ;;  %v5549_v27 = vunpack.c.l.b16 %v5485_v38  ;;  %v5850_v2 = vsel %vm150_vm0, %v5816_v35, 0  ;;  %v5824_v46 = vpack.c.b16 %v5808_v24, %v5807_v41  ;;  %v5272_v55 = vrot.slane %v5270_v37, 4  ;;  %v10315_v38 = vpop.f32.mrf.mxu0 }
 0x295   :  { %5620 = vmatpush.bf16.xpose.msra.mxu0 %v5594_v58  ;;  %v5591_v63 = vsel %vm150_vm0, %v5559_v34, 0  ;;  %v5266_v58 = vshll.u32 %v10266_v47, 16  ;;  %v5263_v62 = vor.u32 %v5262_v6, %v5259_v60  ;;  %v5452_v40 = vshll.u32 %v10290_v1, 16  ;;  %v10354_v60 = vld [vmem:[%s10740_s0 + $0x124] sm:$0xf] }
 0x296   :  { %v5567_v25 = vpack.c.b16 %v5550_v10, %v5549_v27  ;;  %v5874_v31 = vsel %vm150_vm0, %v5824_v46, 0  ;;  %v5451_v22 = vrot.slane %v5449_v54, 4  ;;  %v5458_v56 = vshll.u32 %v10297_v9, 16  ;;  %v10363_v54 = vld [vmem:[%s10740_s0 + $0x128] sm:$0x1] }
 0x297   :  { %v5268_v42 = vrot.slane %v5266_v58, 5  ;;  %v5264_v4 = vrot.slane %v5263_v62, 4  ;;  %v5454_v34 = vrot.slane %v5452_v40, 5  ;;  %v5462_v52 = vshrl.u32 %v10297_v9, 16 }
 0x298   :  { %5127 = vmatpush.bf16.xpose.msrb.mxu3 %v10184_v11  ;;  %v10280_v11 = vld [vmem:[%s10740_s0 + $0x134] sm:$0x1]  ;;  %v5468_v43 = vshll.u32 %v10303_v12, 16  ;;  %v5460_v15 = vrot.slane %v5458_v56, 5  ;;  %v10325_v13 = vadd.f32 %v10226_v51, %v10769_v57  ;;  %v6688_v7 = vrot.slane %v10170_v16, 9 }
 0x299   :  { %v5276_v49 = vshll.u32 %v10280_v11, 16  ;;  %v5273_v20 = vor.u32 %v5272_v55, %v5268_v42  ;;  %v5455_v45 = vor.u32 %v5454_v34, %v5451_v22  ;;  %v5464_v27 = vrot.slane %v5462_v52, 4  ;;  %v10379_v52 = vld [vmem:[%s10740_s0 + $0x184] sm:$0xf] }
 0x29a   :  { %v5470_v61 = vrot.slane %v5468_v43, 5  ;;  %v5711_v39 = vrot.slane %v10193_v18, 5  ;;  %v6696_v10 = vrot.slane %v10200_v28, 9  ;;  %v5764_v32 = vrot.slane %v10207_v29, 5 }
 0x29b   :  { %5115 = vmatpush.bf16.xpose.msrb.mxu2 %v5061_v36  ;;  %v5615_v36 = vsel %vm150_vm0, %v5567_v25, 0  ;;  %v5278_v59 = vrot.slane %v5276_v49, 5  ;;  %v5274_v21 = vrot.slane %v5273_v20, 4  ;;  %v5456_v0 = vrot.slane %v5455_v45, 4  ;;  %v10374_v20 = vld [vmem:[%s10740_s0 + $0x180] sm:$0xf] }
 0x29c   :  { %5634 = vmatpush.bf16.xpose.msra.mxu1 %v5615_v36  ;;  %v5465_v51 = vor.u32 %v5464_v27, %v5460_v15  ;;  %v5765_v28 = vsel %vm7216_vm6, %v6696_v10, %v5764_v32  ;;  %v5766_v29 = vrot.slane %v5764_v32, 4  ;;  %v3677_v49 = vpop.f32.mrf.mxu0 }
 0x29d   :  { %5621 = vmatpush.bf16.xpose.msra.mxu0 %v5591_v63  ;;  %v5269_v63 = vsel %vm6921_vm3, %v5264_v4, %v5268_v42  ;;  %v5279_v23 = vsel %vm6921_vm3, %v5274_v21, %v5278_v59  ;;  %v5461_v58 = vsel %vm6921_vm3, %v5456_v0, %v5460_v15  ;;  %v5767_v42 = vrot.slane %v10217_v5, 5 }
 0x29e   :  { %v5531_v3 = vunpack.c.l.b16 %v5269_v63  ;;  %v5532_v19 = vunpack.c.l.b16 %v5279_v23  ;;  %v5466_v16 = vrot.slane %v5465_v51, 4  ;;  %v5547_v18 = vunpack.c.l.b16 %v5461_v58  ;;  %v10385_v63 = vpop.f32.mrf.mxu3  ;;  %v10391_v23 = vld [vmem:[%s10740_s0 + $0x188] sm:$0x1] }
 0x29f   :  { %v5805_v55 = vunpack.c.l.b16 %v5765_v28  ;;  %v5768_v40 = vsel %vm7216_vm6, %v5766_v29, %v5767_v42  ;;  %v5242_v5 = vshll.u32 %v10354_v60, 16  ;;  %v5252_v15 = vshll.u32 %v10363_v54, 16 }
 0x2a0   :  { %5128 = vmatpush.bf16.xpose.msrb.mxu3 %v5085_v53  ;;  %v10321_v53 = vadd.f32 %v10224_v17, %v10769_v57  ;;  %v5708_v17 = vrot.slane %v10180_v44, 5  ;;  %v5558_v30 = vpack.c.b16 %v5532_v19, %v5531_v3  ;;  %v10344_v44 = vld [vmem:[%s10740_s0 + $0x120] sm:$0xf]  ;;  %v5471_v25 = vsel %vm6921_vm3, %v5466_v16, %v5470_v61  ;;  %v10383_v57 = vpop.f32.mrf.mxu2 }
 0x2a1   :  { %v5548_v46 = vunpack.c.l.b16 %v5471_v25  ;;  %v5233_v36 = vshrl.u32 %v10344_v44, 16  ;;  %v5236_v62 = vshll.u32 %v10344_v44, 16  ;;  %v5806_v56 = vunpack.c.l.b16 %v5768_v40 }
 0x2a2   :  { %6677 = vmatmul.msk.bf16.vlgmr.msrb.gmra.mxu2 %vm150_vm0, %v6612_v50  ;;  %v5709_v41 = vsel %vm7216_vm6, %v6688_v7, %v5708_v17  ;;  %v5710_v26 = vrot.slane %v5708_v17, 4  ;;  %v5588_v37 = vsel %vm150_vm0, %v5558_v30, 0  ;;  %v5425_v3 = vshrl.u32 %v10374_v20, 16 }
 0x2a3   :  { %5876 = vmatpush.bf16.xpose.msra.mxu2 %v5850_v2  ;;  %v5789_v35 = vunpack.c.l.b16 %v5709_v41  ;;  %v3690_v2 = vpop.f32.mrf.mxu1  ;;  %v5566_v22 = vpack.c.b16 %v5548_v46, %v5547_v18  ;;  %v5235_v4 = vrot.slane %v5233_v36, 4  ;;  %v5238_v34 = vrot.slane %v5236_v62, 5 }
 0x2a4   :  { %v5712_v24 = vsel %vm7216_vm6, %v5710_v26, %v5711_v39  ;;  %v5823_v27 = vpack.c.b16 %v5806_v56, %v5805_v55  ;;  %v5254_v17 = vrot.slane %v5252_v15, 5  ;;  %v5428_v19 = vshll.u32 %v10374_v20, 16 }
 0x2a5   :  { %v5790_v6 = vunpack.c.l.b16 %v5712_v24  ;;  %5622 = vmatpush.bf16.xpose.msra.mxu0 %v5588_v37  ;;  %v5612_v45 = vsel %vm150_vm0, %v5566_v22, 0  ;;  %v5239_v61 = vor.u32 %v5238_v34, %v5235_v4  ;;  %v5434_v0 = vshll.u32 %v10379_v52, 16  ;;  %v10414_v22 = vld [vmem:[%s10740_s0 + $0x114] sm:$0xf] }
 0x2a6   :  { %5635 = vmatpush.bf16.xpose.msra.mxu1 %v5612_v45  ;;  %v5871_v51 = vsel %vm150_vm0, %v5823_v27, 0  ;;  %v5427_v41 = vrot.slane %v5425_v3, 4  ;;  %v5438_v26 = vshrl.u32 %v10379_v52, 16  ;;  %v5430_v32 = vrot.slane %v5428_v19, 5  ;;  %v10438_v45 = vld [vmem:[%s10740_s0 + $0x11c] sm:$0x1] }
 0x2a7   :  { %6678 = vmatmul.msk.bf16.vlgmr.msrb.gmra.mxu3 %vm150_vm0, %v6612_v50  ;;  %v5815_v59 = vpack.c.b16 %v5790_v6, %v5789_v35  ;;  %v5244_v50 = vrot.slane %v5242_v5, 5  ;;  %v5240_v39 = vrot.slane %v5239_v61, 4  ;;  %v5436_v30 = vrot.slane %v5434_v0, 5  ;;  %v10445_v3 = vld [vmem:[%s10740_s0 + $0x174] sm:$0xf] }
 0x2a8   :  { %5889 = vmatpush.bf16.xpose.msra.mxu3 %v5874_v31  ;;  %v5246_v31 = vshrl.u32 %v10354_v60, 16  ;;  %v5444_v58 = vshll.u32 %v10391_v23, 16  ;;  %v5440_v35 = vrot.slane %v5438_v26, 4  ;;  %v6687_v18 = vrot.slane %v10259_v14, 9  ;;  %v3933_v62 = vpop.f32.mrf.mxu2 }
 0x2a9   :  { %v5847_v43 = vsel %vm150_vm0, %v5815_v59, 0  ;;  %v5245_v16 = vsel %vm6921_vm3, %v5240_v39, %v5244_v50  ;;  %v5701_v24 = vrot.slane %v10266_v47, 5  ;;  %v5431_v37 = vor.u32 %v5430_v32, %v5427_v41  ;;  %v3946_v47 = vpop.f32.mrf.mxu3 }
 0x2aa   :  { %v5248_v21 = vrot.slane %v5246_v31, 4  ;;  %v5529_v29 = vunpack.c.l.b16 %v5245_v16  ;;  %v5446_v25 = vrot.slane %v5444_v58, 5  ;;  %v5441_v42 = vor.u32 %v5440_v35, %v5436_v30 }
 0x2ab   :  { %5877 = vmatpush.bf16.xpose.msra.mxu2 %v5847_v43  ;;  %v5702_v49 = vsel %vm7216_vm6, %v6687_v18, %v5701_v24  ;;  %v5703_v2 = vrot.slane %v5701_v24, 4  ;;  %v5432_v46 = vrot.slane %v5431_v37, 4  ;;  %v5704_v55 = vrot.slane %v10280_v11, 5  ;;  %v10462_v24 = vld [vmem:[%s10740_s0 + $0x17c] sm:$0x1] }
 0x2ac   :  { %v5249_v7 = vor.u32 %v5248_v21, %v5244_v50  ;;  %v5787_v36 = vunpack.c.l.b16 %v5702_v49  ;;  %v6695_v14 = vrot.slane %v10290_v1, 9  ;;  %v5442_v40 = vrot.slane %v5441_v42, 4 }
 0x2ad   :  { %v5757_v5 = vrot.slane %v10297_v9, 5  ;;  %v5760_v31 = vrot.slane %v10303_v12, 5  ;;  %v5437_v56 = vsel %vm6921_vm3, %v5432_v46, %v5436_v30  ;;  %v5705_v11 = vsel %vm7216_vm6, %v5703_v2, %v5704_v55  ;;  %v10427_v9 = vld [vmem:[%s10740_s0 + $0x118] sm:$0xf] }
 0x2ae   :  { %v5250_v10 = vrot.slane %v5249_v7, 4  ;;  %v3692_v1 = vadd.f32 %v10315_v38, %v10321_v53  ;;  %v3693_v4 = vadd.f32 %v10317_v8, %v10325_v13  ;;  %v5447_v34 = vsel %vm6921_vm3, %v5442_v40, %v5446_v25 }
 0x2af   :  { %v5545_v43 = vunpack.c.l.b16 %v5437_v56  ;;  %v5788_v50 = vunpack.c.l.b16 %v5705_v11  ;;  %v5546_v21 = vunpack.c.l.b16 %v5447_v34  ;;  %v5758_v38 = vsel %vm7216_vm6, %v6695_v14, %v5757_v5 }
 0x2b0   :  { %5890 = vmatpush.bf16.xpose.msra.mxu3 %v5871_v51  ;;  %v5255_v28 = vsel %vm6921_vm3, %v5250_v10, %v5254_v17  ;;  %v5759_v53 = vrot.slane %v5757_v5, 4  ;;  %v5209_v8 = vshrl.u32 %v10414_v22, 16  ;;  %v5803_v15 = vunpack.c.l.b16 %v5758_v38  ;;  %v10453_v51 = vld [vmem:[%s10740_s0 + $0x178] sm:$0xf] }
 0x2b1   :  { %v5530_v6 = vunpack.c.l.b16 %v5255_v28  ;;  %v5814_v13 = vpack.c.b16 %v5788_v50, %v5787_v36  ;;  %v5212_v27 = vshll.u32 %v10414_v22, 16  ;;  %v5218_v61 = vshll.u32 %v10427_v9, 16 }
 0x2b2   :  { %v5565_v7 = vpack.c.b16 %v5546_v21, %v5545_v43  ;;  %v5761_v17 = vsel %vm7216_vm6, %v5759_v53, %v5760_v31  ;;  %v5211_v19 = vrot.slane %v5209_v8, 4  ;;  %v5222_v0 = vshrl.u32 %v10427_v9, 16 }
 0x2b3   :  { %v5557_v59 = vpack.c.b16 %v5530_v6, %v5529_v29  ;;  %v5844_v39 = vsel %vm150_vm0, %v5814_v13, 0  ;;  %v5804_v41 = vunpack.c.l.b16 %v5761_v17  ;;  %v5214_v26 = vrot.slane %v5212_v27, 5 }
 0x2b4   :  { %v5220_v10 = vrot.slane %v5218_v61, 5  ;;  %v5609_v32 = vsel %vm150_vm0, %v5565_v7, 0  ;;  %5878 = vmatpush.bf16.xpose.msra.mxu2 %v5844_v39  ;;  %v5224_v30 = vrot.slane %v5222_v0, 4  ;;  %v5228_v58 = vshll.u32 %v10438_v45, 16  ;;  %v10509_v39 = vld [vmem:[%s10740_s0 + $0x110] sm:$0x1] }
 0x2b5   :  { %v5585_v12 = vsel %vm150_vm0, %v5557_v59, 0  ;;  %v5401_v16 = vshrl.u32 %v10445_v3, 16  ;;  %5636 = vmatpush.bf16.xpose.msra.mxu1 %v5609_v32  ;;  %v5822_v35 = vpack.c.b16 %v5804_v41, %v5803_v15  ;;  %v5215_v18 = vor.u32 %v5214_v26, %v5211_v19  ;;  %v10501_v15 = vld [vmem:[%s10740_s0 + $0x10c] sm:$0xf] }
 0x2b6   :  { %5623 = vmatpush.bf16.xpose.msra.mxu0 %v5585_v12  ;;  %v5404_v28 = vshll.u32 %v10445_v3, 16  ;;  %v5410_v29 = vshll.u32 %v10453_v51, 16  ;;  %v5225_v37 = vor.u32 %v5224_v30, %v5220_v10  ;;  %v5230_v25 = vrot.slane %v5228_v58, 5 }
 0x2b7   :  { %v5403_v6 = vrot.slane %v5401_v16, 4  ;;  %v5414_v42 = vshrl.u32 %v10453_v51, 16  ;;  %v5868_v49 = vsel %vm150_vm0, %v5822_v35, 0  ;;  %v5216_v2 = vrot.slane %v5215_v18, 4  ;;  %v10520_v16 = vld [vmem:[%s10740_s0 + $0x168] sm:$0xf] }
 0x2b8   :  { %v5406_v46 = vrot.slane %v5404_v28, 5  ;;  %v5412_v55 = vrot.slane %v5410_v29, 5  ;;  %5891 = vmatpush.bf16.xpose.msra.mxu3 %v5868_v49  ;;  %v5226_v36 = vrot.slane %v5225_v37, 4  ;;  %v5420_v62 = vshll.u32 %v10462_v24, 16  ;;  %v10525_v37 = vld [vmem:[%s10740_s0 + $0x16c] sm:$0xf] }
 0x2b9   :  { %v5416_v14 = vrot.slane %v5414_v42, 4  ;;  %v10470_v47 = vadd.f32 %v10383_v57, %v3692_v1  ;;  %v5221_v59 = vsel %vm6921_vm3, %v5216_v2, %v5220_v10  ;;  %v10475_v5 = vadd.f32 %v10385_v63, %v3693_v4 }
 0x2ba   :  { %v5407_v40 = vor.u32 %v5406_v46, %v5403_v6  ;;  %v6686_v31 = vrot.slane %v10344_v44, 9  ;;  %v5231_v56 = vsel %vm6921_vm3, %v5226_v36, %v5230_v25  ;;  %v5527_v11 = vunpack.c.l.b16 %v5221_v59  ;;  %v10533_v36 = vld [vmem:[%s10740_s0 + $0x170] sm:$0x1] }
 0x2bb   :  { %v5417_v12 = vor.u32 %v5416_v14, %v5412_v55  ;;  %v5422_v34 = vrot.slane %v5420_v62, 5  ;;  %v5528_v43 = vunpack.c.l.b16 %v5231_v56  ;;  %v5694_v57 = vrot.slane %v10354_v60, 5  ;;  %v10492_v60 = vld [vmem:[%s10740_s0 + $0x108] sm:$0xf] }
 0x2bc   :  { %v5408_v50 = vrot.slane %v5407_v40, 4  ;;  %v5697_v1 = vrot.slane %v10363_v54, 5  ;;  %v6694_v38 = vrot.slane %v10374_v20, 9  ;;  %v5750_v63 = vrot.slane %v10379_v52, 5 }
 0x2bd   :  { %v5418_v21 = vrot.slane %v5417_v12, 4  ;;  %v5753_v4 = vrot.slane %v10391_v23, 5  ;;  %v5556_v44 = vpack.c.b16 %v5528_v43, %v5527_v11  ;;  %v5695_v8 = vsel %vm7216_vm6, %v6686_v31, %v5694_v57 }
 0x2be   :  { %v5413_v53 = vsel %vm6921_vm3, %v5408_v50, %v5412_v55  ;;  %v5696_v13 = vrot.slane %v5694_v57, 4  ;;  %v5785_v52 = vunpack.c.l.b16 %v5695_v8  ;;  %v5751_v23 = vsel %vm7216_vm6, %v6694_v38, %v5750_v63 }
 0x2bf   :  { %v5423_v54 = vsel %vm6921_vm3, %v5418_v21, %v5422_v34  ;;  %v5543_v20 = vunpack.c.l.b16 %v5413_v53  ;;  %v5582_v27 = vsel %vm150_vm0, %v5556_v44, 0  ;;  %v5752_v17 = vrot.slane %v5750_v63, 4 }
 0x2c0   :  { %v5544_v61 = vunpack.c.l.b16 %v5423_v54  ;;  %v5698_v7 = vsel %vm7216_vm6, %v5696_v13, %v5697_v1  ;;  %5624 = vmatpush.bf16.xpose.msra.mxu0 %v5582_v27  ;;  %v5801_v0 = vunpack.c.l.b16 %v5751_v23  ;;  %v5185_v41 = vshrl.u32 %v10492_v60, 16  ;;  %v10552_v27 = vld [vmem:[%s10740_s0 + $0xfc] sm:$0xf] }
 0x2c1   :  { %v5786_v19 = vunpack.c.l.b16 %v5698_v7  ;;  %v5188_v26 = vshll.u32 %v10492_v60, 16  ;;  %v5754_v32 = vsel %vm7216_vm6, %v5752_v17, %v5753_v4  ;;  %v5194_v30 = vshll.u32 %v10501_v15, 16 }
 0x2c2   :  { %v5564_v10 = vpack.c.b16 %v5544_v61, %v5543_v20  ;;  %v5198_v58 = vshrl.u32 %v10501_v15, 16  ;;  %v5802_v18 = vunpack.c.l.b16 %v5754_v32  ;;  %v5187_v28 = vrot.slane %v5185_v41, 4  ;;  %v10565_v32 = vld [vmem:[%s10740_s0 + $0x100] sm:$0xf] }
 0x2c3   :  { %v5813_v35 = vpack.c.b16 %v5786_v19, %v5785_v52  ;;  %v5190_v29 = vrot.slane %v5188_v26, 5  ;;  %v5196_v6 = vrot.slane %v5194_v30, 5  ;;  %v5204_v49 = vshll.u32 %v10509_v39, 16 }
 0x2c4   :  { %v5606_v25 = vsel %vm150_vm0, %v5564_v10, 0  ;;  %v5200_v42 = vrot.slane %v5198_v58, 4  ;;  %v5821_v46 = vpack.c.b16 %v5802_v18, %v5801_v0  ;;  %v5377_v14 = vshrl.u32 %v10520_v16, 16 }
 0x2c5   :  { %5637 = vmatpush.bf16.xpose.msra.mxu1 %v5606_v25  ;;  %v5841_v2 = vsel %vm150_vm0, %v5813_v35, 0  ;;  %v5191_v55 = vor.u32 %v5190_v29, %v5187_v28  ;;  %v5206_v59 = vrot.slane %v5204_v49, 5  ;;  %v5380_v40 = vshll.u32 %v10520_v16, 16  ;;  %v10575_v35 = vld [vmem:[%s10740_s0 + $0x104] sm:$0x1] }
 0x2c6   :  { %5879 = vmatpush.bf16.xpose.msra.mxu2 %v5841_v2  ;;  %v5201_v62 = vor.u32 %v5200_v42, %v5196_v6  ;;  %v5386_v31 = vshll.u32 %v10525_v37, 16  ;;  %v5865_v56 = vsel %vm150_vm0, %v5821_v46, 0  ;;  %v5379_v12 = vrot.slane %v5377_v14, 4  ;;  %v10583_v46 = vld [vmem:[%s10740_s0 + $0x15c] sm:$0xf] }
 0x2c7   :  { %v5192_v11 = vrot.slane %v5191_v55, 4  ;;  %v5390_v34 = vshrl.u32 %v10525_v37, 16  ;;  %5892 = vmatpush.bf16.xpose.msra.mxu3 %v5865_v56  ;;  %v5382_v50 = vrot.slane %v5380_v40, 5  ;;  %v5396_v1 = vshll.u32 %v10533_v36, 16  ;;  %v10592_v40 = vld [vmem:[%s10740_s0 + $0x160] sm:$0xf] }
 0x2c8   :  { %v5202_v43 = vrot.slane %v5201_v62, 4  ;;  %v5388_v57 = vrot.slane %v5386_v31, 5  ;;  %v6685_v63 = vrot.slane %v10414_v22, 9  ;;  %v5687_v4 = vrot.slane %v10427_v9, 5 }
 0x2c9   :  { %v5197_v21 = vsel %vm6921_vm3, %v5192_v11, %v5196_v6  ;;  %v5392_v38 = vrot.slane %v5390_v34, 4  ;;  %v5383_v8 = vor.u32 %v5382_v50, %v5379_v12  ;;  %v5398_v13 = vrot.slane %v5396_v1, 5  ;;  %v10598_v34 = vld [vmem:[%s10740_s0 + $0x164] sm:$0x1] }
 0x2ca   :  { %v5207_v44 = vsel %vm6921_vm3, %v5202_v43, %v5206_v59  ;;  %v5525_v53 = vunpack.c.l.b16 %v5197_v21  ;;  %v5688_v52 = vsel %vm7216_vm6, %v6685_v63, %v5687_v4  ;;  %v5689_v23 = vrot.slane %v5687_v4, 4 }
 0x2cb   :  { %v5526_v54 = vunpack.c.l.b16 %v5207_v44  ;;  %v5393_v20 = vor.u32 %v5392_v38, %v5388_v57  ;;  %v5384_v22 = vrot.slane %v5383_v8, 4  ;;  %v5690_v9 = vrot.slane %v10438_v45, 5 }
 0x2cc   :  { %v5783_v61 = vunpack.c.l.b16 %v5688_v52  ;;  %v6693_v7 = vrot.slane %v10445_v3, 9  ;;  %v5743_v0 = vrot.slane %v10453_v51, 5  ;;  %v5746_v41 = vrot.slane %v10462_v24, 5 }
 0x2cd   :  { %v5555_v17 = vpack.c.b16 %v5526_v54, %v5525_v53  ;;  %v5394_v19 = vrot.slane %v5393_v20, 4  ;;  %v5389_v26 = vsel %vm6921_vm3, %v5384_v22, %v5388_v57  ;;  %v5691_v10 = vsel %vm7216_vm6, %v5689_v23, %v5690_v9 }
 0x2ce   :  { %v5161_v45 = vshrl.u32 %v10552_v27, 16  ;;  %v5164_v3 = vshll.u32 %v10552_v27, 16  ;;  %v5541_v24 = vunpack.c.l.b16 %v5389_v26  ;;  %v5784_v58 = vunpack.c.l.b16 %v5691_v10 }
 0x2cf   :  { %v5579_v30 = vsel %vm150_vm0, %v5555_v17, 0  ;;  %v5399_v51 = vsel %vm6921_vm3, %v5394_v19, %v5398_v13  ;;  %v5744_v28 = vsel %vm7216_vm6, %v6693_v7, %v5743_v0  ;;  %v5745_v29 = vrot.slane %v5743_v0, 4 }
 0x2d0   :  { %5625 = vmatpush.bf16.xpose.msra.mxu0 %v5579_v30  ;;  %v5542_v18 = vunpack.c.l.b16 %v5399_v51  ;;  %v5163_v25 = vrot.slane %v5161_v45, 4  ;;  %v5812_v6 = vpack.c.b16 %v5784_v58, %v5783_v61  ;;  %v5799_v42 = vunpack.c.l.b16 %v5744_v28  ;;  %v10623_v28 = vld [vmem:[%s10740_s0 + $0xf0] sm:$0xf] }
 0x2d1   :  { %v5166_v49 = vrot.slane %v5164_v3, 5  ;;  %v5170_v2 = vshll.u32 %v10565_v32, 16  ;;  %v5747_v14 = vsel %vm7216_vm6, %v5745_v29, %v5746_v41  ;;  %v5174_v62 = vshrl.u32 %v10565_v32, 16 }
 0x2d2   :  { %v5563_v55 = vpack.c.b16 %v5542_v18, %v5541_v24  ;;  %v5180_v59 = vshll.u32 %v10575_v35, 16  ;;  %v5838_v31 = vsel %vm150_vm0, %v5812_v6, 0  ;;  %v5800_v56 = vunpack.c.l.b16 %v5747_v14  ;;  %v10633_v6 = vld [vmem:[%s10740_s0 + $0xf4] sm:$0xf]  ;;  %v10640_v14 = vld [vmem:[%s10740_s0 + $0xf8] sm:$0x1] }
 0x2d3   :  { %v5167_v11 = vor.u32 %v5166_v49, %v5163_v25  ;;  %v5172_v12 = vrot.slane %v5170_v2, 5  ;;  %5880 = vmatpush.bf16.xpose.msra.mxu2 %v5838_v31  ;;  %v5176_v50 = vrot.slane %v5174_v62, 4  ;;  %v5353_v1 = vshrl.u32 %v10583_v46, 16  ;;  %v10642_v62 = vpop.f32.mrf.mxu0 }
 0x2d4   :  { %v5603_v43 = vsel %vm150_vm0, %v5563_v55, 0  ;;  %v5182_v57 = vrot.slane %v5180_v59, 5  ;;  %v5820_v21 = vpack.c.b16 %v5800_v56, %v5799_v42  ;;  %v5356_v63 = vshll.u32 %v10583_v46, 16 }
 0x2d5   :  { %5638 = vmatpush.bf16.xpose.msra.mxu1 %v5603_v43  ;;  %v5168_v38 = vrot.slane %v5167_v11, 4  ;;  %v5362_v4 = vshll.u32 %v10592_v40, 16  ;;  %v5177_v44 = vor.u32 %v5176_v50, %v5172_v12  ;;  %v5355_v53 = vrot.slane %v5353_v1, 4  ;;  %v10648_v11 = vpop.f32.mrf.mxu1  ;;  %v10655_v1 = vld [vmem:[%s10740_s0 + $0x150] sm:$0xf] }
 0x2d6   :  { %v5366_v8 = vshrl.u32 %v10592_v40, 16  ;;  %v5372_v13 = vshll.u32 %v10598_v34, 16  ;;  %v5862_v54 = vsel %vm150_vm0, %v5820_v21, 0  ;;  %v5358_v52 = vrot.slane %v5356_v63, 5 }
 0x2d7   :  { %v5173_v20 = vsel %vm6921_vm3, %v5168_v38, %v5172_v12  ;;  %v5364_v23 = vrot.slane %v5362_v4, 5  ;;  %5893 = vmatpush.bf16.xpose.msra.mxu3 %v5862_v54  ;;  %v5178_v22 = vrot.slane %v5177_v44, 4  ;;  %v6684_v19 = vrot.slane %v10492_v60, 9  ;;  %v10662_v44 = vld [vmem:[%s10740_s0 + $0x154] sm:$0xf] }
 0x2d8   :  { %v5523_v9 = vunpack.c.l.b16 %v5173_v20  ;;  %v5368_v61 = vrot.slane %v5366_v8, 4  ;;  %v5374_v7 = vrot.slane %v5372_v13, 5  ;;  %v5359_v17 = vor.u32 %v5358_v52, %v5355_v53  ;;  %v10668_v20 = vld [vmem:[%s10740_s0 + $0x158] sm:$0x1] }
 0x2d9   :  { %v5680_v0 = vrot.slane %v10501_v15, 5  ;;  %v5683_v41 = vrot.slane %v10509_v39, 5  ;;  %v5183_v26 = vsel %vm6921_vm3, %v5178_v22, %v5182_v57  ;;  %v6692_v45 = vrot.slane %v10520_v16, 9 }
 0x2da   :  { %v5369_v10 = vor.u32 %v5368_v61, %v5364_v23  ;;  %v5736_v3 = vrot.slane %v10525_v37, 5  ;;  %v5524_v30 = vunpack.c.l.b16 %v5183_v26  ;;  %v5360_v51 = vrot.slane %v5359_v17, 4 }
 0x2db   :  { %v5681_v24 = vsel %vm7216_vm6, %v6684_v19, %v5680_v0  ;;  %v5682_v58 = vrot.slane %v5680_v0, 4  ;;  %v5739_v25 = vrot.slane %v10533_v36, 5  ;;  %v5137_v56 = vshrl.u32 %v10623_v28, 16 }
 0x2dc   :  { %v5370_v18 = vrot.slane %v5369_v10, 4  ;;  %v5781_v60 = vunpack.c.l.b16 %v5681_v24  ;;  %v5737_v15 = vsel %vm7216_vm6, %v6692_v45, %v5736_v3  ;;  %v5738_v39 = vrot.slane %v5736_v3, 4 }
 0x2dd   :  { %v5554_v16 = vpack.c.b16 %v5524_v30, %v5523_v9  ;;  %v5365_v37 = vsel %vm6921_vm3, %v5360_v51, %v5364_v23  ;;  %v5684_v29 = vsel %vm7216_vm6, %v5682_v58, %v5683_v41  ;;  %v5797_v55 = vunpack.c.l.b16 %v5737_v15  ;;  %v4142_v58 = vpop.f32.mrf.mxu0 }
 0x2de   :  { %v5375_v42 = vsel %vm6921_vm3, %v5370_v18, %v5374_v7  ;;  %v5539_v49 = vunpack.c.l.b16 %v5365_v37  ;;  %v5782_v2 = vunpack.c.l.b16 %v5684_v29  ;;  %v5740_v31 = vsel %vm7216_vm6, %v5738_v39, %v5739_v25 }
 0x2df   :  { %v5576_v36 = vsel %vm150_vm0, %v5554_v16, 0  ;;  %v5540_v59 = vunpack.c.l.b16 %v5375_v42  ;;  %v5798_v43 = vunpack.c.l.b16 %v5740_v31  ;;  %v5140_v50 = vshll.u32 %v10623_v28, 16  ;;  %v4155_v16 = vpop.f32.mrf.mxu1 }
 0x2e0   :  { %5626 = vmatpush.bf16.xpose.msra.mxu0 %v5576_v36  ;;  %v5811_v12 = vpack.c.b16 %v5782_v2, %v5781_v60  ;;  %v5146_v57 = vshll.u32 %v10633_v6, 16  ;;  %v5139_v38 = vrot.slane %v5137_v56, 4  ;;  %v5150_v63 = vshrl.u32 %v10633_v6, 16 }
 0x2e1   :  { %v5562_v21 = vpack.c.b16 %v5540_v59, %v5539_v49  ;;  %v5156_v4 = vshll.u32 %v10640_v14, 16  ;;  %v5819_v8 = vpack.c.b16 %v5798_v43, %v5797_v55  ;;  %v5142_v13 = vrot.slane %v5140_v50, 5 }
 0x2e2   :  { %v5835_v53 = vsel %vm150_vm0, %v5811_v12, 0  ;;  %v5148_v54 = vrot.slane %v5146_v57, 5  ;;  %v5152_v23 = vrot.slane %v5150_v63, 4  ;;  %v5329_v9 = vshrl.u32 %v10655_v1, 16 }
 0x2e3   :  { %v5600_v52 = vsel %vm150_vm0, %v5562_v21, 0  ;;  %5881 = vmatpush.bf16.xpose.msra.mxu2 %v5835_v53  ;;  %v5158_v22 = vrot.slane %v5156_v4, 5  ;;  %v5859_v61 = vsel %vm150_vm0, %v5819_v8, 0  ;;  %v5143_v7 = vor.u32 %v5142_v13, %v5139_v38 }
 0x2e4   :  { %5639 = vmatpush.bf16.xpose.msra.mxu1 %v5600_v52  ;;  %v5332_v17 = vshll.u32 %v10655_v1, 16  ;;  %v5338_v19 = vshll.u32 %v10662_v44, 16  ;;  %5894 = vmatpush.bf16.xpose.msra.mxu3 %v5859_v61  ;;  %v5153_v0 = vor.u32 %v5152_v23, %v5148_v54  ;;  %v5331_v41 = vrot.slane %v5329_v9, 4 }
 0x2e5   :  { %v5342_v26 = vshrl.u32 %v10662_v44, 16  ;;  %v5348_v10 = vshll.u32 %v10668_v20, 16  ;;  %v5144_v45 = vrot.slane %v5143_v7, 4  ;;  %v6683_v51 = vrot.slane %v10552_v27, 9  ;;  %v10678_v24 = vpop.f32.mrf.mxu2 }
 0x2e6   :  { %v5334_v3 = vrot.slane %v5332_v17, 5  ;;  %v5340_v30 = vrot.slane %v5338_v19, 5  ;;  %v5154_v18 = vrot.slane %v5153_v0, 4  ;;  %v5673_v39 = vrot.slane %v10565_v32, 5 }
 0x2e7   :  { %v5344_v60 = vrot.slane %v5342_v26, 4  ;;  %v5350_v15 = vrot.slane %v5348_v10, 5  ;;  %v5149_v37 = vsel %vm6921_vm3, %v5144_v45, %v5148_v54  ;;  %v5676_v25 = vrot.slane %v10575_v35, 5 }
 0x2e8   :  { %v5335_v29 = vor.u32 %v5334_v3, %v5331_v41  ;;  %v6691_v42 = vrot.slane %v10583_v46, 9  ;;  %v5159_v27 = vsel %vm6921_vm3, %v5154_v18, %v5158_v22  ;;  %v5521_v49 = vunpack.c.l.b16 %v5149_v37 }
 0x2e9   :  { %v5345_v2 = vor.u32 %v5344_v60, %v5340_v30  ;;  %v5674_v55 = vsel %vm7216_vm6, %v6683_v51, %v5673_v39  ;;  %v5522_v36 = vunpack.c.l.b16 %v5159_v27  ;;  %v5675_v32 = vrot.slane %v5673_v39, 4 }
 0x2ea   :  { %v5336_v59 = vrot.slane %v5335_v29, 4  ;;  %v5779_v31 = vunpack.c.l.b16 %v5674_v55  ;;  %v4665_v56 = vpop.f32.mrf.mxu3  ;;  %v5729_v43 = vrot.slane %v10592_v40, 5  ;;  %v5732_v35 = vrot.slane %v10598_v34, 5 }
 0x2eb   :  { %v5346_v12 = vrot.slane %v5345_v2, 4  ;;  %v6682_v46 = vrot.slane %v10623_v28, 9  ;;  %v5553_v50 = vpack.c.b16 %v5522_v36, %v5521_v49  ;;  %v5677_v21 = vsel %vm7216_vm6, %v5675_v32, %v5676_v25 }
 0x2ec   :  { %v5341_v57 = vsel %vm6921_vm3, %v5336_v59, %v5340_v30  ;;  %v5666_v38 = vrot.slane %v10633_v6, 5  ;;  %v5780_v53 = vunpack.c.l.b16 %v5677_v21  ;;  %v5730_v40 = vsel %vm7216_vm6, %v6691_v42, %v5729_v43  ;;  %v6679_v30 = vld [vmem:[%s10741_s1 + $0xe] sm:$0x3] }
 0x2ed   :  { %v5351_v63 = vsel %vm6921_vm3, %v5346_v12, %v5350_v15  ;;  %v5537_v4 = vunpack.c.l.b16 %v5341_v57  ;;  %v5573_v34 = vsel %vm150_vm0, %v5553_v50, 0  ;;  %v5731_v8 = vrot.slane %v5729_v43, 4  ;;  %v4654_v54 = vpop.f32.mrf.mxu2 }
 0x2ee   :  { %v5538_v28 = vunpack.c.l.b16 %v5351_v63  ;;  %v5795_v13 = vunpack.c.l.b16 %v5730_v40  ;;  %5627 = vmatpush.bf16.xpose.msra.mxu0 %v5573_v34  ;;  %v5810_v52 = vpack.c.b16 %v5780_v53, %v5779_v31  ;;  %v5667_v23 = vsel %vm7216_vm6, %v6682_v46, %v5666_v38 }
 0x2ef   :  { %v5668_v6 = vrot.slane %v5666_v38, 4  ;;  %v5669_v33 = vrot.slane %v10640_v14, 5  ;;  %v5733_v9 = vsel %vm7216_vm6, %v5731_v8, %v5732_v35  ;;  %v5777_v61 = vunpack.c.l.b16 %v5667_v23 }
 0x2f0   :  { %v5561_v22 = vpack.c.b16 %v5538_v28, %v5537_v4  ;;  %v6690_v7 = vrot.slane %v10655_v1, 9  ;;  %v5832_v17 = vsel %vm150_vm0, %v5810_v52, 0  ;;  %v5796_v19 = vunpack.c.l.b16 %v5733_v9 }
 0x2f1   :  { %v5670_v0 = vsel %vm7216_vm6, %v5668_v6, %v5669_v33  ;;  %v5722_v41 = vrot.slane %v10662_v44, 5  ;;  %5882 = vmatpush.bf16.xpose.msra.mxu2 %v5832_v17  ;;  %v5725_v14 = vrot.slane %v10668_v20, 5  ;;  %v4157_v45 = vadd.f32 %v10642_v62, %v10470_v47 }
 0x2f2   :  { %v5597_v26 = vsel %vm150_vm0, %v5561_v22, 0  ;;  %v5778_v10 = vunpack.c.l.b16 %v5670_v0  ;;  %v4667_v3 = vpop.f32.mrf.mxu3  ;;  %v5818_v1 = vpack.c.b16 %v5796_v19, %v5795_v13  ;;  %v4158_v58 = vadd.f32 %v10648_v11, %v10475_v5  ;;  %v6698_v11 = vld [vmem:[%s10741_s1 + $0x10] sm:$0x3]  ;;  %s6829_s1 = smov [#allocation2]  }
 0x2f3   :  { %5640 = vmatpush.bf16.xpose.msra.mxu1 %v5597_v26  ;;  %v5723_v51 = vsel %vm7216_vm6, %v6690_v7, %v5722_v41  ;;  %v5724_v44 = vrot.slane %v5722_v41, 4  ;;  %v4669_v20 = vadd.f32 %v10678_v24, %v4157_v45  ;;  %s5915_s13 = sshll.u32 %s6829_s1, 4  ;;  %s5916_s13 = int_to_ptr.vmem [resolvable:$true] %s5915_s13 }
 0x2f4   :  { %v5809_v18 = vpack.c.b16 %v5778_v10, %v5777_v61  ;;  %v5793_v60 = vunpack.c.l.b16 %v5723_v51  ;;  %v5856_v47 = vsel %vm150_vm0, %v5818_v1, 0  ;;  %v4670_v15 = vadd.f32 %v4665_v56, %v4158_v58 }
 0x2f5   :  { %v5726_v62 = vsel %vm7216_vm6, %v5724_v44, %v5725_v14  ;;  %5895 = vmatpush.bf16.xpose.msra.mxu3 %v5856_v47  ;;  %6680 = vmatmul.msk.bf16.vlgmr.msra.gmra.mxu0 %vm150_vm0, %v6679_v30 }
 0x2f6   :  { %v5794_v39 = vunpack.c.l.b16 %v5726_v62  ;;  %v5829_v16 = vsel %vm150_vm0, %v5809_v18, 0 }
 0x2f8   :  { %v5817_v37 = vpack.c.b16 %v5794_v39, %v5793_v60 }
 0x2f9   :  { %5883 = vmatpush.bf16.xpose.msra.mxu2 %v5829_v16 }
 0x2fa   :  { %6681 = vmatmul.msk.bf16.vlgmr.msra.gmra.mxu1 %vm150_vm0, %v6679_v30  ;;  %v5853_v5 = vsel %vm150_vm0, %v5817_v37, 0 }
 0x2fd   :  { %5896 = vmatpush.bf16.xpose.msra.mxu3 %v5853_v5 }
 0x300   :  { %6699 = vmatmul.msk.bf16.vlgmr.msra.gmra.mxu2 %vm150_vm0, %v6698_v11 }
 0x304   :  { %6700 = vmatmul.msk.bf16.vlgmr.msra.gmra.mxu3 %vm150_vm0, %v6698_v11 }
 0x30e   :  { %v4921_v29 = vpop.f32.mrf.mxu1 }
 0x30f   :  { %v4926_v25 = vadd.f32 %v4921_v29, %v4670_v15 }
 0x311   :  { %v4908_v48 = vpop.f32.mrf.mxu0 }
 0x312   :  { %v4925_v24 = vadd.f32 %v4908_v48, %v4669_v20 }
 0x316   :  { %v4923_v27 = vpop.f32.mrf.mxu1 }
 0x319   :  { %v4910_v42 = vpop.f32.mrf.mxu0 }
 0x325   :  { %v5117_v49 = vpop.f32.mrf.mxu2 }
 0x326   :  { %v5134_v2 = vadd.f32 %v5117_v49, %v4925_v24 }
 0x32a   :  { %v5130_v55 = vpop.f32.mrf.mxu3 }
 0x32b   :  { %v5135_v36 = vadd.f32 %v5130_v55, %v4926_v25 }
 0x32d   :  { %v5119_v59 = vpop.f32.mrf.mxu2 }
 0x332   :  { %v5132_v32 = vpop.f32.mrf.mxu3 }
 0x372   :  { %v5629_v31 = vpop.f32.mrf.mxu0 }
 0x373   :  { %v5646_v57 = vadd.f32 %v5629_v31, %v5134_v2 }
 0x377   :  { %v5642_v56 = vpop.f32.mrf.mxu1 }
 0x378   :  { %v5647_v46 = vadd.f32 %v5642_v56, %v5135_v36 }
 0x37a   :  { %v5631_v12 = vpop.f32.mrf.mxu0 }
 0x37f   :  { %v5644_v43 = vpop.f32.mrf.mxu1 }
 0x383   :  { %v5885_v35 = vpop.f32.mrf.mxu2 }
 0x384   :  { %v5902_v38 = vadd.f32 %v5885_v35, %v5646_v57 }
 0x387   :  { %v5898_v50 = vpop.f32.mrf.mxu3 }
 0x388   :  { %v5903_v21 = vadd.f32 %v5898_v50, %v5647_v46 }
 0x38a   :  { %v5906_v63 = vrot.slane %v5903_v21, 4 }
 0x38b   :  { %v5887_v4 = vpop.f32.mrf.mxu2 }
 0x38c   :  { %v5907_v53 = vsel %vm2969_vm7, %v5902_v38, %v5906_v63 }
 0x38d   :  { %5910 = vst [vmem:[#allocation2 + $0x8] sm:$0xff] %v5907_v53 }
 0x38e   :  { %5923 = dma.vmem_to_hbm [thread:$0]  %s5916_s13, 256, %s5918_s2, [#allocation3], %s6830_s16, %s6830_s16, %s6831_s17  }
 0x38f   :  { %v5900_v40 = vpop.f32.mrf.mxu3 }
 0x390   :  { %6826 = dma.done.wait [#allocation3], 256  }
 0x391   :  { %6827 = vsyncadd [#allocation3], 4294967040 }
 0x392   :  { %5928 = vsyncpa [#allocation3], 1 }

</bundles_post_ra>
